<compile_context>
chip_gen: v6e
topology: v6e:2x2x1
jax: 0.10.0
libtpu: 0.0.40
codegen_flags: <defaults>
</compile_context>

<pallas_src>
import functools

import jax
import jax.numpy as jnp
import numpy as np
from jax import lax
from jax.experimental import pallas as pl
from jax.experimental.pallas import tpu as pltpu


# ----------------------------------------------------------------------------
# Pallas kernel: time-blocked multi-layer LSTM + Linear/Sigmoid head
# ----------------------------------------------------------------------------
def _dkt_kernel(x_ref,                                  # (TT, TB, E) combined emb (f32)
                w_ih0_ref, w_ihr_ref, w_hh_ref, b_ref,  # LSTM weights (resident)
                w_out_ref, b_out_ref,                   # output head (resident)
                y_ref,                                  # (TT, TB, Qp) output block
                h_scr, c_scr,                           # (L, TB, H) carried state (f32)
                hseq_scr):                              # (TT*TB, H) layer activations (f32)
    TT, TB, E = x_ref.shape
    L = h_scr.shape[0]
    H = h_scr.shape[2]
    Qp = y_ref.shape[2]
    mxu_dtype = w_hh_ref.dtype          # bf16 (default) or f32

    # Zero the recurrent state at the first time block of each batch tile.
    @pl.when(pl.program_id(1) == 0)
    def _():
        h_scr[...] = jnp.zeros_like(h_scr)
        c_scr[...] = jnp.zeros_like(c_scr)

    # Layer-0 input for the whole time block, flattened to M = TT*TB rows and
    # cast once to the MXU operand dtype.
    x_all = x_ref[...].reshape(TT * TB, E).astype(mxu_dtype)

    # Stacked LSTM.  Gate columns were permuted offline to (i, f, o, g):
    # sigmoid covers the first 3H columns, tanh only the last H.
    for l in range(L):
        w_ih = w_ih0_ref[...] if l == 0 else w_ihr_ref[l - 1]      # (in, 4H)
        inp = x_all if l == 0 else hseq_scr[...].astype(mxu_dtype)  # (TT*TB, in)

        # Hoisted, time-parallel input projection: ONE big MXU dot per layer
        # per block (M = TT*TB), plus the folded f32 bias.
        g_ih = (jnp.dot(inp, w_ih, preferred_element_type=jnp.float32)
                + b_ref[l])                                         # (TT*TB, 4H) f32

        w_hh_l = w_hh_ref[l]                                        # (H, 4H)
        h = h_scr[l]                                                # (TB, H) f32
        c = c_scr[l]                                                # (TB, H) f32

        # Serial recurrence: only h @ W_hh stays on the per-step critical path.
        for t in range(TT):
            gates = (g_ih[t * TB:(t + 1) * TB, :]
                     + jnp.dot(h.astype(mxu_dtype), w_hh_l,
                               preferred_element_type=jnp.float32))  # (TB, 4H) f32
            sg = jax.nn.sigmoid(gates[:, :3 * H])   # i, f, o  (3H EUP lanes)
            g_g = jnp.tanh(gates[:, 3 * H:])        # g        (H  EUP lanes)
            i_g = sg[:, 0 * H:1 * H]
            f_g = sg[:, 1 * H:2 * H]
            o_g = sg[:, 2 * H:3 * H]
            c = f_g * c + i_g * g_g
            h = o_g * jnp.tanh(c)
            hseq_scr[pl.ds(t * TB, TB), :] = h
        h_scr[l] = h
        c_scr[l] = c

    # Output head: one big lane-dense dot over the whole time block.
    h_all = hseq_scr[...].astype(mxu_dtype)                         # (TT*TB, H)
    y = jax.nn.sigmoid(
        jnp.dot(h_all, w_out_ref[...], preferred_element_type=jnp.float32)
        + b_out_ref[...])                                           # (TT*TB, Qp)
    y_ref[...] = y.reshape(TT, TB, Qp).astype(y_ref.dtype)


# ----------------------------------------------------------------------------
# Tiling / VMEM helpers
# ----------------------------------------------------------------------------
_VMEM_BUDGET = 40 * 1024 * 1024     # conservative: fits v7x's 64 MiB with headroom


def _default_batch_block(B):
    # Prefer >= 2 batch tiles (so the "parallel" grid axis can shard across the
    # two v7x TensorCores) while keeping each tile as wide as possible for MXU fill.
    for tb in (256, 128, 64, 32, 16, 8):
        if B >= 2 * tb:
            return tb
    return 8


def _vmem_bytes(TT, TB, E, H, L, Qp, mxu_bytes, out_bytes):
    x_blk = 2 * TT * TB * E * 4                       # f32 input stream, double-buffered
    y_blk = 2 * TT * TB * Qp * out_bytes              # output block, double-buffered
    w = 2 * (E * 4 * H + max(L - 1, 1) * H * 4 * H
             + L * H * 4 * H + H * Qp) * mxu_bytes    # weights (default double-buffer)
    w += 2 * (L * 4 * H + Qp) * 4                     # f32 biases
    scr = 2 * L * TB * H * 4 + TT * TB * H * 4        # h/c carry + hseq scratch (f32)
    return x_blk + y_blk + w + scr


# ----------------------------------------------------------------------------
# Wrapper
# ----------------------------------------------------------------------------
def dkt_c_rasch_forward(q_seqs, r_seqs, pid_seqs, params, *,
                        time_block=32, batch_block=None,
                        mxu_dtype=jnp.bfloat16, out_dtype=jnp.float32):
    """Forward pass. q/r/pid_seqs: int32 (B, T). Returns (B, T, num_q) float32."""
    B, T = q_seqs.shape
    f32 = jnp.float32

    # --- glue: transpose the small int index arrays first, then gather ---
    qT = jnp.transpose(q_seqs)               # (T, B)
    rT = jnp.transpose(r_seqs)
    pT = jnp.transpose(pid_seqs)
    eq = jnp.take(params["emb_q"], qT, axis=0)       # (T, B, E)
    er = jnp.take(params["emb_r"], rT, axis=0)       # (T, B, E)
    ep = jnp.take(params["emb_pid"], pT, axis=0)     # (T, B, 1)

    # rasch combine in the wrapper (XLA fuses); single kernel input stream.
    # Kept f32 in HBM (sublane-packing-safe for any TB); cast to bf16 at the MXU.
    x = (eq + er + ep * eq).astype(f32)              # (T, B, E)
    E = x.shape[-1]

    L, H = params["w_hh"].shape[0], params["w_hh"].shape[1]
    num_q = params["w_out"].shape[1]

    # --- gate-column permutation (i,f,g,o) -> (i,f,o,g): one-time relayout ---
    def perm(w):
        return jnp.concatenate(
            [w[..., 0:H], w[..., H:2 * H], w[..., 3 * H:4 * H], w[..., 2 * H:3 * H]],
            axis=-1)

    w_ih0 = perm(params["w_ih0"]).astype(mxu_dtype)          # (E, 4H)
    w_ihr = perm(params["w_ihr"]).astype(mxu_dtype)          # (L-1, H, 4H)
    w_hh = perm(params["w_hh"]).astype(mxu_dtype)            # (L, H, 4H)
    b = perm(params["b"]).astype(f32)                        # (L, 1, 4H)
    w_out = params["w_out"].astype(mxu_dtype)                # (H, num_q)
    b_out = params["b_out"].astype(f32)                      # (1, num_q)
    if L == 1:   # avoid a zero-sized operand
        w_ihr = jnp.zeros((1, H, 4 * H), mxu_dtype)

    # --- batch tiling: multiple-of-8 tiles, pad B up to a tile multiple ---
    TB = _default_batch_block(B) if batch_block is None else batch_block
    assert TB % 8 == 0, TB
    B_pad = pl.cdiv(B, TB) * TB
    if B_pad != B:
        x = jnp.pad(x, ((0, 0), (0, B_pad - B), (0, 0)))

    # --- lane-dense output: pad num_q up to a multiple of 128 ---
    Qp = pl.cdiv(num_q, 128) * 128
    if Qp != num_q:
        w_out = jnp.pad(w_out, ((0, 0), (0, Qp - num_q)))
        b_out = jnp.pad(b_out, ((0, 0), (0, Qp - num_q)))

    # --- time tiling + VMEM budgeting ---
    mxu_bytes = jnp.dtype(mxu_dtype).itemsize
    out_bytes = jnp.dtype(out_dtype).itemsize
    TT = max(1, min(time_block, T))
    while TT > 8 and _vmem_bytes(TT, TB, E, H, L, Qp, mxu_bytes, out_bytes) > _VMEM_BUDGET:
        TT //= 2
    n_tb = pl.cdiv(T, TT)
    T_pad = n_tb * TT
    if T_pad != T:
        x = jnp.pad(x, ((0, T_pad - T), (0, 0), (0, 0)))

    vmem_limit = int(min(128 * 1024 * 1024,
                         max(32 * 1024 * 1024,
                             1.25 * _vmem_bytes(TT, TB, E, H, L, Qp,
                                                mxu_bytes, out_bytes))))

    full = lambda arr: pl.BlockSpec(arr.shape, lambda bi, ti: (0,) * arr.ndim)

    grid_spec = pltpu.PrefetchScalarGridSpec(
        num_scalar_prefetch=0,
        grid=(B_pad // TB, n_tb),            # batch tiles (parallel), time blocks (serial)
        in_specs=[
            pl.BlockSpec((TT, TB, E), lambda bi, ti: (ti, bi, 0)),   # combined emb
            full(w_ih0), full(w_ihr), full(w_hh), full(b),
            full(w_out), full(b_out),
        ],
        out_specs=pl.BlockSpec((TT, TB, Qp), lambda bi, ti: (ti, bi, 0)),
        scratch_shapes=[
            pltpu.VMEM((L, TB, H), jnp.float32),       # hidden state carry
            pltpu.VMEM((L, TB, H), jnp.float32),       # cell state carry
            pltpu.VMEM((TT * TB, H), jnp.float32),     # per-block layer activations
        ],
    )

    y_t = pl.pallas_call(
        _dkt_kernel,
        out_shape=jax.ShapeDtypeStruct((T_pad, B_pad, Qp), out_dtype),
        grid_spec=grid_spec,
        compiler_params=pltpu.CompilerParams(
            dimension_semantics=("parallel", "arbitrary"),
            vmem_limit_bytes=vmem_limit),
    )(x, w_ih0, w_ihr, w_hh, b, w_out, b_out)

    y = y_t[:T, :B, :num_q]                  # drop time / batch / num_q padding
    return jnp.transpose(y, (1, 0, 2)).astype(jnp.float32)   # (B, T, num_q)


# ----------------------------------------------------------------------------
# Pure-JAX reference (same math; mirrors the MXU-operand dtype rounding)
# ----------------------------------------------------------------------------
def dkt_c_rasch_reference(q_seqs, r_seqs, pid_seqs, params, *,
                          mxu_dtype=jnp.float32):
    eq = jnp.take(params["emb_q"], q_seqs, axis=0)
    er = jnp.take(params["emb_r"], r_seqs, axis=0)
    ep = jnp.take(params["emb_pid"], pid_seqs, axis=0)
    x = (eq + er + ep * eq).astype(mxu_dtype)      # (B, T, E)

    L, H = params["w_hh"].shape[0], params["w_hh"].shape[1]
    B = x.shape[0]

    for l in range(L):
        w_ih = (params["w_ih0"] if l == 0 else params["w_ihr"][l - 1]).astype(mxu_dtype)
        w_hh = params["w_hh"][l].astype(mxu_dtype)
        bias = params["b"][l]                      # (1, 4H) f32

        def step(carry, xt, w_ih=w_ih, w_hh=w_hh, bias=bias):
            h, c = carry
            gates = (jnp.dot(xt, w_ih, preferred_element_type=jnp.float32) + bias
                     + jnp.dot(h.astype(mxu_dtype), w_hh,
                               preferred_element_type=jnp.float32))
            i_g = jax.nn.sigmoid(gates[:, 0 * H:1 * H])
            f_g = jax.nn.sigmoid(gates[:, 1 * H:2 * H])
            g_g = jnp.tanh(gates[:, 2 * H:3 * H])
            o_g = jax.nn.sigmoid(gates[:, 3 * H:4 * H])
            c_new = f_g * c + i_g * g_g
            h_new = o_g * jnp.tanh(c_new)
            return (h_new, c_new), h_new

        init = (jnp.zeros((B, H), jnp.float32), jnp.zeros((B, H), jnp.float32))
        _, ys = lax.scan(step, init, jnp.swapaxes(x, 0, 1))
        x = jnp.swapaxes(ys, 0, 1).astype(mxu_dtype)

    logits = (jnp.dot(x, params["w_out"].astype(mxu_dtype),
                      preferred_element_type=jnp.float32) + params["b_out"])
    return jax.nn.sigmoid(logits)


# ----------------------------------------------------------------------------
# Deterministic parameter construction
# ----------------------------------------------------------------------------
def make_params(key, num_q, num_r, num_pid, emb_size, hidden_size, n_layers):
    ks = jax.random.split(key, 10)
    scale = 1.0 / np.sqrt(hidden_size)
    u = lambda k, shape: jax.random.uniform(k, shape, jnp.float32, -scale, scale)
    return {
        "emb_q": jax.random.normal(ks[0], (num_q, emb_size), jnp.float32),
        "emb_r": jax.random.normal(ks[1], (num_r, emb_size), jnp.float32),
        "emb_pid": jax.random.normal(ks[2], (num_pid, 1), jnp.float32),
        # LSTM weights pre-transposed for x @ W:  (in, 4H) / (H, 4H), gate order (i,f,g,o)
        "w_ih0": u(ks[3], (emb_size, 4 * hidden_size)),
        "w_ihr": u(ks[4], (max(n_layers - 1, 1), hidden_size, 4 * hidden_size)),
        "w_hh": u(ks[5], (n_layers, hidden_size, 4 * hidden_size)),
        # b = b_ih + b_hh folded into one bias per layer
        "b": u(ks[6], (n_layers, 1, 4 * hidden_size)),
        "w_out": u(ks[7], (hidden_size, num_q)),
        "b_out": u(ks[8], (1, num_q)),
    }


if __name__ == "__main__":
    # Small, TPU-friendly shapes (exercise both the batch and time grid axes).
    num_q, num_r, num_pid = 64, 2, 32
    emb_size, hidden_size, n_layers = 32, 32, 4
    B, T = 16, 16

    key = jax.random.PRNGKey(0)
    kp, kq, kr, kpid = jax.random.split(key, 4)

    params = make_params(kp, num_q, num_r, num_pid, emb_size, hidden_size, n_layers)

    q_seqs = jax.random.randint(kq, (B, T), 0, num_q, dtype=jnp.int32)
    r_seqs = jax.random.randint(kr, (B, T), 0, num_r, dtype=jnp.int32)
    pid_seqs = jax.random.randint(kpid, (B, T), 0, num_pid, dtype=jnp.int32)

    # Default (bf16 MXU operands) path, checked against a matched bf16-operand reference.
    fwd = jax.jit(functools.partial(dkt_c_rasch_forward,
                                    time_block=8, batch_block=8))
    y = jax.block_until_ready(fwd(q_seqs, r_seqs, pid_seqs, params))
    y_ref = jax.block_until_ready(
        dkt_c_rasch_reference(q_seqs, r_seqs, pid_seqs, params,
                              mxu_dtype=jnp.bfloat16))
    assert y.shape == (B, T, num_q), y.shape
    np.testing.assert_allclose(np.asarray(y), np.asarray(y_ref),
                               rtol=2e-3, atol=2e-3)

    # Full-f32 path, checked tightly against the pure-f32 reference (PyTorch parity).
    fwd_f32 = jax.jit(functools.partial(dkt_c_rasch_forward,
                                        time_block=8, batch_block=8,
                                        mxu_dtype=jnp.float32))
    y32 = jax.block_until_ready(fwd_f32(q_seqs, r_seqs, pid_seqs, params))
    y_ref32 = jax.block_until_ready(
        dkt_c_rasch_reference(q_seqs, r_seqs, pid_seqs, params))
    np.testing.assert_allclose(np.asarray(y32), np.asarray(y_ref32),
                               rtol=5e-4, atol=5e-5)

    print("KERNEL_OK")
</pallas_src>

<mosaic_0001>
module attributes {stable_mosaic.version = 11 : i64} {
  func.func @_dkt_kernel(%arg0: i32, %arg1: i32, %arg2: memref<8x8x32xf32, #tpu.memory_space<vmem>>, %arg3: memref<32x128xbf16, #tpu.memory_space<vmem>>, %arg4: memref<3x32x128xbf16, #tpu.memory_space<vmem>>, %arg5: memref<4x32x128xbf16, #tpu.memory_space<vmem>>, %arg6: memref<4x1x128xf32, #tpu.memory_space<vmem>>, %arg7: memref<32x128xbf16, #tpu.memory_space<vmem>>, %arg8: memref<1x128xf32, #tpu.memory_space<vmem>>, %arg9: memref<8x8x128xf32, #tpu.memory_space<vmem>>, %arg10: memref<4x8x32xf32, #tpu.memory_space<vmem>>, %arg11: memref<4x8x32xf32, #tpu.memory_space<vmem>>, %arg12: memref<64x32xf32, #tpu.memory_space<vmem>>) attributes {dimension_semantics = [#tpu.dimension_semantics<parallel>, #tpu.dimension_semantics<arbitrary>], iteration_bounds = array<i64: 2, 2>, scalar_prefetch = 0 : i64, scratch_operands = 3 : i64, tpu.core_type = #tpu.core_type<tc>, window_params = [{transform_indices = @transform_0, window_bounds = array<i64: 8, 8, 32>}, {pipeline_mode = #tpu.pipeline_mode<synchronous>, transform_indices = @transform_1, window_bounds = array<i64: 32, 128>}, {pipeline_mode = #tpu.pipeline_mode<synchronous>, transform_indices = @transform_2, window_bounds = array<i64: 3, 32, 128>}, {pipeline_mode = #tpu.pipeline_mode<synchronous>, transform_indices = @transform_3, window_bounds = array<i64: 4, 32, 128>}, {pipeline_mode = #tpu.pipeline_mode<synchronous>, transform_indices = @transform_4, window_bounds = array<i64: 4, 1, 128>}, {pipeline_mode = #tpu.pipeline_mode<synchronous>, transform_indices = @transform_5, window_bounds = array<i64: 32, 128>}, {pipeline_mode = #tpu.pipeline_mode<synchronous>, transform_indices = @transform_6, window_bounds = array<i64: 1, 128>}, {transform_indices = @transform_7, window_bounds = array<i64: 8, 8, 128>}]} {
    %c0_i32 = arith.constant 0 : i32
    %0 = arith.cmpi eq, %arg1, %c0_i32 : i32
    %1 = arith.extui %0 : i1 to i32
    %c0_i32_0 = arith.constant 0 : i32
    %2 = arith.cmpi ne, %1, %c0_i32_0 : i32
    scf.if %2 {
      %cst_224 = arith.constant 0.000000e+00 : f32
      %773 = vector.broadcast %cst_224 : f32 to vector<4x8x32xf32>
      %c0_225 = arith.constant 0 : index
      %c0_226 = arith.constant 0 : index
      %c0_227 = arith.constant 0 : index
      %774 = vector.load %arg10[%c0_225, %c0_226, %c0_227] : memref<4x8x32xf32, #tpu.memory_space<vmem>>, vector<4x8x32xf32>
      tpu.vector_store %arg10[%c0_225, %c0_226, %c0_227], %773 {strides = array<i32>} : memref<4x8x32xf32, #tpu.memory_space<vmem>>, vector<4x8x32xf32>,
      %cst_228 = arith.constant 0.000000e+00 : f32
      %775 = vector.broadcast %cst_228 : f32 to vector<4x8x32xf32>
      %c0_229 = arith.constant 0 : index
      %c0_230 = arith.constant 0 : index
      %c0_231 = arith.constant 0 : index
      %776 = vector.load %arg11[%c0_229, %c0_230, %c0_231] : memref<4x8x32xf32, #tpu.memory_space<vmem>>, vector<4x8x32xf32>
      tpu.vector_store %arg11[%c0_229, %c0_230, %c0_231], %775 {strides = array<i32>} : memref<4x8x32xf32, #tpu.memory_space<vmem>>, vector<4x8x32xf32>,
    } else {
    }
    %c0 = arith.constant 0 : index
    %c0_1 = arith.constant 0 : index
    %c0_2 = arith.constant 0 : index
    %3 = vector.load %arg2[%c0, %c0_1, %c0_2] : memref<8x8x32xf32, #tpu.memory_space<vmem>>, vector<8x8x32xf32>
    %4 = vector.shape_cast %3 : vector<8x8x32xf32> to vector<64x32xf32>
    %5 = arith.truncf %4 : vector<64x32xf32> to vector<64x32xbf16>
    %c0_3 = arith.constant 0 : index
    %c0_4 = arith.constant 0 : index
    %6 = vector.load %arg3[%c0_3, %c0_4] : memref<32x128xbf16, #tpu.memory_space<vmem>>, vector<32x128xbf16>
    %cst = arith.constant dense<0.000000e+00> : vector<64x128xf32>
    %7 = tpu.matmul %5, %6, %cst {dimension_numbers = #tpu.dot_dimension_numbers<[1], [0], [0], [1], [0, 0, 1, 1], [], []>} : vector<64x32xbf16>, vector<32x128xbf16>, vector<64x128xf32> -> vector<64x128xf32>
    %c0_5 = arith.constant 0 : index
    %c0_6 = arith.constant 0 : index
    %c0_7 = arith.constant 0 : index
    %8 = vector.load %arg6[%c0_5, %c0_6, %c0_7] : memref<4x1x128xf32, #tpu.memory_space<vmem>>, vector<1x1x128xf32>
    %9 = vector.shape_cast %8 : vector<1x1x128xf32> to vector<1x128xf32>
    %10 = vector.broadcast %9 : vector<1x128xf32> to vector<64x128xf32>
    %11 = arith.addf %7, %10 : vector<64x128xf32>
    %c0_8 = arith.constant 0 : index
    %c0_9 = arith.constant 0 : index
    %c0_10 = arith.constant 0 : index
    %12 = vector.load %arg5[%c0_8, %c0_9, %c0_10] : memref<4x32x128xbf16, #tpu.memory_space<vmem>>, vector<1x32x128xbf16>
    %13 = vector.shape_cast %12 : vector<1x32x128xbf16> to vector<32x128xbf16>
    %c0_11 = arith.constant 0 : index
    %c0_12 = arith.constant 0 : index
    %c0_13 = arith.constant 0 : index
    %14 = vector.load %arg10[%c0_11, %c0_12, %c0_13] : memref<4x8x32xf32, #tpu.memory_space<vmem>>, vector<1x8x32xf32>
    %15 = vector.shape_cast %14 : vector<1x8x32xf32> to vector<8x32xf32>
    %c0_14 = arith.constant 0 : index
    %c0_15 = arith.constant 0 : index
    %c0_16 = arith.constant 0 : index
    %16 = vector.load %arg11[%c0_14, %c0_15, %c0_16] : memref<4x8x32xf32, #tpu.memory_space<vmem>>, vector<1x8x32xf32>
    %17 = vector.shape_cast %16 : vector<1x8x32xf32> to vector<8x32xf32>
    %18 = vector.extract_strided_slice %11 {offsets = [0, 0], sizes = [8, 128], strides = [1, 1]} : vector<64x128xf32> to vector<8x128xf32>
    %19 = arith.truncf %15 : vector<8x32xf32> to vector<8x32xbf16>
    %cst_17 = arith.constant dense<0.000000e+00> : vector<8x128xf32>
    %20 = tpu.matmul %19, %13, %cst_17 {dimension_numbers = #tpu.dot_dimension_numbers<[1], [0], [0], [1], [0, 0, 1, 1], [], []>} : vector<8x32xbf16>, vector<32x128xbf16>, vector<8x128xf32> -> vector<8x128xf32>
    %21 = arith.addf %18, %20 : vector<8x128xf32>
    %22 = vector.extract_strided_slice %21 {offsets = [0, 0], sizes = [8, 96], strides = [1, 1]} : vector<8x128xf32> to vector<8x96xf32>
    %23 = arith.negf %22 : vector<8x96xf32>
    %24 = math.exp %23 : vector<8x96xf32>
    %cst_18 = arith.constant 1.000000e+00 : f32
    %25 = vector.broadcast %cst_18 : f32 to vector<8x96xf32>
    %26 = arith.addf %25, %24 : vector<8x96xf32>
    %27 = arith.divf %25, %26 : vector<8x96xf32>
    %28 = vector.extract_strided_slice %21 {offsets = [0, 96], sizes = [8, 32], strides = [1, 1]} : vector<8x128xf32> to vector<8x32xf32>
    %29 = math.tanh %28 : vector<8x32xf32>
    %30 = vector.extract_strided_slice %27 {offsets = [0, 0], sizes = [8, 32], strides = [1, 1]} : vector<8x96xf32> to vector<8x32xf32>
    %31 = vector.extract_strided_slice %27 {offsets = [0, 32], sizes = [8, 32], strides = [1, 1]} : vector<8x96xf32> to vector<8x32xf32>
    %32 = vector.extract_strided_slice %27 {offsets = [0, 64], sizes = [8, 32], strides = [1, 1]} : vector<8x96xf32> to vector<8x32xf32>
    %33 = arith.mulf %31, %17 : vector<8x32xf32>
    %34 = arith.mulf %30, %29 : vector<8x32xf32>
    %35 = arith.addf %33, %34 : vector<8x32xf32>
    %36 = math.tanh %35 : vector<8x32xf32>
    %37 = arith.mulf %32, %36 : vector<8x32xf32>
    %c0_19 = arith.constant 0 : index
    %c0_20 = arith.constant 0 : index
    %38 = vector.load %arg12[%c0_19, %c0_20] : memref<64x32xf32, #tpu.memory_space<vmem>>, vector<8x32xf32>
    tpu.vector_store %arg12[%c0_19, %c0_20], %37 {strides = array<i32>} : memref<64x32xf32, #tpu.memory_space<vmem>>, vector<8x32xf32>,
    %39 = vector.extract_strided_slice %11 {offsets = [8, 0], sizes = [8, 128], strides = [1, 1]} : vector<64x128xf32> to vector<8x128xf32>
    %40 = arith.truncf %37 : vector<8x32xf32> to vector<8x32xbf16>
    %cst_21 = arith.constant dense<0.000000e+00> : vector<8x128xf32>
    %41 = tpu.matmul %40, %13, %cst_21 {dimension_numbers = #tpu.dot_dimension_numbers<[1], [0], [0], [1], [0, 0, 1, 1], [], []>} : vector<8x32xbf16>, vector<32x128xbf16>, vector<8x128xf32> -> vector<8x128xf32>
    %42 = arith.addf %39, %41 : vector<8x128xf32>
    %43 = vector.extract_strided_slice %42 {offsets = [0, 0], sizes = [8, 96], strides = [1, 1]} : vector<8x128xf32> to vector<8x96xf32>
    %44 = arith.negf %43 : vector<8x96xf32>
    %45 = math.exp %44 : vector<8x96xf32>
    %cst_22 = arith.constant 1.000000e+00 : f32
    %46 = vector.broadcast %cst_22 : f32 to vector<8x96xf32>
    %47 = arith.addf %46, %45 : vector<8x96xf32>
    %48 = arith.divf %46, %47 : vector<8x96xf32>
    %49 = vector.extract_strided_slice %42 {offsets = [0, 96], sizes = [8, 32], strides = [1, 1]} : vector<8x128xf32> to vector<8x32xf32>
    %50 = math.tanh %49 : vector<8x32xf32>
    %51 = vector.extract_strided_slice %48 {offsets = [0, 0], sizes = [8, 32], strides = [1, 1]} : vector<8x96xf32> to vector<8x32xf32>
    %52 = vector.extract_strided_slice %48 {offsets = [0, 32], sizes = [8, 32], strides = [1, 1]} : vector<8x96xf32> to vector<8x32xf32>
    %53 = vector.extract_strided_slice %48 {offsets = [0, 64], sizes = [8, 32], strides = [1, 1]} : vector<8x96xf32> to vector<8x32xf32>
    %54 = arith.mulf %52, %35 : vector<8x32xf32>
    %55 = arith.mulf %51, %50 : vector<8x32xf32>
    %56 = arith.addf %54, %55 : vector<8x32xf32>
    %57 = math.tanh %56 : vector<8x32xf32>
    %58 = arith.mulf %53, %57 : vector<8x32xf32>
    %c8 = arith.constant 8 : index
    %c0_23 = arith.constant 0 : index
    %59 = vector.load %arg12[%c8, %c0_23] : memref<64x32xf32, #tpu.memory_space<vmem>>, vector<8x32xf32>
    tpu.vector_store %arg12[%c8, %c0_23], %58 {strides = array<i32>} : memref<64x32xf32, #tpu.memory_space<vmem>>, vector<8x32xf32>,
    %60 = vector.extract_strided_slice %11 {offsets = [16, 0], sizes = [8, 128], strides = [1, 1]} : vector<64x128xf32> to vector<8x128xf32>
    %61 = arith.truncf %58 : vector<8x32xf32> to vector<8x32xbf16>
    %cst_24 = arith.constant dense<0.000000e+00> : vector<8x128xf32>
    %62 = tpu.matmul %61, %13, %cst_24 {dimension_numbers = #tpu.dot_dimension_numbers<[1], [0], [0], [1], [0, 0, 1, 1], [], []>} : vector<8x32xbf16>, vector<32x128xbf16>, vector<8x128xf32> -> vector<8x128xf32>
    %63 = arith.addf %60, %62 : vector<8x128xf32>
    %64 = vector.extract_strided_slice %63 {offsets = [0, 0], sizes = [8, 96], strides = [1, 1]} : vector<8x128xf32> to vector<8x96xf32>
    %65 = arith.negf %64 : vector<8x96xf32>
    %66 = math.exp %65 : vector<8x96xf32>
    %cst_25 = arith.constant 1.000000e+00 : f32
    %67 = vector.broadcast %cst_25 : f32 to vector<8x96xf32>
    %68 = arith.addf %67, %66 : vector<8x96xf32>
    %69 = arith.divf %67, %68 : vector<8x96xf32>
    %70 = vector.extract_strided_slice %63 {offsets = [0, 96], sizes = [8, 32], strides = [1, 1]} : vector<8x128xf32> to vector<8x32xf32>
    %71 = math.tanh %70 : vector<8x32xf32>
    %72 = vector.extract_strided_slice %69 {offsets = [0, 0], sizes = [8, 32], strides = [1, 1]} : vector<8x96xf32> to vector<8x32xf32>
    %73 = vector.extract_strided_slice %69 {offsets = [0, 32], sizes = [8, 32], strides = [1, 1]} : vector<8x96xf32> to vector<8x32xf32>
    %74 = vector.extract_strided_slice %69 {offsets = [0, 64], sizes = [8, 32], strides = [1, 1]} : vector<8x96xf32> to vector<8x32xf32>
    %75 = arith.mulf %73, %56 : vector<8x32xf32>
    %76 = arith.mulf %72, %71 : vector<8x32xf32>
    %77 = arith.addf %75, %76 : vector<8x32xf32>
    %78 = math.tanh %77 : vector<8x32xf32>
    %79 = arith.mulf %74, %78 : vector<8x32xf32>
    %c16 = arith.constant 16 : index
    %c0_26 = arith.constant 0 : index
    %80 = vector.load %arg12[%c16, %c0_26] : memref<64x32xf32, #tpu.memory_space<vmem>>, vector<8x32xf32>
    tpu.vector_store %arg12[%c16, %c0_26], %79 {strides = array<i32>} : memref<64x32xf32, #tpu.memory_space<vmem>>, vector<8x32xf32>,
    %81 = vector.extract_strided_slice %11 {offsets = [24, 0], sizes = [8, 128], strides = [1, 1]} : vector<64x128xf32> to vector<8x128xf32>
    %82 = arith.truncf %79 : vector<8x32xf32> to vector<8x32xbf16>
    %cst_27 = arith.constant dense<0.000000e+00> : vector<8x128xf32>
    %83 = tpu.matmul %82, %13, %cst_27 {dimension_numbers = #tpu.dot_dimension_numbers<[1], [0], [0], [1], [0, 0, 1, 1], [], []>} : vector<8x32xbf16>, vector<32x128xbf16>, vector<8x128xf32> -> vector<8x128xf32>
    %84 = arith.addf %81, %83 : vector<8x128xf32>
    %85 = vector.extract_strided_slice %84 {offsets = [0, 0], sizes = [8, 96], strides = [1, 1]} : vector<8x128xf32> to vector<8x96xf32>
    %86 = arith.negf %85 : vector<8x96xf32>
    %87 = math.exp %86 : vector<8x96xf32>
    %cst_28 = arith.constant 1.000000e+00 : f32
    %88 = vector.broadcast %cst_28 : f32 to vector<8x96xf32>
    %89 = arith.addf %88, %87 : vector<8x96xf32>
    %90 = arith.divf %88, %89 : vector<8x96xf32>
    %91 = vector.extract_strided_slice %84 {offsets = [0, 96], sizes = [8, 32], strides = [1, 1]} : vector<8x128xf32> to vector<8x32xf32>
    %92 = math.tanh %91 : vector<8x32xf32>
    %93 = vector.extract_strided_slice %90 {offsets = [0, 0], sizes = [8, 32], strides = [1, 1]} : vector<8x96xf32> to vector<8x32xf32>
    %94 = vector.extract_strided_slice %90 {offsets = [0, 32], sizes = [8, 32], strides = [1, 1]} : vector<8x96xf32> to vector<8x32xf32>
    %95 = vector.extract_strided_slice %90 {offsets = [0, 64], sizes = [8, 32], strides = [1, 1]} : vector<8x96xf32> to vector<8x32xf32>
    %96 = arith.mulf %94, %77 : vector<8x32xf32>
    %97 = arith.mulf %93, %92 : vector<8x32xf32>
    %98 = arith.addf %96, %97 : vector<8x32xf32>
    %99 = math.tanh %98 : vector<8x32xf32>
    %100 = arith.mulf %95, %99 : vector<8x32xf32>
    %c24 = arith.constant 24 : index
    %c0_29 = arith.constant 0 : index
    %101 = vector.load %arg12[%c24, %c0_29] : memref<64x32xf32, #tpu.memory_space<vmem>>, vector<8x32xf32>
    tpu.vector_store %arg12[%c24, %c0_29], %100 {strides = array<i32>} : memref<64x32xf32, #tpu.memory_space<vmem>>, vector<8x32xf32>,
    %102 = vector.extract_strided_slice %11 {offsets = [32, 0], sizes = [8, 128], strides = [1, 1]} : vector<64x128xf32> to vector<8x128xf32>
    %103 = arith.truncf %100 : vector<8x32xf32> to vector<8x32xbf16>
    %cst_30 = arith.constant dense<0.000000e+00> : vector<8x128xf32>
    %104 = tpu.matmul %103, %13, %cst_30 {dimension_numbers = #tpu.dot_dimension_numbers<[1], [0], [0], [1], [0, 0, 1, 1], [], []>} : vector<8x32xbf16>, vector<32x128xbf16>, vector<8x128xf32> -> vector<8x128xf32>
    %105 = arith.addf %102, %104 : vector<8x128xf32>
    %106 = vector.extract_strided_slice %105 {offsets = [0, 0], sizes = [8, 96], strides = [1, 1]} : vector<8x128xf32> to vector<8x96xf32>
    %107 = arith.negf %106 : vector<8x96xf32>
    %108 = math.exp %107 : vector<8x96xf32>
    %cst_31 = arith.constant 1.000000e+00 : f32
    %109 = vector.broadcast %cst_31 : f32 to vector<8x96xf32>
    %110 = arith.addf %109, %108 : vector<8x96xf32>
    %111 = arith.divf %109, %110 : vector<8x96xf32>
    %112 = vector.extract_strided_slice %105 {offsets = [0, 96], sizes = [8, 32], strides = [1, 1]} : vector<8x128xf32> to vector<8x32xf32>
    %113 = math.tanh %112 : vector<8x32xf32>
    %114 = vector.extract_strided_slice %111 {offsets = [0, 0], sizes = [8, 32], strides = [1, 1]} : vector<8x96xf32> to vector<8x32xf32>
    %115 = vector.extract_strided_slice %111 {offsets = [0, 32], sizes = [8, 32], strides = [1, 1]} : vector<8x96xf32> to vector<8x32xf32>
    %116 = vector.extract_strided_slice %111 {offsets = [0, 64], sizes = [8, 32], strides = [1, 1]} : vector<8x96xf32> to vector<8x32xf32>
    %117 = arith.mulf %115, %98 : vector<8x32xf32>
    %118 = arith.mulf %114, %113 : vector<8x32xf32>
    %119 = arith.addf %117, %118 : vector<8x32xf32>
    %120 = math.tanh %119 : vector<8x32xf32>
    %121 = arith.mulf %116, %120 : vector<8x32xf32>
    %c32 = arith.constant 32 : index
    %c0_32 = arith.constant 0 : index
    %122 = vector.load %arg12[%c32, %c0_32] : memref<64x32xf32, #tpu.memory_space<vmem>>, vector<8x32xf32>
    tpu.vector_store %arg12[%c32, %c0_32], %121 {strides = array<i32>} : memref<64x32xf32, #tpu.memory_space<vmem>>, vector<8x32xf32>,
    %123 = vector.extract_strided_slice %11 {offsets = [40, 0], sizes = [8, 128], strides = [1, 1]} : vector<64x128xf32> to vector<8x128xf32>
    %124 = arith.truncf %121 : vector<8x32xf32> to vector<8x32xbf16>
    %cst_33 = arith.constant dense<0.000000e+00> : vector<8x128xf32>
    %125 = tpu.matmul %124, %13, %cst_33 {dimension_numbers = #tpu.dot_dimension_numbers<[1], [0], [0], [1], [0, 0, 1, 1], [], []>} : vector<8x32xbf16>, vector<32x128xbf16>, vector<8x128xf32> -> vector<8x128xf32>
    %126 = arith.addf %123, %125 : vector<8x128xf32>
    %127 = vector.extract_strided_slice %126 {offsets = [0, 0], sizes = [8, 96], strides = [1, 1]} : vector<8x128xf32> to vector<8x96xf32>
    %128 = arith.negf %127 : vector<8x96xf32>
    %129 = math.exp %128 : vector<8x96xf32>
    %cst_34 = arith.constant 1.000000e+00 : f32
    %130 = vector.broadcast %cst_34 : f32 to vector<8x96xf32>
    %131 = arith.addf %130, %129 : vector<8x96xf32>
    %132 = arith.divf %130, %131 : vector<8x96xf32>
    %133 = vector.extract_strided_slice %126 {offsets = [0, 96], sizes = [8, 32], strides = [1, 1]} : vector<8x128xf32> to vector<8x32xf32>
    %134 = math.tanh %133 : vector<8x32xf32>
    %135 = vector.extract_strided_slice %132 {offsets = [0, 0], sizes = [8, 32], strides = [1, 1]} : vector<8x96xf32> to vector<8x32xf32>
    %136 = vector.extract_strided_slice %132 {offsets = [0, 32], sizes = [8, 32], strides = [1, 1]} : vector<8x96xf32> to vector<8x32xf32>
    %137 = vector.extract_strided_slice %132 {offsets = [0, 64], sizes = [8, 32], strides = [1, 1]} : vector<8x96xf32> to vector<8x32xf32>
    %138 = arith.mulf %136, %119 : vector<8x32xf32>
    %139 = arith.mulf %135, %134 : vector<8x32xf32>
    %140 = arith.addf %138, %139 : vector<8x32xf32>
    %141 = math.tanh %140 : vector<8x32xf32>
    %142 = arith.mulf %137, %141 : vector<8x32xf32>
    %c40 = arith.constant 40 : index
    %c0_35 = arith.constant 0 : index
    %143 = vector.load %arg12[%c40, %c0_35] : memref<64x32xf32, #tpu.memory_space<vmem>>, vector<8x32xf32>
    tpu.vector_store %arg12[%c40, %c0_35], %142 {strides = array<i32>} : memref<64x32xf32, #tpu.memory_space<vmem>>, vector<8x32xf32>,
    %144 = vector.extract_strided_slice %11 {offsets = [48, 0], sizes = [8, 128], strides = [1, 1]} : vector<64x128xf32> to vector<8x128xf32>
    %145 = arith.truncf %142 : vector<8x32xf32> to vector<8x32xbf16>
    %cst_36 = arith.constant dense<0.000000e+00> : vector<8x128xf32>
    %146 = tpu.matmul %145, %13, %cst_36 {dimension_numbers = #tpu.dot_dimension_numbers<[1], [0], [0], [1], [0, 0, 1, 1], [], []>} : vector<8x32xbf16>, vector<32x128xbf16>, vector<8x128xf32> -> vector<8x128xf32>
    %147 = arith.addf %144, %146 : vector<8x128xf32>
    %148 = vector.extract_strided_slice %147 {offsets = [0, 0], sizes = [8, 96], strides = [1, 1]} : vector<8x128xf32> to vector<8x96xf32>
    %149 = arith.negf %148 : vector<8x96xf32>
    %150 = math.exp %149 : vector<8x96xf32>
    %cst_37 = arith.constant 1.000000e+00 : f32
    %151 = vector.broadcast %cst_37 : f32 to vector<8x96xf32>
    %152 = arith.addf %151, %150 : vector<8x96xf32>
    %153 = arith.divf %151, %152 : vector<8x96xf32>
    %154 = vector.extract_strided_slice %147 {offsets = [0, 96], sizes = [8, 32], strides = [1, 1]} : vector<8x128xf32> to vector<8x32xf32>
    %155 = math.tanh %154 : vector<8x32xf32>
    %156 = vector.extract_strided_slice %153 {offsets = [0, 0], sizes = [8, 32], strides = [1, 1]} : vector<8x96xf32> to vector<8x32xf32>
    %157 = vector.extract_strided_slice %153 {offsets = [0, 32], sizes = [8, 32], strides = [1, 1]} : vector<8x96xf32> to vector<8x32xf32>
    %158 = vector.extract_strided_slice %153 {offsets = [0, 64], sizes = [8, 32], strides = [1, 1]} : vector<8x96xf32> to vector<8x32xf32>
    %159 = arith.mulf %157, %140 : vector<8x32xf32>
    %160 = arith.mulf %156, %155 : vector<8x32xf32>
    %161 = arith.addf %159, %160 : vector<8x32xf32>
    %162 = math.tanh %161 : vector<8x32xf32>
    %163 = arith.mulf %158, %162 : vector<8x32xf32>
    %c48 = arith.constant 48 : index
    %c0_38 = arith.constant 0 : index
    %164 = vector.load %arg12[%c48, %c0_38] : memref<64x32xf32, #tpu.memory_space<vmem>>, vector<8x32xf32>
    tpu.vector_store %arg12[%c48, %c0_38], %163 {strides = array<i32>} : memref<64x32xf32, #tpu.memory_space<vmem>>, vector<8x32xf32>,
    %165 = vector.extract_strided_slice %11 {offsets = [56, 0], sizes = [8, 128], strides = [1, 1]} : vector<64x128xf32> to vector<8x128xf32>
    %166 = arith.truncf %163 : vector<8x32xf32> to vector<8x32xbf16>
    %cst_39 = arith.constant dense<0.000000e+00> : vector<8x128xf32>
    %167 = tpu.matmul %166, %13, %cst_39 {dimension_numbers = #tpu.dot_dimension_numbers<[1], [0], [0], [1], [0, 0, 1, 1], [], []>} : vector<8x32xbf16>, vector<32x128xbf16>, vector<8x128xf32> -> vector<8x128xf32>
    %168 = arith.addf %165, %167 : vector<8x128xf32>
    %169 = vector.extract_strided_slice %168 {offsets = [0, 0], sizes = [8, 96], strides = [1, 1]} : vector<8x128xf32> to vector<8x96xf32>
    %170 = arith.negf %169 : vector<8x96xf32>
    %171 = math.exp %170 : vector<8x96xf32>
    %cst_40 = arith.constant 1.000000e+00 : f32
    %172 = vector.broadcast %cst_40 : f32 to vector<8x96xf32>
    %173 = arith.addf %172, %171 : vector<8x96xf32>
    %174 = arith.divf %172, %173 : vector<8x96xf32>
    %175 = vector.extract_strided_slice %168 {offsets = [0, 96], sizes = [8, 32], strides = [1, 1]} : vector<8x128xf32> to vector<8x32xf32>
    %176 = math.tanh %175 : vector<8x32xf32>
    %177 = vector.extract_strided_slice %174 {offsets = [0, 0], sizes = [8, 32], strides = [1, 1]} : vector<8x96xf32> to vector<8x32xf32>
    %178 = vector.extract_strided_slice %174 {offsets = [0, 32], sizes = [8, 32], strides = [1, 1]} : vector<8x96xf32> to vector<8x32xf32>
    %179 = vector.extract_strided_slice %174 {offsets = [0, 64], sizes = [8, 32], strides = [1, 1]} : vector<8x96xf32> to vector<8x32xf32>
    %180 = arith.mulf %178, %161 : vector<8x32xf32>
    %181 = arith.mulf %177, %176 : vector<8x32xf32>
    %182 = arith.addf %180, %181 : vector<8x32xf32>
    %183 = math.tanh %182 : vector<8x32xf32>
    %184 = arith.mulf %179, %183 : vector<8x32xf32>
    %c56 = arith.constant 56 : index
    %c0_41 = arith.constant 0 : index
    %185 = vector.load %arg12[%c56, %c0_41] : memref<64x32xf32, #tpu.memory_space<vmem>>, vector<8x32xf32>
    tpu.vector_store %arg12[%c56, %c0_41], %184 {strides = array<i32>} : memref<64x32xf32, #tpu.memory_space<vmem>>, vector<8x32xf32>,
    %c0_42 = arith.constant 0 : index
    %c0_43 = arith.constant 0 : index
    %c0_44 = arith.constant 0 : index
    %186 = vector.load %arg10[%c0_42, %c0_43, %c0_44] : memref<4x8x32xf32, #tpu.memory_space<vmem>>, vector<1x8x32xf32>
    %187 = vector.shape_cast %186 : vector<1x8x32xf32> to vector<8x32xf32>
    %188 = vector.shape_cast %184 : vector<8x32xf32> to vector<1x8x32xf32>
    tpu.vector_store %arg10[%c0_42, %c0_43, %c0_44], %188 {strides = array<i32>} : memref<4x8x32xf32, #tpu.memory_space<vmem>>, vector<1x8x32xf32>,
    %c0_45 = arith.constant 0 : index
    %c0_46 = arith.constant 0 : index
    %c0_47 = arith.constant 0 : index
    %189 = vector.load %arg11[%c0_45, %c0_46, %c0_47] : memref<4x8x32xf32, #tpu.memory_space<vmem>>, vector<1x8x32xf32>
    %190 = vector.shape_cast %189 : vector<1x8x32xf32> to vector<8x32xf32>
    %191 = vector.shape_cast %182 : vector<8x32xf32> to vector<1x8x32xf32>
    tpu.vector_store %arg11[%c0_45, %c0_46, %c0_47], %191 {strides = array<i32>} : memref<4x8x32xf32, #tpu.memory_space<vmem>>, vector<1x8x32xf32>,
    %c0_48 = arith.constant 0 : index
    %c0_49 = arith.constant 0 : index
    %c0_50 = arith.constant 0 : index
    %192 = vector.load %arg4[%c0_48, %c0_49, %c0_50] : memref<3x32x128xbf16, #tpu.memory_space<vmem>>, vector<1x32x128xbf16>
    %193 = vector.shape_cast %192 : vector<1x32x128xbf16> to vector<32x128xbf16>
    %c0_51 = arith.constant 0 : index
    %c0_52 = arith.constant 0 : index
    %194 = vector.load %arg12[%c0_51, %c0_52] : memref<64x32xf32, #tpu.memory_space<vmem>>, vector<64x32xf32>
    %195 = arith.truncf %194 : vector<64x32xf32> to vector<64x32xbf16>
    %cst_53 = arith.constant dense<0.000000e+00> : vector<64x128xf32>
    %196 = tpu.matmul %195, %193, %cst_53 {dimension_numbers = #tpu.dot_dimension_numbers<[1], [0], [0], [1], [0, 0, 1, 1], [], []>} : vector<64x32xbf16>, vector<32x128xbf16>, vector<64x128xf32> -> vector<64x128xf32>
    %c1 = arith.constant 1 : index
    %c0_54 = arith.constant 0 : index
    %c0_55 = arith.constant 0 : index
    %197 = vector.load %arg6[%c1, %c0_54, %c0_55] : memref<4x1x128xf32, #tpu.memory_space<vmem>>, vector<1x1x128xf32>
    %198 = vector.shape_cast %197 : vector<1x1x128xf32> to vector<1x128xf32>
    %199 = vector.broadcast %198 : vector<1x128xf32> to vector<64x128xf32>
    %200 = arith.addf %196, %199 : vector<64x128xf32>
    %c1_56 = arith.constant 1 : index
    %c0_57 = arith.constant 0 : index
    %c0_58 = arith.constant 0 : index
    %201 = vector.load %arg5[%c1_56, %c0_57, %c0_58] : memref<4x32x128xbf16, #tpu.memory_space<vmem>>, vector<1x32x128xbf16>
    %202 = vector.shape_cast %201 : vector<1x32x128xbf16> to vector<32x128xbf16>
    %c1_59 = arith.constant 1 : index
    %c0_60 = arith.constant 0 : index
    %c0_61 = arith.constant 0 : index
    %203 = vector.load %arg10[%c1_59, %c0_60, %c0_61] : memref<4x8x32xf32, #tpu.memory_space<vmem>>, vector<1x8x32xf32>
    %204 = vector.shape_cast %203 : vector<1x8x32xf32> to vector<8x32xf32>
    %c1_62 = arith.constant 1 : index
    %c0_63 = arith.constant 0 : index
    %c0_64 = arith.constant 0 : index
    %205 = vector.load %arg11[%c1_62, %c0_63, %c0_64] : memref<4x8x32xf32, #tpu.memory_space<vmem>>, vector<1x8x32xf32>
    %206 = vector.shape_cast %205 : vector<1x8x32xf32> to vector<8x32xf32>
    %207 = vector.extract_strided_slice %200 {offsets = [0, 0], sizes = [8, 128], strides = [1, 1]} : vector<64x128xf32> to vector<8x128xf32>
    %208 = arith.truncf %204 : vector<8x32xf32> to vector<8x32xbf16>
    %cst_65 = arith.constant dense<0.000000e+00> : vector<8x128xf32>
    %209 = tpu.matmul %208, %202, %cst_65 {dimension_numbers = #tpu.dot_dimension_numbers<[1], [0], [0], [1], [0, 0, 1, 1], [], []>} : vector<8x32xbf16>, vector<32x128xbf16>, vector<8x128xf32> -> vector<8x128xf32>
    %210 = arith.addf %207, %209 : vector<8x128xf32>
    %211 = vector.extract_strided_slice %210 {offsets = [0, 0], sizes = [8, 96], strides = [1, 1]} : vector<8x128xf32> to vector<8x96xf32>
    %212 = arith.negf %211 : vector<8x96xf32>
    %213 = math.exp %212 : vector<8x96xf32>
    %cst_66 = arith.constant 1.000000e+00 : f32
    %214 = vector.broadcast %cst_66 : f32 to vector<8x96xf32>
    %215 = arith.addf %214, %213 : vector<8x96xf32>
    %216 = arith.divf %214, %215 : vector<8x96xf32>
    %217 = vector.extract_strided_slice %210 {offsets = [0, 96], sizes = [8, 32], strides = [1, 1]} : vector<8x128xf32> to vector<8x32xf32>
    %218 = math.tanh %217 : vector<8x32xf32>
    %219 = vector.extract_strided_slice %216 {offsets = [0, 0], sizes = [8, 32], strides = [1, 1]} : vector<8x96xf32> to vector<8x32xf32>
    %220 = vector.extract_strided_slice %216 {offsets = [0, 32], sizes = [8, 32], strides = [1, 1]} : vector<8x96xf32> to vector<8x32xf32>
    %221 = vector.extract_strided_slice %216 {offsets = [0, 64], sizes = [8, 32], strides = [1, 1]} : vector<8x96xf32> to vector<8x32xf32>
    %222 = arith.mulf %220, %206 : vector<8x32xf32>
    %223 = arith.mulf %219, %218 : vector<8x32xf32>
    %224 = arith.addf %222, %223 : vector<8x32xf32>
    %225 = math.tanh %224 : vector<8x32xf32>
    %226 = arith.mulf %221, %225 : vector<8x32xf32>
    %c0_67 = arith.constant 0 : index
    %c0_68 = arith.constant 0 : index
    %227 = vector.load %arg12[%c0_67, %c0_68] : memref<64x32xf32, #tpu.memory_space<vmem>>, vector<8x32xf32>
    tpu.vector_store %arg12[%c0_67, %c0_68], %226 {strides = array<i32>} : memref<64x32xf32, #tpu.memory_space<vmem>>, vector<8x32xf32>,
    %228 = vector.extract_strided_slice %200 {offsets = [8, 0], sizes = [8, 128], strides = [1, 1]} : vector<64x128xf32> to vector<8x128xf32>
    %229 = arith.truncf %226 : vector<8x32xf32> to vector<8x32xbf16>
    %cst_69 = arith.constant dense<0.000000e+00> : vector<8x128xf32>
    %230 = tpu.matmul %229, %202, %cst_69 {dimension_numbers = #tpu.dot_dimension_numbers<[1], [0], [0], [1], [0, 0, 1, 1], [], []>} : vector<8x32xbf16>, vector<32x128xbf16>, vector<8x128xf32> -> vector<8x128xf32>
    %231 = arith.addf %228, %230 : vector<8x128xf32>
    %232 = vector.extract_strided_slice %231 {offsets = [0, 0], sizes = [8, 96], strides = [1, 1]} : vector<8x128xf32> to vector<8x96xf32>
    %233 = arith.negf %232 : vector<8x96xf32>
    %234 = math.exp %233 : vector<8x96xf32>
    %cst_70 = arith.constant 1.000000e+00 : f32
    %235 = vector.broadcast %cst_70 : f32 to vector<8x96xf32>
    %236 = arith.addf %235, %234 : vector<8x96xf32>
    %237 = arith.divf %235, %236 : vector<8x96xf32>
    %238 = vector.extract_strided_slice %231 {offsets = [0, 96], sizes = [8, 32], strides = [1, 1]} : vector<8x128xf32> to vector<8x32xf32>
    %239 = math.tanh %238 : vector<8x32xf32>
    %240 = vector.extract_strided_slice %237 {offsets = [0, 0], sizes = [8, 32], strides = [1, 1]} : vector<8x96xf32> to vector<8x32xf32>
    %241 = vector.extract_strided_slice %237 {offsets = [0, 32], sizes = [8, 32], strides = [1, 1]} : vector<8x96xf32> to vector<8x32xf32>
    %242 = vector.extract_strided_slice %237 {offsets = [0, 64], sizes = [8, 32], strides = [1, 1]} : vector<8x96xf32> to vector<8x32xf32>
    %243 = arith.mulf %241, %224 : vector<8x32xf32>
    %244 = arith.mulf %240, %239 : vector<8x32xf32>
    %245 = arith.addf %243, %244 : vector<8x32xf32>
    %246 = math.tanh %245 : vector<8x32xf32>
    %247 = arith.mulf %242, %246 : vector<8x32xf32>
    %c8_71 = arith.constant 8 : index
    %c0_72 = arith.constant 0 : index
    %248 = vector.load %arg12[%c8_71, %c0_72] : memref<64x32xf32, #tpu.memory_space<vmem>>, vector<8x32xf32>
    tpu.vector_store %arg12[%c8_71, %c0_72], %247 {strides = array<i32>} : memref<64x32xf32, #tpu.memory_space<vmem>>, vector<8x32xf32>,
    %249 = vector.extract_strided_slice %200 {offsets = [16, 0], sizes = [8, 128], strides = [1, 1]} : vector<64x128xf32> to vector<8x128xf32>
    %250 = arith.truncf %247 : vector<8x32xf32> to vector<8x32xbf16>
    %cst_73 = arith.constant dense<0.000000e+00> : vector<8x128xf32>
    %251 = tpu.matmul %250, %202, %cst_73 {dimension_numbers = #tpu.dot_dimension_numbers<[1], [0], [0], [1], [0, 0, 1, 1], [], []>} : vector<8x32xbf16>, vector<32x128xbf16>, vector<8x128xf32> -> vector<8x128xf32>
    %252 = arith.addf %249, %251 : vector<8x128xf32>
    %253 = vector.extract_strided_slice %252 {offsets = [0, 0], sizes = [8, 96], strides = [1, 1]} : vector<8x128xf32> to vector<8x96xf32>
    %254 = arith.negf %253 : vector<8x96xf32>
    %255 = math.exp %254 : vector<8x96xf32>
    %cst_74 = arith.constant 1.000000e+00 : f32
    %256 = vector.broadcast %cst_74 : f32 to vector<8x96xf32>
    %257 = arith.addf %256, %255 : vector<8x96xf32>
    %258 = arith.divf %256, %257 : vector<8x96xf32>
    %259 = vector.extract_strided_slice %252 {offsets = [0, 96], sizes = [8, 32], strides = [1, 1]} : vector<8x128xf32> to vector<8x32xf32>
    %260 = math.tanh %259 : vector<8x32xf32>
    %261 = vector.extract_strided_slice %258 {offsets = [0, 0], sizes = [8, 32], strides = [1, 1]} : vector<8x96xf32> to vector<8x32xf32>
    %262 = vector.extract_strided_slice %258 {offsets = [0, 32], sizes = [8, 32], strides = [1, 1]} : vector<8x96xf32> to vector<8x32xf32>
    %263 = vector.extract_strided_slice %258 {offsets = [0, 64], sizes = [8, 32], strides = [1, 1]} : vector<8x96xf32> to vector<8x32xf32>
    %264 = arith.mulf %262, %245 : vector<8x32xf32>
    %265 = arith.mulf %261, %260 : vector<8x32xf32>
    %266 = arith.addf %264, %265 : vector<8x32xf32>
    %267 = math.tanh %266 : vector<8x32xf32>
    %268 = arith.mulf %263, %267 : vector<8x32xf32>
    %c16_75 = arith.constant 16 : index
    %c0_76 = arith.constant 0 : index
    %269 = vector.load %arg12[%c16_75, %c0_76] : memref<64x32xf32, #tpu.memory_space<vmem>>, vector<8x32xf32>
    tpu.vector_store %arg12[%c16_75, %c0_76], %268 {strides = array<i32>} : memref<64x32xf32, #tpu.memory_space<vmem>>, vector<8x32xf32>,
    %270 = vector.extract_strided_slice %200 {offsets = [24, 0], sizes = [8, 128], strides = [1, 1]} : vector<64x128xf32> to vector<8x128xf32>
    %271 = arith.truncf %268 : vector<8x32xf32> to vector<8x32xbf16>
    %cst_77 = arith.constant dense<0.000000e+00> : vector<8x128xf32>
    %272 = tpu.matmul %271, %202, %cst_77 {dimension_numbers = #tpu.dot_dimension_numbers<[1], [0], [0], [1], [0, 0, 1, 1], [], []>} : vector<8x32xbf16>, vector<32x128xbf16>, vector<8x128xf32> -> vector<8x128xf32>
    %273 = arith.addf %270, %272 : vector<8x128xf32>
    %274 = vector.extract_strided_slice %273 {offsets = [0, 0], sizes = [8, 96], strides = [1, 1]} : vector<8x128xf32> to vector<8x96xf32>
    %275 = arith.negf %274 : vector<8x96xf32>
    %276 = math.exp %275 : vector<8x96xf32>
    %cst_78 = arith.constant 1.000000e+00 : f32
    %277 = vector.broadcast %cst_78 : f32 to vector<8x96xf32>
    %278 = arith.addf %277, %276 : vector<8x96xf32>
    %279 = arith.divf %277, %278 : vector<8x96xf32>
    %280 = vector.extract_strided_slice %273 {offsets = [0, 96], sizes = [8, 32], strides = [1, 1]} : vector<8x128xf32> to vector<8x32xf32>
    %281 = math.tanh %280 : vector<8x32xf32>
    %282 = vector.extract_strided_slice %279 {offsets = [0, 0], sizes = [8, 32], strides = [1, 1]} : vector<8x96xf32> to vector<8x32xf32>
    %283 = vector.extract_strided_slice %279 {offsets = [0, 32], sizes = [8, 32], strides = [1, 1]} : vector<8x96xf32> to vector<8x32xf32>
    %284 = vector.extract_strided_slice %279 {offsets = [0, 64], sizes = [8, 32], strides = [1, 1]} : vector<8x96xf32> to vector<8x32xf32>
    %285 = arith.mulf %283, %266 : vector<8x32xf32>
    %286 = arith.mulf %282, %281 : vector<8x32xf32>
    %287 = arith.addf %285, %286 : vector<8x32xf32>
    %288 = math.tanh %287 : vector<8x32xf32>
    %289 = arith.mulf %284, %288 : vector<8x32xf32>
    %c24_79 = arith.constant 24 : index
    %c0_80 = arith.constant 0 : index
    %290 = vector.load %arg12[%c24_79, %c0_80] : memref<64x32xf32, #tpu.memory_space<vmem>>, vector<8x32xf32>
    tpu.vector_store %arg12[%c24_79, %c0_80], %289 {strides = array<i32>} : memref<64x32xf32, #tpu.memory_space<vmem>>, vector<8x32xf32>,
    %291 = vector.extract_strided_slice %200 {offsets = [32, 0], sizes = [8, 128], strides = [1, 1]} : vector<64x128xf32> to vector<8x128xf32>
    %292 = arith.truncf %289 : vector<8x32xf32> to vector<8x32xbf16>
    %cst_81 = arith.constant dense<0.000000e+00> : vector<8x128xf32>
    %293 = tpu.matmul %292, %202, %cst_81 {dimension_numbers = #tpu.dot_dimension_numbers<[1], [0], [0], [1], [0, 0, 1, 1], [], []>} : vector<8x32xbf16>, vector<32x128xbf16>, vector<8x128xf32> -> vector<8x128xf32>
    %294 = arith.addf %291, %293 : vector<8x128xf32>
    %295 = vector.extract_strided_slice %294 {offsets = [0, 0], sizes = [8, 96], strides = [1, 1]} : vector<8x128xf32> to vector<8x96xf32>
    %296 = arith.negf %295 : vector<8x96xf32>
    %297 = math.exp %296 : vector<8x96xf32>
    %cst_82 = arith.constant 1.000000e+00 : f32
    %298 = vector.broadcast %cst_82 : f32 to vector<8x96xf32>
    %299 = arith.addf %298, %297 : vector<8x96xf32>
    %300 = arith.divf %298, %299 : vector<8x96xf32>
    %301 = vector.extract_strided_slice %294 {offsets = [0, 96], sizes = [8, 32], strides = [1, 1]} : vector<8x128xf32> to vector<8x32xf32>
    %302 = math.tanh %301 : vector<8x32xf32>
    %303 = vector.extract_strided_slice %300 {offsets = [0, 0], sizes = [8, 32], strides = [1, 1]} : vector<8x96xf32> to vector<8x32xf32>
    %304 = vector.extract_strided_slice %300 {offsets = [0, 32], sizes = [8, 32], strides = [1, 1]} : vector<8x96xf32> to vector<8x32xf32>
    %305 = vector.extract_strided_slice %300 {offsets = [0, 64], sizes = [8, 32], strides = [1, 1]} : vector<8x96xf32> to vector<8x32xf32>
    %306 = arith.mulf %304, %287 : vector<8x32xf32>
    %307 = arith.mulf %303, %302 : vector<8x32xf32>
    %308 = arith.addf %306, %307 : vector<8x32xf32>
    %309 = math.tanh %308 : vector<8x32xf32>
    %310 = arith.mulf %305, %309 : vector<8x32xf32>
    %c32_83 = arith.constant 32 : index
    %c0_84 = arith.constant 0 : index
    %311 = vector.load %arg12[%c32_83, %c0_84] : memref<64x32xf32, #tpu.memory_space<vmem>>, vector<8x32xf32>
    tpu.vector_store %arg12[%c32_83, %c0_84], %310 {strides = array<i32>} : memref<64x32xf32, #tpu.memory_space<vmem>>, vector<8x32xf32>,
    %312 = vector.extract_strided_slice %200 {offsets = [40, 0], sizes = [8, 128], strides = [1, 1]} : vector<64x128xf32> to vector<8x128xf32>
    %313 = arith.truncf %310 : vector<8x32xf32> to vector<8x32xbf16>
    %cst_85 = arith.constant dense<0.000000e+00> : vector<8x128xf32>
    %314 = tpu.matmul %313, %202, %cst_85 {dimension_numbers = #tpu.dot_dimension_numbers<[1], [0], [0], [1], [0, 0, 1, 1], [], []>} : vector<8x32xbf16>, vector<32x128xbf16>, vector<8x128xf32> -> vector<8x128xf32>
    %315 = arith.addf %312, %314 : vector<8x128xf32>
    %316 = vector.extract_strided_slice %315 {offsets = [0, 0], sizes = [8, 96], strides = [1, 1]} : vector<8x128xf32> to vector<8x96xf32>
    %317 = arith.negf %316 : vector<8x96xf32>
    %318 = math.exp %317 : vector<8x96xf32>
    %cst_86 = arith.constant 1.000000e+00 : f32
    %319 = vector.broadcast %cst_86 : f32 to vector<8x96xf32>
    %320 = arith.addf %319, %318 : vector<8x96xf32>
    %321 = arith.divf %319, %320 : vector<8x96xf32>
    %322 = vector.extract_strided_slice %315 {offsets = [0, 96], sizes = [8, 32], strides = [1, 1]} : vector<8x128xf32> to vector<8x32xf32>
    %323 = math.tanh %322 : vector<8x32xf32>
    %324 = vector.extract_strided_slice %321 {offsets = [0, 0], sizes = [8, 32], strides = [1, 1]} : vector<8x96xf32> to vector<8x32xf32>
    %325 = vector.extract_strided_slice %321 {offsets = [0, 32], sizes = [8, 32], strides = [1, 1]} : vector<8x96xf32> to vector<8x32xf32>
    %326 = vector.extract_strided_slice %321 {offsets = [0, 64], sizes = [8, 32], strides = [1, 1]} : vector<8x96xf32> to vector<8x32xf32>
    %327 = arith.mulf %325, %308 : vector<8x32xf32>
    %328 = arith.mulf %324, %323 : vector<8x32xf32>
    %329 = arith.addf %327, %328 : vector<8x32xf32>
    %330 = math.tanh %329 : vector<8x32xf32>
    %331 = arith.mulf %326, %330 : vector<8x32xf32>
    %c40_87 = arith.constant 40 : index
    %c0_88 = arith.constant 0 : index
    %332 = vector.load %arg12[%c40_87, %c0_88] : memref<64x32xf32, #tpu.memory_space<vmem>>, vector<8x32xf32>
    tpu.vector_store %arg12[%c40_87, %c0_88], %331 {strides = array<i32>} : memref<64x32xf32, #tpu.memory_space<vmem>>, vector<8x32xf32>,
    %333 = vector.extract_strided_slice %200 {offsets = [48, 0], sizes = [8, 128], strides = [1, 1]} : vector<64x128xf32> to vector<8x128xf32>
    %334 = arith.truncf %331 : vector<8x32xf32> to vector<8x32xbf16>
    %cst_89 = arith.constant dense<0.000000e+00> : vector<8x128xf32>
    %335 = tpu.matmul %334, %202, %cst_89 {dimension_numbers = #tpu.dot_dimension_numbers<[1], [0], [0], [1], [0, 0, 1, 1], [], []>} : vector<8x32xbf16>, vector<32x128xbf16>, vector<8x128xf32> -> vector<8x128xf32>
    %336 = arith.addf %333, %335 : vector<8x128xf32>
    %337 = vector.extract_strided_slice %336 {offsets = [0, 0], sizes = [8, 96], strides = [1, 1]} : vector<8x128xf32> to vector<8x96xf32>
    %338 = arith.negf %337 : vector<8x96xf32>
    %339 = math.exp %338 : vector<8x96xf32>
    %cst_90 = arith.constant 1.000000e+00 : f32
    %340 = vector.broadcast %cst_90 : f32 to vector<8x96xf32>
    %341 = arith.addf %340, %339 : vector<8x96xf32>
    %342 = arith.divf %340, %341 : vector<8x96xf32>
    %343 = vector.extract_strided_slice %336 {offsets = [0, 96], sizes = [8, 32], strides = [1, 1]} : vector<8x128xf32> to vector<8x32xf32>
    %344 = math.tanh %343 : vector<8x32xf32>
    %345 = vector.extract_strided_slice %342 {offsets = [0, 0], sizes = [8, 32], strides = [1, 1]} : vector<8x96xf32> to vector<8x32xf32>
    %346 = vector.extract_strided_slice %342 {offsets = [0, 32], sizes = [8, 32], strides = [1, 1]} : vector<8x96xf32> to vector<8x32xf32>
    %347 = vector.extract_strided_slice %342 {offsets = [0, 64], sizes = [8, 32], strides = [1, 1]} : vector<8x96xf32> to vector<8x32xf32>
    %348 = arith.mulf %346, %329 : vector<8x32xf32>
    %349 = arith.mulf %345, %344 : vector<8x32xf32>
    %350 = arith.addf %348, %349 : vector<8x32xf32>
    %351 = math.tanh %350 : vector<8x32xf32>
    %352 = arith.mulf %347, %351 : vector<8x32xf32>
    %c48_91 = arith.constant 48 : index
    %c0_92 = arith.constant 0 : index
    %353 = vector.load %arg12[%c48_91, %c0_92] : memref<64x32xf32, #tpu.memory_space<vmem>>, vector<8x32xf32>
    tpu.vector_store %arg12[%c48_91, %c0_92], %352 {strides = array<i32>} : memref<64x32xf32, #tpu.memory_space<vmem>>, vector<8x32xf32>,
    %354 = vector.extract_strided_slice %200 {offsets = [56, 0], sizes = [8, 128], strides = [1, 1]} : vector<64x128xf32> to vector<8x128xf32>
    %355 = arith.truncf %352 : vector<8x32xf32> to vector<8x32xbf16>
    %cst_93 = arith.constant dense<0.000000e+00> : vector<8x128xf32>
    %356 = tpu.matmul %355, %202, %cst_93 {dimension_numbers = #tpu.dot_dimension_numbers<[1], [0], [0], [1], [0, 0, 1, 1], [], []>} : vector<8x32xbf16>, vector<32x128xbf16>, vector<8x128xf32> -> vector<8x128xf32>
    %357 = arith.addf %354, %356 : vector<8x128xf32>
    %358 = vector.extract_strided_slice %357 {offsets = [0, 0], sizes = [8, 96], strides = [1, 1]} : vector<8x128xf32> to vector<8x96xf32>
    %359 = arith.negf %358 : vector<8x96xf32>
    %360 = math.exp %359 : vector<8x96xf32>
    %cst_94 = arith.constant 1.000000e+00 : f32
    %361 = vector.broadcast %cst_94 : f32 to vector<8x96xf32>
    %362 = arith.addf %361, %360 : vector<8x96xf32>
    %363 = arith.divf %361, %362 : vector<8x96xf32>
    %364 = vector.extract_strided_slice %357 {offsets = [0, 96], sizes = [8, 32], strides = [1, 1]} : vector<8x128xf32> to vector<8x32xf32>
    %365 = math.tanh %364 : vector<8x32xf32>
    %366 = vector.extract_strided_slice %363 {offsets = [0, 0], sizes = [8, 32], strides = [1, 1]} : vector<8x96xf32> to vector<8x32xf32>
    %367 = vector.extract_strided_slice %363 {offsets = [0, 32], sizes = [8, 32], strides = [1, 1]} : vector<8x96xf32> to vector<8x32xf32>
    %368 = vector.extract_strided_slice %363 {offsets = [0, 64], sizes = [8, 32], strides = [1, 1]} : vector<8x96xf32> to vector<8x32xf32>
    %369 = arith.mulf %367, %350 : vector<8x32xf32>
    %370 = arith.mulf %366, %365 : vector<8x32xf32>
    %371 = arith.addf %369, %370 : vector<8x32xf32>
    %372 = math.tanh %371 : vector<8x32xf32>
    %373 = arith.mulf %368, %372 : vector<8x32xf32>
    %c56_95 = arith.constant 56 : index
    %c0_96 = arith.constant 0 : index
    %374 = vector.load %arg12[%c56_95, %c0_96] : memref<64x32xf32, #tpu.memory_space<vmem>>, vector<8x32xf32>
    tpu.vector_store %arg12[%c56_95, %c0_96], %373 {strides = array<i32>} : memref<64x32xf32, #tpu.memory_space<vmem>>, vector<8x32xf32>,
    %c1_97 = arith.constant 1 : index
    %c0_98 = arith.constant 0 : index
    %c0_99 = arith.constant 0 : index
    %375 = vector.load %arg10[%c1_97, %c0_98, %c0_99] : memref<4x8x32xf32, #tpu.memory_space<vmem>>, vector<1x8x32xf32>
    %376 = vector.shape_cast %375 : vector<1x8x32xf32> to vector<8x32xf32>
    %377 = vector.shape_cast %373 : vector<8x32xf32> to vector<1x8x32xf32>
    tpu.vector_store %arg10[%c1_97, %c0_98, %c0_99], %377 {strides = array<i32>} : memref<4x8x32xf32, #tpu.memory_space<vmem>>, vector<1x8x32xf32>,
    %c1_100 = arith.constant 1 : index
    %c0_101 = arith.constant 0 : index
    %c0_102 = arith.constant 0 : index
    %378 = vector.load %arg11[%c1_100, %c0_101, %c0_102] : memref<4x8x32xf32, #tpu.memory_space<vmem>>, vector<1x8x32xf32>
    %379 = vector.shape_cast %378 : vector<1x8x32xf32> to vector<8x32xf32>
    %380 = vector.shape_cast %371 : vector<8x32xf32> to vector<1x8x32xf32>
    tpu.vector_store %arg11[%c1_100, %c0_101, %c0_102], %380 {strides = array<i32>} : memref<4x8x32xf32, #tpu.memory_space<vmem>>, vector<1x8x32xf32>,
    %c1_103 = arith.constant 1 : index
    %c0_104 = arith.constant 0 : index
    %c0_105 = arith.constant 0 : index
    %381 = vector.load %arg4[%c1_103, %c0_104, %c0_105] : memref<3x32x128xbf16, #tpu.memory_space<vmem>>, vector<1x32x128xbf16>
    %382 = vector.shape_cast %381 : vector<1x32x128xbf16> to vector<32x128xbf16>
    %c0_106 = arith.constant 0 : index
    %c0_107 = arith.constant 0 : index
    %383 = vector.load %arg12[%c0_106, %c0_107] : memref<64x32xf32, #tpu.memory_space<vmem>>, vector<64x32xf32>
    %384 = arith.truncf %383 : vector<64x32xf32> to vector<64x32xbf16>
    %cst_108 = arith.constant dense<0.000000e+00> : vector<64x128xf32>
    %385 = tpu.matmul %384, %382, %cst_108 {dimension_numbers = #tpu.dot_dimension_numbers<[1], [0], [0], [1], [0, 0, 1, 1], [], []>} : vector<64x32xbf16>, vector<32x128xbf16>, vector<64x128xf32> -> vector<64x128xf32>
    %c2 = arith.constant 2 : index
    %c0_109 = arith.constant 0 : index
    %c0_110 = arith.constant 0 : index
    %386 = vector.load %arg6[%c2, %c0_109, %c0_110] : memref<4x1x128xf32, #tpu.memory_space<vmem>>, vector<1x1x128xf32>
    %387 = vector.shape_cast %386 : vector<1x1x128xf32> to vector<1x128xf32>
    %388 = vector.broadcast %387 : vector<1x128xf32> to vector<64x128xf32>
    %389 = arith.addf %385, %388 : vector<64x128xf32>
    %c2_111 = arith.constant 2 : index
    %c0_112 = arith.constant 0 : index
    %c0_113 = arith.constant 0 : index
    %390 = vector.load %arg5[%c2_111, %c0_112, %c0_113] : memref<4x32x128xbf16, #tpu.memory_space<vmem>>, vector<1x32x128xbf16>
    %391 = vector.shape_cast %390 : vector<1x32x128xbf16> to vector<32x128xbf16>
    %c2_114 = arith.constant 2 : index
    %c0_115 = arith.constant 0 : index
    %c0_116 = arith.constant 0 : index
    %392 = vector.load %arg10[%c2_114, %c0_115, %c0_116] : memref<4x8x32xf32, #tpu.memory_space<vmem>>, vector<1x8x32xf32>
    %393 = vector.shape_cast %392 : vector<1x8x32xf32> to vector<8x32xf32>
    %c2_117 = arith.constant 2 : index
    %c0_118 = arith.constant 0 : index
    %c0_119 = arith.constant 0 : index
    %394 = vector.load %arg11[%c2_117, %c0_118, %c0_119] : memref<4x8x32xf32, #tpu.memory_space<vmem>>, vector<1x8x32xf32>
    %395 = vector.shape_cast %394 : vector<1x8x32xf32> to vector<8x32xf32>
    %396 = vector.extract_strided_slice %389 {offsets = [0, 0], sizes = [8, 128], strides = [1, 1]} : vector<64x128xf32> to vector<8x128xf32>
    %397 = arith.truncf %393 : vector<8x32xf32> to vector<8x32xbf16>
    %cst_120 = arith.constant dense<0.000000e+00> : vector<8x128xf32>
    %398 = tpu.matmul %397, %391, %cst_120 {dimension_numbers = #tpu.dot_dimension_numbers<[1], [0], [0], [1], [0, 0, 1, 1], [], []>} : vector<8x32xbf16>, vector<32x128xbf16>, vector<8x128xf32> -> vector<8x128xf32>
    %399 = arith.addf %396, %398 : vector<8x128xf32>
    %400 = vector.extract_strided_slice %399 {offsets = [0, 0], sizes = [8, 96], strides = [1, 1]} : vector<8x128xf32> to vector<8x96xf32>
    %401 = arith.negf %400 : vector<8x96xf32>
    %402 = math.exp %401 : vector<8x96xf32>
    %cst_121 = arith.constant 1.000000e+00 : f32
    %403 = vector.broadcast %cst_121 : f32 to vector<8x96xf32>
    %404 = arith.addf %403, %402 : vector<8x96xf32>
    %405 = arith.divf %403, %404 : vector<8x96xf32>
    %406 = vector.extract_strided_slice %399 {offsets = [0, 96], sizes = [8, 32], strides = [1, 1]} : vector<8x128xf32> to vector<8x32xf32>
    %407 = math.tanh %406 : vector<8x32xf32>
    %408 = vector.extract_strided_slice %405 {offsets = [0, 0], sizes = [8, 32], strides = [1, 1]} : vector<8x96xf32> to vector<8x32xf32>
    %409 = vector.extract_strided_slice %405 {offsets = [0, 32], sizes = [8, 32], strides = [1, 1]} : vector<8x96xf32> to vector<8x32xf32>
    %410 = vector.extract_strided_slice %405 {offsets = [0, 64], sizes = [8, 32], strides = [1, 1]} : vector<8x96xf32> to vector<8x32xf32>
    %411 = arith.mulf %409, %395 : vector<8x32xf32>
    %412 = arith.mulf %408, %407 : vector<8x32xf32>
    %413 = arith.addf %411, %412 : vector<8x32xf32>
    %414 = math.tanh %413 : vector<8x32xf32>
    %415 = arith.mulf %410, %414 : vector<8x32xf32>
    %c0_122 = arith.constant 0 : index
    %c0_123 = arith.constant 0 : index
    %416 = vector.load %arg12[%c0_122, %c0_123] : memref<64x32xf32, #tpu.memory_space<vmem>>, vector<8x32xf32>
    tpu.vector_store %arg12[%c0_122, %c0_123], %415 {strides = array<i32>} : memref<64x32xf32, #tpu.memory_space<vmem>>, vector<8x32xf32>,
    %417 = vector.extract_strided_slice %389 {offsets = [8, 0], sizes = [8, 128], strides = [1, 1]} : vector<64x128xf32> to vector<8x128xf32>
    %418 = arith.truncf %415 : vector<8x32xf32> to vector<8x32xbf16>
    %cst_124 = arith.constant dense<0.000000e+00> : vector<8x128xf32>
    %419 = tpu.matmul %418, %391, %cst_124 {dimension_numbers = #tpu.dot_dimension_numbers<[1], [0], [0], [1], [0, 0, 1, 1], [], []>} : vector<8x32xbf16>, vector<32x128xbf16>, vector<8x128xf32> -> vector<8x128xf32>
    %420 = arith.addf %417, %419 : vector<8x128xf32>
    %421 = vector.extract_strided_slice %420 {offsets = [0, 0], sizes = [8, 96], strides = [1, 1]} : vector<8x128xf32> to vector<8x96xf32>
    %422 = arith.negf %421 : vector<8x96xf32>
    %423 = math.exp %422 : vector<8x96xf32>
    %cst_125 = arith.constant 1.000000e+00 : f32
    %424 = vector.broadcast %cst_125 : f32 to vector<8x96xf32>
    %425 = arith.addf %424, %423 : vector<8x96xf32>
    %426 = arith.divf %424, %425 : vector<8x96xf32>
    %427 = vector.extract_strided_slice %420 {offsets = [0, 96], sizes = [8, 32], strides = [1, 1]} : vector<8x128xf32> to vector<8x32xf32>
    %428 = math.tanh %427 : vector<8x32xf32>
    %429 = vector.extract_strided_slice %426 {offsets = [0, 0], sizes = [8, 32], strides = [1, 1]} : vector<8x96xf32> to vector<8x32xf32>
    %430 = vector.extract_strided_slice %426 {offsets = [0, 32], sizes = [8, 32], strides = [1, 1]} : vector<8x96xf32> to vector<8x32xf32>
    %431 = vector.extract_strided_slice %426 {offsets = [0, 64], sizes = [8, 32], strides = [1, 1]} : vector<8x96xf32> to vector<8x32xf32>
    %432 = arith.mulf %430, %413 : vector<8x32xf32>
    %433 = arith.mulf %429, %428 : vector<8x32xf32>
    %434 = arith.addf %432, %433 : vector<8x32xf32>
    %435 = math.tanh %434 : vector<8x32xf32>
    %436 = arith.mulf %431, %435 : vector<8x32xf32>
    %c8_126 = arith.constant 8 : index
    %c0_127 = arith.constant 0 : index
    %437 = vector.load %arg12[%c8_126, %c0_127] : memref<64x32xf32, #tpu.memory_space<vmem>>, vector<8x32xf32>
    tpu.vector_store %arg12[%c8_126, %c0_127], %436 {strides = array<i32>} : memref<64x32xf32, #tpu.memory_space<vmem>>, vector<8x32xf32>,
    %438 = vector.extract_strided_slice %389 {offsets = [16, 0], sizes = [8, 128], strides = [1, 1]} : vector<64x128xf32> to vector<8x128xf32>
    %439 = arith.truncf %436 : vector<8x32xf32> to vector<8x32xbf16>
    %cst_128 = arith.constant dense<0.000000e+00> : vector<8x128xf32>
    %440 = tpu.matmul %439, %391, %cst_128 {dimension_numbers = #tpu.dot_dimension_numbers<[1], [0], [0], [1], [0, 0, 1, 1], [], []>} : vector<8x32xbf16>, vector<32x128xbf16>, vector<8x128xf32> -> vector<8x128xf32>
    %441 = arith.addf %438, %440 : vector<8x128xf32>
    %442 = vector.extract_strided_slice %441 {offsets = [0, 0], sizes = [8, 96], strides = [1, 1]} : vector<8x128xf32> to vector<8x96xf32>
    %443 = arith.negf %442 : vector<8x96xf32>
    %444 = math.exp %443 : vector<8x96xf32>
    %cst_129 = arith.constant 1.000000e+00 : f32
    %445 = vector.broadcast %cst_129 : f32 to vector<8x96xf32>
    %446 = arith.addf %445, %444 : vector<8x96xf32>
    %447 = arith.divf %445, %446 : vector<8x96xf32>
    %448 = vector.extract_strided_slice %441 {offsets = [0, 96], sizes = [8, 32], strides = [1, 1]} : vector<8x128xf32> to vector<8x32xf32>
    %449 = math.tanh %448 : vector<8x32xf32>
    %450 = vector.extract_strided_slice %447 {offsets = [0, 0], sizes = [8, 32], strides = [1, 1]} : vector<8x96xf32> to vector<8x32xf32>
    %451 = vector.extract_strided_slice %447 {offsets = [0, 32], sizes = [8, 32], strides = [1, 1]} : vector<8x96xf32> to vector<8x32xf32>
    %452 = vector.extract_strided_slice %447 {offsets = [0, 64], sizes = [8, 32], strides = [1, 1]} : vector<8x96xf32> to vector<8x32xf32>
    %453 = arith.mulf %451, %434 : vector<8x32xf32>
    %454 = arith.mulf %450, %449 : vector<8x32xf32>
    %455 = arith.addf %453, %454 : vector<8x32xf32>
    %456 = math.tanh %455 : vector<8x32xf32>
    %457 = arith.mulf %452, %456 : vector<8x32xf32>
    %c16_130 = arith.constant 16 : index
    %c0_131 = arith.constant 0 : index
    %458 = vector.load %arg12[%c16_130, %c0_131] : memref<64x32xf32, #tpu.memory_space<vmem>>, vector<8x32xf32>
    tpu.vector_store %arg12[%c16_130, %c0_131], %457 {strides = array<i32>} : memref<64x32xf32, #tpu.memory_space<vmem>>, vector<8x32xf32>,
    %459 = vector.extract_strided_slice %389 {offsets = [24, 0], sizes = [8, 128], strides = [1, 1]} : vector<64x128xf32> to vector<8x128xf32>
    %460 = arith.truncf %457 : vector<8x32xf32> to vector<8x32xbf16>
    %cst_132 = arith.constant dense<0.000000e+00> : vector<8x128xf32>
    %461 = tpu.matmul %460, %391, %cst_132 {dimension_numbers = #tpu.dot_dimension_numbers<[1], [0], [0], [1], [0, 0, 1, 1], [], []>} : vector<8x32xbf16>, vector<32x128xbf16>, vector<8x128xf32> -> vector<8x128xf32>
    %462 = arith.addf %459, %461 : vector<8x128xf32>
    %463 = vector.extract_strided_slice %462 {offsets = [0, 0], sizes = [8, 96], strides = [1, 1]} : vector<8x128xf32> to vector<8x96xf32>
    %464 = arith.negf %463 : vector<8x96xf32>
    %465 = math.exp %464 : vector<8x96xf32>
    %cst_133 = arith.constant 1.000000e+00 : f32
    %466 = vector.broadcast %cst_133 : f32 to vector<8x96xf32>
    %467 = arith.addf %466, %465 : vector<8x96xf32>
    %468 = arith.divf %466, %467 : vector<8x96xf32>
    %469 = vector.extract_strided_slice %462 {offsets = [0, 96], sizes = [8, 32], strides = [1, 1]} : vector<8x128xf32> to vector<8x32xf32>
    %470 = math.tanh %469 : vector<8x32xf32>
    %471 = vector.extract_strided_slice %468 {offsets = [0, 0], sizes = [8, 32], strides = [1, 1]} : vector<8x96xf32> to vector<8x32xf32>
    %472 = vector.extract_strided_slice %468 {offsets = [0, 32], sizes = [8, 32], strides = [1, 1]} : vector<8x96xf32> to vector<8x32xf32>
    %473 = vector.extract_strided_slice %468 {offsets = [0, 64], sizes = [8, 32], strides = [1, 1]} : vector<8x96xf32> to vector<8x32xf32>
    %474 = arith.mulf %472, %455 : vector<8x32xf32>
    %475 = arith.mulf %471, %470 : vector<8x32xf32>
    %476 = arith.addf %474, %475 : vector<8x32xf32>
    %477 = math.tanh %476 : vector<8x32xf32>
    %478 = arith.mulf %473, %477 : vector<8x32xf32>
    %c24_134 = arith.constant 24 : index
    %c0_135 = arith.constant 0 : index
    %479 = vector.load %arg12[%c24_134, %c0_135] : memref<64x32xf32, #tpu.memory_space<vmem>>, vector<8x32xf32>
    tpu.vector_store %arg12[%c24_134, %c0_135], %478 {strides = array<i32>} : memref<64x32xf32, #tpu.memory_space<vmem>>, vector<8x32xf32>,
    %480 = vector.extract_strided_slice %389 {offsets = [32, 0], sizes = [8, 128], strides = [1, 1]} : vector<64x128xf32> to vector<8x128xf32>
    %481 = arith.truncf %478 : vector<8x32xf32> to vector<8x32xbf16>
    %cst_136 = arith.constant dense<0.000000e+00> : vector<8x128xf32>
    %482 = tpu.matmul %481, %391, %cst_136 {dimension_numbers = #tpu.dot_dimension_numbers<[1], [0], [0], [1], [0, 0, 1, 1], [], []>} : vector<8x32xbf16>, vector<32x128xbf16>, vector<8x128xf32> -> vector<8x128xf32>
    %483 = arith.addf %480, %482 : vector<8x128xf32>
    %484 = vector.extract_strided_slice %483 {offsets = [0, 0], sizes = [8, 96], strides = [1, 1]} : vector<8x128xf32> to vector<8x96xf32>
    %485 = arith.negf %484 : vector<8x96xf32>
    %486 = math.exp %485 : vector<8x96xf32>
    %cst_137 = arith.constant 1.000000e+00 : f32
    %487 = vector.broadcast %cst_137 : f32 to vector<8x96xf32>
    %488 = arith.addf %487, %486 : vector<8x96xf32>
    %489 = arith.divf %487, %488 : vector<8x96xf32>
    %490 = vector.extract_strided_slice %483 {offsets = [0, 96], sizes = [8, 32], strides = [1, 1]} : vector<8x128xf32> to vector<8x32xf32>
    %491 = math.tanh %490 : vector<8x32xf32>
    %492 = vector.extract_strided_slice %489 {offsets = [0, 0], sizes = [8, 32], strides = [1, 1]} : vector<8x96xf32> to vector<8x32xf32>
    %493 = vector.extract_strided_slice %489 {offsets = [0, 32], sizes = [8, 32], strides = [1, 1]} : vector<8x96xf32> to vector<8x32xf32>
    %494 = vector.extract_strided_slice %489 {offsets = [0, 64], sizes = [8, 32], strides = [1, 1]} : vector<8x96xf32> to vector<8x32xf32>
    %495 = arith.mulf %493, %476 : vector<8x32xf32>
    %496 = arith.mulf %492, %491 : vector<8x32xf32>
    %497 = arith.addf %495, %496 : vector<8x32xf32>
    %498 = math.tanh %497 : vector<8x32xf32>
    %499 = arith.mulf %494, %498 : vector<8x32xf32>
    %c32_138 = arith.constant 32 : index
    %c0_139 = arith.constant 0 : index
    %500 = vector.load %arg12[%c32_138, %c0_139] : memref<64x32xf32, #tpu.memory_space<vmem>>, vector<8x32xf32>
    tpu.vector_store %arg12[%c32_138, %c0_139], %499 {strides = array<i32>} : memref<64x32xf32, #tpu.memory_space<vmem>>, vector<8x32xf32>,
    %501 = vector.extract_strided_slice %389 {offsets = [40, 0], sizes = [8, 128], strides = [1, 1]} : vector<64x128xf32> to vector<8x128xf32>
    %502 = arith.truncf %499 : vector<8x32xf32> to vector<8x32xbf16>
    %cst_140 = arith.constant dense<0.000000e+00> : vector<8x128xf32>
    %503 = tpu.matmul %502, %391, %cst_140 {dimension_numbers = #tpu.dot_dimension_numbers<[1], [0], [0], [1], [0, 0, 1, 1], [], []>} : vector<8x32xbf16>, vector<32x128xbf16>, vector<8x128xf32> -> vector<8x128xf32>
    %504 = arith.addf %501, %503 : vector<8x128xf32>
    %505 = vector.extract_strided_slice %504 {offsets = [0, 0], sizes = [8, 96], strides = [1, 1]} : vector<8x128xf32> to vector<8x96xf32>
    %506 = arith.negf %505 : vector<8x96xf32>
    %507 = math.exp %506 : vector<8x96xf32>
    %cst_141 = arith.constant 1.000000e+00 : f32
    %508 = vector.broadcast %cst_141 : f32 to vector<8x96xf32>
    %509 = arith.addf %508, %507 : vector<8x96xf32>
    %510 = arith.divf %508, %509 : vector<8x96xf32>
    %511 = vector.extract_strided_slice %504 {offsets = [0, 96], sizes = [8, 32], strides = [1, 1]} : vector<8x128xf32> to vector<8x32xf32>
    %512 = math.tanh %511 : vector<8x32xf32>
    %513 = vector.extract_strided_slice %510 {offsets = [0, 0], sizes = [8, 32], strides = [1, 1]} : vector<8x96xf32> to vector<8x32xf32>
    %514 = vector.extract_strided_slice %510 {offsets = [0, 32], sizes = [8, 32], strides = [1, 1]} : vector<8x96xf32> to vector<8x32xf32>
    %515 = vector.extract_strided_slice %510 {offsets = [0, 64], sizes = [8, 32], strides = [1, 1]} : vector<8x96xf32> to vector<8x32xf32>
    %516 = arith.mulf %514, %497 : vector<8x32xf32>
    %517 = arith.mulf %513, %512 : vector<8x32xf32>
    %518 = arith.addf %516, %517 : vector<8x32xf32>
    %519 = math.tanh %518 : vector<8x32xf32>
    %520 = arith.mulf %515, %519 : vector<8x32xf32>
    %c40_142 = arith.constant 40 : index
    %c0_143 = arith.constant 0 : index
    %521 = vector.load %arg12[%c40_142, %c0_143] : memref<64x32xf32, #tpu.memory_space<vmem>>, vector<8x32xf32>
    tpu.vector_store %arg12[%c40_142, %c0_143], %520 {strides = array<i32>} : memref<64x32xf32, #tpu.memory_space<vmem>>, vector<8x32xf32>,
    %522 = vector.extract_strided_slice %389 {offsets = [48, 0], sizes = [8, 128], strides = [1, 1]} : vector<64x128xf32> to vector<8x128xf32>
    %523 = arith.truncf %520 : vector<8x32xf32> to vector<8x32xbf16>
    %cst_144 = arith.constant dense<0.000000e+00> : vector<8x128xf32>
    %524 = tpu.matmul %523, %391, %cst_144 {dimension_numbers = #tpu.dot_dimension_numbers<[1], [0], [0], [1], [0, 0, 1, 1], [], []>} : vector<8x32xbf16>, vector<32x128xbf16>, vector<8x128xf32> -> vector<8x128xf32>
    %525 = arith.addf %522, %524 : vector<8x128xf32>
    %526 = vector.extract_strided_slice %525 {offsets = [0, 0], sizes = [8, 96], strides = [1, 1]} : vector<8x128xf32> to vector<8x96xf32>
    %527 = arith.negf %526 : vector<8x96xf32>
    %528 = math.exp %527 : vector<8x96xf32>
    %cst_145 = arith.constant 1.000000e+00 : f32
    %529 = vector.broadcast %cst_145 : f32 to vector<8x96xf32>
    %530 = arith.addf %529, %528 : vector<8x96xf32>
    %531 = arith.divf %529, %530 : vector<8x96xf32>
    %532 = vector.extract_strided_slice %525 {offsets = [0, 96], sizes = [8, 32], strides = [1, 1]} : vector<8x128xf32> to vector<8x32xf32>
    %533 = math.tanh %532 : vector<8x32xf32>
    %534 = vector.extract_strided_slice %531 {offsets = [0, 0], sizes = [8, 32], strides = [1, 1]} : vector<8x96xf32> to vector<8x32xf32>
    %535 = vector.extract_strided_slice %531 {offsets = [0, 32], sizes = [8, 32], strides = [1, 1]} : vector<8x96xf32> to vector<8x32xf32>
    %536 = vector.extract_strided_slice %531 {offsets = [0, 64], sizes = [8, 32], strides = [1, 1]} : vector<8x96xf32> to vector<8x32xf32>
    %537 = arith.mulf %535, %518 : vector<8x32xf32>
    %538 = arith.mulf %534, %533 : vector<8x32xf32>
    %539 = arith.addf %537, %538 : vector<8x32xf32>
    %540 = math.tanh %539 : vector<8x32xf32>
    %541 = arith.mulf %536, %540 : vector<8x32xf32>
    %c48_146 = arith.constant 48 : index
    %c0_147 = arith.constant 0 : index
    %542 = vector.load %arg12[%c48_146, %c0_147] : memref<64x32xf32, #tpu.memory_space<vmem>>, vector<8x32xf32>
    tpu.vector_store %arg12[%c48_146, %c0_147], %541 {strides = array<i32>} : memref<64x32xf32, #tpu.memory_space<vmem>>, vector<8x32xf32>,
    %543 = vector.extract_strided_slice %389 {offsets = [56, 0], sizes = [8, 128], strides = [1, 1]} : vector<64x128xf32> to vector<8x128xf32>
    %544 = arith.truncf %541 : vector<8x32xf32> to vector<8x32xbf16>
    %cst_148 = arith.constant dense<0.000000e+00> : vector<8x128xf32>
    %545 = tpu.matmul %544, %391, %cst_148 {dimension_numbers = #tpu.dot_dimension_numbers<[1], [0], [0], [1], [0, 0, 1, 1], [], []>} : vector<8x32xbf16>, vector<32x128xbf16>, vector<8x128xf32> -> vector<8x128xf32>
    %546 = arith.addf %543, %545 : vector<8x128xf32>
    %547 = vector.extract_strided_slice %546 {offsets = [0, 0], sizes = [8, 96], strides = [1, 1]} : vector<8x128xf32> to vector<8x96xf32>
    %548 = arith.negf %547 : vector<8x96xf32>
    %549 = math.exp %548 : vector<8x96xf32>
    %cst_149 = arith.constant 1.000000e+00 : f32
    %550 = vector.broadcast %cst_149 : f32 to vector<8x96xf32>
    %551 = arith.addf %550, %549 : vector<8x96xf32>
    %552 = arith.divf %550, %551 : vector<8x96xf32>
    %553 = vector.extract_strided_slice %546 {offsets = [0, 96], sizes = [8, 32], strides = [1, 1]} : vector<8x128xf32> to vector<8x32xf32>
    %554 = math.tanh %553 : vector<8x32xf32>
    %555 = vector.extract_strided_slice %552 {offsets = [0, 0], sizes = [8, 32], strides = [1, 1]} : vector<8x96xf32> to vector<8x32xf32>
    %556 = vector.extract_strided_slice %552 {offsets = [0, 32], sizes = [8, 32], strides = [1, 1]} : vector<8x96xf32> to vector<8x32xf32>
    %557 = vector.extract_strided_slice %552 {offsets = [0, 64], sizes = [8, 32], strides = [1, 1]} : vector<8x96xf32> to vector<8x32xf32>
    %558 = arith.mulf %556, %539 : vector<8x32xf32>
    %559 = arith.mulf %555, %554 : vector<8x32xf32>
    %560 = arith.addf %558, %559 : vector<8x32xf32>
    %561 = math.tanh %560 : vector<8x32xf32>
    %562 = arith.mulf %557, %561 : vector<8x32xf32>
    %c56_150 = arith.constant 56 : index
    %c0_151 = arith.constant 0 : index
    %563 = vector.load %arg12[%c56_150, %c0_151] : memref<64x32xf32, #tpu.memory_space<vmem>>, vector<8x32xf32>
    tpu.vector_store %arg12[%c56_150, %c0_151], %562 {strides = array<i32>} : memref<64x32xf32, #tpu.memory_space<vmem>>, vector<8x32xf32>,
    %c2_152 = arith.constant 2 : index
    %c0_153 = arith.constant 0 : index
    %c0_154 = arith.constant 0 : index
    %564 = vector.load %arg10[%c2_152, %c0_153, %c0_154] : memref<4x8x32xf32, #tpu.memory_space<vmem>>, vector<1x8x32xf32>
    %565 = vector.shape_cast %564 : vector<1x8x32xf32> to vector<8x32xf32>
    %566 = vector.shape_cast %562 : vector<8x32xf32> to vector<1x8x32xf32>
    tpu.vector_store %arg10[%c2_152, %c0_153, %c0_154], %566 {strides = array<i32>} : memref<4x8x32xf32, #tpu.memory_space<vmem>>, vector<1x8x32xf32>,
    %c2_155 = arith.constant 2 : index
    %c0_156 = arith.constant 0 : index
    %c0_157 = arith.constant 0 : index
    %567 = vector.load %arg11[%c2_155, %c0_156, %c0_157] : memref<4x8x32xf32, #tpu.memory_space<vmem>>, vector<1x8x32xf32>
    %568 = vector.shape_cast %567 : vector<1x8x32xf32> to vector<8x32xf32>
    %569 = vector.shape_cast %560 : vector<8x32xf32> to vector<1x8x32xf32>
    tpu.vector_store %arg11[%c2_155, %c0_156, %c0_157], %569 {strides = array<i32>} : memref<4x8x32xf32, #tpu.memory_space<vmem>>, vector<1x8x32xf32>,
    %c2_158 = arith.constant 2 : index
    %c0_159 = arith.constant 0 : index
    %c0_160 = arith.constant 0 : index
    %570 = vector.load %arg4[%c2_158, %c0_159, %c0_160] : memref<3x32x128xbf16, #tpu.memory_space<vmem>>, vector<1x32x128xbf16>
    %571 = vector.shape_cast %570 : vector<1x32x128xbf16> to vector<32x128xbf16>
    %c0_161 = arith.constant 0 : index
    %c0_162 = arith.constant 0 : index
    %572 = vector.load %arg12[%c0_161, %c0_162] : memref<64x32xf32, #tpu.memory_space<vmem>>, vector<64x32xf32>
    %573 = arith.truncf %572 : vector<64x32xf32> to vector<64x32xbf16>
    %cst_163 = arith.constant dense<0.000000e+00> : vector<64x128xf32>
    %574 = tpu.matmul %573, %571, %cst_163 {dimension_numbers = #tpu.dot_dimension_numbers<[1], [0], [0], [1], [0, 0, 1, 1], [], []>} : vector<64x32xbf16>, vector<32x128xbf16>, vector<64x128xf32> -> vector<64x128xf32>
    %c3 = arith.constant 3 : index
    %c0_164 = arith.constant 0 : index
    %c0_165 = arith.constant 0 : index
    %575 = vector.load %arg6[%c3, %c0_164, %c0_165] : memref<4x1x128xf32, #tpu.memory_space<vmem>>, vector<1x1x128xf32>
    %576 = vector.shape_cast %575 : vector<1x1x128xf32> to vector<1x128xf32>
    %577 = vector.broadcast %576 : vector<1x128xf32> to vector<64x128xf32>
    %578 = arith.addf %574, %577 : vector<64x128xf32>
    %c3_166 = arith.constant 3 : index
    %c0_167 = arith.constant 0 : index
    %c0_168 = arith.constant 0 : index
    %579 = vector.load %arg5[%c3_166, %c0_167, %c0_168] : memref<4x32x128xbf16, #tpu.memory_space<vmem>>, vector<1x32x128xbf16>
    %580 = vector.shape_cast %579 : vector<1x32x128xbf16> to vector<32x128xbf16>
    %c3_169 = arith.constant 3 : index
    %c0_170 = arith.constant 0 : index
    %c0_171 = arith.constant 0 : index
    %581 = vector.load %arg10[%c3_169, %c0_170, %c0_171] : memref<4x8x32xf32, #tpu.memory_space<vmem>>, vector<1x8x32xf32>
    %582 = vector.shape_cast %581 : vector<1x8x32xf32> to vector<8x32xf32>
    %c3_172 = arith.constant 3 : index
    %c0_173 = arith.constant 0 : index
    %c0_174 = arith.constant 0 : index
    %583 = vector.load %arg11[%c3_172, %c0_173, %c0_174] : memref<4x8x32xf32, #tpu.memory_space<vmem>>, vector<1x8x32xf32>
    %584 = vector.shape_cast %583 : vector<1x8x32xf32> to vector<8x32xf32>
    %585 = vector.extract_strided_slice %578 {offsets = [0, 0], sizes = [8, 128], strides = [1, 1]} : vector<64x128xf32> to vector<8x128xf32>
    %586 = arith.truncf %582 : vector<8x32xf32> to vector<8x32xbf16>
    %cst_175 = arith.constant dense<0.000000e+00> : vector<8x128xf32>
    %587 = tpu.matmul %586, %580, %cst_175 {dimension_numbers = #tpu.dot_dimension_numbers<[1], [0], [0], [1], [0, 0, 1, 1], [], []>} : vector<8x32xbf16>, vector<32x128xbf16>, vector<8x128xf32> -> vector<8x128xf32>
    %588 = arith.addf %585, %587 : vector<8x128xf32>
    %589 = vector.extract_strided_slice %588 {offsets = [0, 0], sizes = [8, 96], strides = [1, 1]} : vector<8x128xf32> to vector<8x96xf32>
    %590 = arith.negf %589 : vector<8x96xf32>
    %591 = math.exp %590 : vector<8x96xf32>
    %cst_176 = arith.constant 1.000000e+00 : f32
    %592 = vector.broadcast %cst_176 : f32 to vector<8x96xf32>
    %593 = arith.addf %592, %591 : vector<8x96xf32>
    %594 = arith.divf %592, %593 : vector<8x96xf32>
    %595 = vector.extract_strided_slice %588 {offsets = [0, 96], sizes = [8, 32], strides = [1, 1]} : vector<8x128xf32> to vector<8x32xf32>
    %596 = math.tanh %595 : vector<8x32xf32>
    %597 = vector.extract_strided_slice %594 {offsets = [0, 0], sizes = [8, 32], strides = [1, 1]} : vector<8x96xf32> to vector<8x32xf32>
    %598 = vector.extract_strided_slice %594 {offsets = [0, 32], sizes = [8, 32], strides = [1, 1]} : vector<8x96xf32> to vector<8x32xf32>
    %599 = vector.extract_strided_slice %594 {offsets = [0, 64], sizes = [8, 32], strides = [1, 1]} : vector<8x96xf32> to vector<8x32xf32>
    %600 = arith.mulf %598, %584 : vector<8x32xf32>
    %601 = arith.mulf %597, %596 : vector<8x32xf32>
    %602 = arith.addf %600, %601 : vector<8x32xf32>
    %603 = math.tanh %602 : vector<8x32xf32>
    %604 = arith.mulf %599, %603 : vector<8x32xf32>
    %c0_177 = arith.constant 0 : index
    %c0_178 = arith.constant 0 : index
    %605 = vector.load %arg12[%c0_177, %c0_178] : memref<64x32xf32, #tpu.memory_space<vmem>>, vector<8x32xf32>
    tpu.vector_store %arg12[%c0_177, %c0_178], %604 {strides = array<i32>} : memref<64x32xf32, #tpu.memory_space<vmem>>, vector<8x32xf32>,
    %606 = vector.extract_strided_slice %578 {offsets = [8, 0], sizes = [8, 128], strides = [1, 1]} : vector<64x128xf32> to vector<8x128xf32>
    %607 = arith.truncf %604 : vector<8x32xf32> to vector<8x32xbf16>
    %cst_179 = arith.constant dense<0.000000e+00> : vector<8x128xf32>
    %608 = tpu.matmul %607, %580, %cst_179 {dimension_numbers = #tpu.dot_dimension_numbers<[1], [0], [0], [1], [0, 0, 1, 1], [], []>} : vector<8x32xbf16>, vector<32x128xbf16>, vector<8x128xf32> -> vector<8x128xf32>
    %609 = arith.addf %606, %608 : vector<8x128xf32>
    %610 = vector.extract_strided_slice %609 {offsets = [0, 0], sizes = [8, 96], strides = [1, 1]} : vector<8x128xf32> to vector<8x96xf32>
    %611 = arith.negf %610 : vector<8x96xf32>
    %612 = math.exp %611 : vector<8x96xf32>
    %cst_180 = arith.constant 1.000000e+00 : f32
    %613 = vector.broadcast %cst_180 : f32 to vector<8x96xf32>
    %614 = arith.addf %613, %612 : vector<8x96xf32>
    %615 = arith.divf %613, %614 : vector<8x96xf32>
    %616 = vector.extract_strided_slice %609 {offsets = [0, 96], sizes = [8, 32], strides = [1, 1]} : vector<8x128xf32> to vector<8x32xf32>
    %617 = math.tanh %616 : vector<8x32xf32>
    %618 = vector.extract_strided_slice %615 {offsets = [0, 0], sizes = [8, 32], strides = [1, 1]} : vector<8x96xf32> to vector<8x32xf32>
    %619 = vector.extract_strided_slice %615 {offsets = [0, 32], sizes = [8, 32], strides = [1, 1]} : vector<8x96xf32> to vector<8x32xf32>
    %620 = vector.extract_strided_slice %615 {offsets = [0, 64], sizes = [8, 32], strides = [1, 1]} : vector<8x96xf32> to vector<8x32xf32>
    %621 = arith.mulf %619, %602 : vector<8x32xf32>
    %622 = arith.mulf %618, %617 : vector<8x32xf32>
    %623 = arith.addf %621, %622 : vector<8x32xf32>
    %624 = math.tanh %623 : vector<8x32xf32>
    %625 = arith.mulf %620, %624 : vector<8x32xf32>
    %c8_181 = arith.constant 8 : index
    %c0_182 = arith.constant 0 : index
    %626 = vector.load %arg12[%c8_181, %c0_182] : memref<64x32xf32, #tpu.memory_space<vmem>>, vector<8x32xf32>
    tpu.vector_store %arg12[%c8_181, %c0_182], %625 {strides = array<i32>} : memref<64x32xf32, #tpu.memory_space<vmem>>, vector<8x32xf32>,
    %627 = vector.extract_strided_slice %578 {offsets = [16, 0], sizes = [8, 128], strides = [1, 1]} : vector<64x128xf32> to vector<8x128xf32>
    %628 = arith.truncf %625 : vector<8x32xf32> to vector<8x32xbf16>
    %cst_183 = arith.constant dense<0.000000e+00> : vector<8x128xf32>
    %629 = tpu.matmul %628, %580, %cst_183 {dimension_numbers = #tpu.dot_dimension_numbers<[1], [0], [0], [1], [0, 0, 1, 1], [], []>} : vector<8x32xbf16>, vector<32x128xbf16>, vector<8x128xf32> -> vector<8x128xf32>
    %630 = arith.addf %627, %629 : vector<8x128xf32>
    %631 = vector.extract_strided_slice %630 {offsets = [0, 0], sizes = [8, 96], strides = [1, 1]} : vector<8x128xf32> to vector<8x96xf32>
    %632 = arith.negf %631 : vector<8x96xf32>
    %633 = math.exp %632 : vector<8x96xf32>
    %cst_184 = arith.constant 1.000000e+00 : f32
    %634 = vector.broadcast %cst_184 : f32 to vector<8x96xf32>
    %635 = arith.addf %634, %633 : vector<8x96xf32>
    %636 = arith.divf %634, %635 : vector<8x96xf32>
    %637 = vector.extract_strided_slice %630 {offsets = [0, 96], sizes = [8, 32], strides = [1, 1]} : vector<8x128xf32> to vector<8x32xf32>
    %638 = math.tanh %637 : vector<8x32xf32>
    %639 = vector.extract_strided_slice %636 {offsets = [0, 0], sizes = [8, 32], strides = [1, 1]} : vector<8x96xf32> to vector<8x32xf32>
    %640 = vector.extract_strided_slice %636 {offsets = [0, 32], sizes = [8, 32], strides = [1, 1]} : vector<8x96xf32> to vector<8x32xf32>
    %641 = vector.extract_strided_slice %636 {offsets = [0, 64], sizes = [8, 32], strides = [1, 1]} : vector<8x96xf32> to vector<8x32xf32>
    %642 = arith.mulf %640, %623 : vector<8x32xf32>
    %643 = arith.mulf %639, %638 : vector<8x32xf32>
    %644 = arith.addf %642, %643 : vector<8x32xf32>
    %645 = math.tanh %644 : vector<8x32xf32>
    %646 = arith.mulf %641, %645 : vector<8x32xf32>
    %c16_185 = arith.constant 16 : index
    %c0_186 = arith.constant 0 : index
    %647 = vector.load %arg12[%c16_185, %c0_186] : memref<64x32xf32, #tpu.memory_space<vmem>>, vector<8x32xf32>
    tpu.vector_store %arg12[%c16_185, %c0_186], %646 {strides = array<i32>} : memref<64x32xf32, #tpu.memory_space<vmem>>, vector<8x32xf32>,
    %648 = vector.extract_strided_slice %578 {offsets = [24, 0], sizes = [8, 128], strides = [1, 1]} : vector<64x128xf32> to vector<8x128xf32>
    %649 = arith.truncf %646 : vector<8x32xf32> to vector<8x32xbf16>
    %cst_187 = arith.constant dense<0.000000e+00> : vector<8x128xf32>
    %650 = tpu.matmul %649, %580, %cst_187 {dimension_numbers = #tpu.dot_dimension_numbers<[1], [0], [0], [1], [0, 0, 1, 1], [], []>} : vector<8x32xbf16>, vector<32x128xbf16>, vector<8x128xf32> -> vector<8x128xf32>
    %651 = arith.addf %648, %650 : vector<8x128xf32>
    %652 = vector.extract_strided_slice %651 {offsets = [0, 0], sizes = [8, 96], strides = [1, 1]} : vector<8x128xf32> to vector<8x96xf32>
    %653 = arith.negf %652 : vector<8x96xf32>
    %654 = math.exp %653 : vector<8x96xf32>
    %cst_188 = arith.constant 1.000000e+00 : f32
    %655 = vector.broadcast %cst_188 : f32 to vector<8x96xf32>
    %656 = arith.addf %655, %654 : vector<8x96xf32>
    %657 = arith.divf %655, %656 : vector<8x96xf32>
    %658 = vector.extract_strided_slice %651 {offsets = [0, 96], sizes = [8, 32], strides = [1, 1]} : vector<8x128xf32> to vector<8x32xf32>
    %659 = math.tanh %658 : vector<8x32xf32>
    %660 = vector.extract_strided_slice %657 {offsets = [0, 0], sizes = [8, 32], strides = [1, 1]} : vector<8x96xf32> to vector<8x32xf32>
    %661 = vector.extract_strided_slice %657 {offsets = [0, 32], sizes = [8, 32], strides = [1, 1]} : vector<8x96xf32> to vector<8x32xf32>
    %662 = vector.extract_strided_slice %657 {offsets = [0, 64], sizes = [8, 32], strides = [1, 1]} : vector<8x96xf32> to vector<8x32xf32>
    %663 = arith.mulf %661, %644 : vector<8x32xf32>
    %664 = arith.mulf %660, %659 : vector<8x32xf32>
    %665 = arith.addf %663, %664 : vector<8x32xf32>
    %666 = math.tanh %665 : vector<8x32xf32>
    %667 = arith.mulf %662, %666 : vector<8x32xf32>
    %c24_189 = arith.constant 24 : index
    %c0_190 = arith.constant 0 : index
    %668 = vector.load %arg12[%c24_189, %c0_190] : memref<64x32xf32, #tpu.memory_space<vmem>>, vector<8x32xf32>
    tpu.vector_store %arg12[%c24_189, %c0_190], %667 {strides = array<i32>} : memref<64x32xf32, #tpu.memory_space<vmem>>, vector<8x32xf32>,
    %669 = vector.extract_strided_slice %578 {offsets = [32, 0], sizes = [8, 128], strides = [1, 1]} : vector<64x128xf32> to vector<8x128xf32>
    %670 = arith.truncf %667 : vector<8x32xf32> to vector<8x32xbf16>
    %cst_191 = arith.constant dense<0.000000e+00> : vector<8x128xf32>
    %671 = tpu.matmul %670, %580, %cst_191 {dimension_numbers = #tpu.dot_dimension_numbers<[1], [0], [0], [1], [0, 0, 1, 1], [], []>} : vector<8x32xbf16>, vector<32x128xbf16>, vector<8x128xf32> -> vector<8x128xf32>
    %672 = arith.addf %669, %671 : vector<8x128xf32>
    %673 = vector.extract_strided_slice %672 {offsets = [0, 0], sizes = [8, 96], strides = [1, 1]} : vector<8x128xf32> to vector<8x96xf32>
    %674 = arith.negf %673 : vector<8x96xf32>
    %675 = math.exp %674 : vector<8x96xf32>
    %cst_192 = arith.constant 1.000000e+00 : f32
    %676 = vector.broadcast %cst_192 : f32 to vector<8x96xf32>
    %677 = arith.addf %676, %675 : vector<8x96xf32>
    %678 = arith.divf %676, %677 : vector<8x96xf32>
    %679 = vector.extract_strided_slice %672 {offsets = [0, 96], sizes = [8, 32], strides = [1, 1]} : vector<8x128xf32> to vector<8x32xf32>
    %680 = math.tanh %679 : vector<8x32xf32>
    %681 = vector.extract_strided_slice %678 {offsets = [0, 0], sizes = [8, 32], strides = [1, 1]} : vector<8x96xf32> to vector<8x32xf32>
    %682 = vector.extract_strided_slice %678 {offsets = [0, 32], sizes = [8, 32], strides = [1, 1]} : vector<8x96xf32> to vector<8x32xf32>
    %683 = vector.extract_strided_slice %678 {offsets = [0, 64], sizes = [8, 32], strides = [1, 1]} : vector<8x96xf32> to vector<8x32xf32>
    %684 = arith.mulf %682, %665 : vector<8x32xf32>
    %685 = arith.mulf %681, %680 : vector<8x32xf32>
    %686 = arith.addf %684, %685 : vector<8x32xf32>
    %687 = math.tanh %686 : vector<8x32xf32>
    %688 = arith.mulf %683, %687 : vector<8x32xf32>
    %c32_193 = arith.constant 32 : index
    %c0_194 = arith.constant 0 : index
    %689 = vector.load %arg12[%c32_193, %c0_194] : memref<64x32xf32, #tpu.memory_space<vmem>>, vector<8x32xf32>
    tpu.vector_store %arg12[%c32_193, %c0_194], %688 {strides = array<i32>} : memref<64x32xf32, #tpu.memory_space<vmem>>, vector<8x32xf32>,
    %690 = vector.extract_strided_slice %578 {offsets = [40, 0], sizes = [8, 128], strides = [1, 1]} : vector<64x128xf32> to vector<8x128xf32>
    %691 = arith.truncf %688 : vector<8x32xf32> to vector<8x32xbf16>
    %cst_195 = arith.constant dense<0.000000e+00> : vector<8x128xf32>
    %692 = tpu.matmul %691, %580, %cst_195 {dimension_numbers = #tpu.dot_dimension_numbers<[1], [0], [0], [1], [0, 0, 1, 1], [], []>} : vector<8x32xbf16>, vector<32x128xbf16>, vector<8x128xf32> -> vector<8x128xf32>
    %693 = arith.addf %690, %692 : vector<8x128xf32>
    %694 = vector.extract_strided_slice %693 {offsets = [0, 0], sizes = [8, 96], strides = [1, 1]} : vector<8x128xf32> to vector<8x96xf32>
    %695 = arith.negf %694 : vector<8x96xf32>
    %696 = math.exp %695 : vector<8x96xf32>
    %cst_196 = arith.constant 1.000000e+00 : f32
    %697 = vector.broadcast %cst_196 : f32 to vector<8x96xf32>
    %698 = arith.addf %697, %696 : vector<8x96xf32>
    %699 = arith.divf %697, %698 : vector<8x96xf32>
    %700 = vector.extract_strided_slice %693 {offsets = [0, 96], sizes = [8, 32], strides = [1, 1]} : vector<8x128xf32> to vector<8x32xf32>
    %701 = math.tanh %700 : vector<8x32xf32>
    %702 = vector.extract_strided_slice %699 {offsets = [0, 0], sizes = [8, 32], strides = [1, 1]} : vector<8x96xf32> to vector<8x32xf32>
    %703 = vector.extract_strided_slice %699 {offsets = [0, 32], sizes = [8, 32], strides = [1, 1]} : vector<8x96xf32> to vector<8x32xf32>
    %704 = vector.extract_strided_slice %699 {offsets = [0, 64], sizes = [8, 32], strides = [1, 1]} : vector<8x96xf32> to vector<8x32xf32>
    %705 = arith.mulf %703, %686 : vector<8x32xf32>
    %706 = arith.mulf %702, %701 : vector<8x32xf32>
    %707 = arith.addf %705, %706 : vector<8x32xf32>
    %708 = math.tanh %707 : vector<8x32xf32>
    %709 = arith.mulf %704, %708 : vector<8x32xf32>
    %c40_197 = arith.constant 40 : index
    %c0_198 = arith.constant 0 : index
    %710 = vector.load %arg12[%c40_197, %c0_198] : memref<64x32xf32, #tpu.memory_space<vmem>>, vector<8x32xf32>
    tpu.vector_store %arg12[%c40_197, %c0_198], %709 {strides = array<i32>} : memref<64x32xf32, #tpu.memory_space<vmem>>, vector<8x32xf32>,
    %711 = vector.extract_strided_slice %578 {offsets = [48, 0], sizes = [8, 128], strides = [1, 1]} : vector<64x128xf32> to vector<8x128xf32>
    %712 = arith.truncf %709 : vector<8x32xf32> to vector<8x32xbf16>
    %cst_199 = arith.constant dense<0.000000e+00> : vector<8x128xf32>
    %713 = tpu.matmul %712, %580, %cst_199 {dimension_numbers = #tpu.dot_dimension_numbers<[1], [0], [0], [1], [0, 0, 1, 1], [], []>} : vector<8x32xbf16>, vector<32x128xbf16>, vector<8x128xf32> -> vector<8x128xf32>
    %714 = arith.addf %711, %713 : vector<8x128xf32>
    %715 = vector.extract_strided_slice %714 {offsets = [0, 0], sizes = [8, 96], strides = [1, 1]} : vector<8x128xf32> to vector<8x96xf32>
    %716 = arith.negf %715 : vector<8x96xf32>
    %717 = math.exp %716 : vector<8x96xf32>
    %cst_200 = arith.constant 1.000000e+00 : f32
    %718 = vector.broadcast %cst_200 : f32 to vector<8x96xf32>
    %719 = arith.addf %718, %717 : vector<8x96xf32>
    %720 = arith.divf %718, %719 : vector<8x96xf32>
    %721 = vector.extract_strided_slice %714 {offsets = [0, 96], sizes = [8, 32], strides = [1, 1]} : vector<8x128xf32> to vector<8x32xf32>
    %722 = math.tanh %721 : vector<8x32xf32>
    %723 = vector.extract_strided_slice %720 {offsets = [0, 0], sizes = [8, 32], strides = [1, 1]} : vector<8x96xf32> to vector<8x32xf32>
    %724 = vector.extract_strided_slice %720 {offsets = [0, 32], sizes = [8, 32], strides = [1, 1]} : vector<8x96xf32> to vector<8x32xf32>
    %725 = vector.extract_strided_slice %720 {offsets = [0, 64], sizes = [8, 32], strides = [1, 1]} : vector<8x96xf32> to vector<8x32xf32>
    %726 = arith.mulf %724, %707 : vector<8x32xf32>
    %727 = arith.mulf %723, %722 : vector<8x32xf32>
    %728 = arith.addf %726, %727 : vector<8x32xf32>
    %729 = math.tanh %728 : vector<8x32xf32>
    %730 = arith.mulf %725, %729 : vector<8x32xf32>
    %c48_201 = arith.constant 48 : index
    %c0_202 = arith.constant 0 : index
    %731 = vector.load %arg12[%c48_201, %c0_202] : memref<64x32xf32, #tpu.memory_space<vmem>>, vector<8x32xf32>
    tpu.vector_store %arg12[%c48_201, %c0_202], %730 {strides = array<i32>} : memref<64x32xf32, #tpu.memory_space<vmem>>, vector<8x32xf32>,
    %732 = vector.extract_strided_slice %578 {offsets = [56, 0], sizes = [8, 128], strides = [1, 1]} : vector<64x128xf32> to vector<8x128xf32>
    %733 = arith.truncf %730 : vector<8x32xf32> to vector<8x32xbf16>
    %cst_203 = arith.constant dense<0.000000e+00> : vector<8x128xf32>
    %734 = tpu.matmul %733, %580, %cst_203 {dimension_numbers = #tpu.dot_dimension_numbers<[1], [0], [0], [1], [0, 0, 1, 1], [], []>} : vector<8x32xbf16>, vector<32x128xbf16>, vector<8x128xf32> -> vector<8x128xf32>
    %735 = arith.addf %732, %734 : vector<8x128xf32>
    %736 = vector.extract_strided_slice %735 {offsets = [0, 0], sizes = [8, 96], strides = [1, 1]} : vector<8x128xf32> to vector<8x96xf32>
    %737 = arith.negf %736 : vector<8x96xf32>
    %738 = math.exp %737 : vector<8x96xf32>
    %cst_204 = arith.constant 1.000000e+00 : f32
    %739 = vector.broadcast %cst_204 : f32 to vector<8x96xf32>
    %740 = arith.addf %739, %738 : vector<8x96xf32>
    %741 = arith.divf %739, %740 : vector<8x96xf32>
    %742 = vector.extract_strided_slice %735 {offsets = [0, 96], sizes = [8, 32], strides = [1, 1]} : vector<8x128xf32> to vector<8x32xf32>
    %743 = math.tanh %742 : vector<8x32xf32>
    %744 = vector.extract_strided_slice %741 {offsets = [0, 0], sizes = [8, 32], strides = [1, 1]} : vector<8x96xf32> to vector<8x32xf32>
    %745 = vector.extract_strided_slice %741 {offsets = [0, 32], sizes = [8, 32], strides = [1, 1]} : vector<8x96xf32> to vector<8x32xf32>
    %746 = vector.extract_strided_slice %741 {offsets = [0, 64], sizes = [8, 32], strides = [1, 1]} : vector<8x96xf32> to vector<8x32xf32>
    %747 = arith.mulf %745, %728 : vector<8x32xf32>
    %748 = arith.mulf %744, %743 : vector<8x32xf32>
    %749 = arith.addf %747, %748 : vector<8x32xf32>
    %750 = math.tanh %749 : vector<8x32xf32>
    %751 = arith.mulf %746, %750 : vector<8x32xf32>
    %c56_205 = arith.constant 56 : index
    %c0_206 = arith.constant 0 : index
    %752 = vector.load %arg12[%c56_205, %c0_206] : memref<64x32xf32, #tpu.memory_space<vmem>>, vector<8x32xf32>
    tpu.vector_store %arg12[%c56_205, %c0_206], %751 {strides = array<i32>} : memref<64x32xf32, #tpu.memory_space<vmem>>, vector<8x32xf32>,
    %c3_207 = arith.constant 3 : index
    %c0_208 = arith.constant 0 : index
    %c0_209 = arith.constant 0 : index
    %753 = vector.load %arg10[%c3_207, %c0_208, %c0_209] : memref<4x8x32xf32, #tpu.memory_space<vmem>>, vector<1x8x32xf32>
    %754 = vector.shape_cast %753 : vector<1x8x32xf32> to vector<8x32xf32>
    %755 = vector.shape_cast %751 : vector<8x32xf32> to vector<1x8x32xf32>
    tpu.vector_store %arg10[%c3_207, %c0_208, %c0_209], %755 {strides = array<i32>} : memref<4x8x32xf32, #tpu.memory_space<vmem>>, vector<1x8x32xf32>,
    %c3_210 = arith.constant 3 : index
    %c0_211 = arith.constant 0 : index
    %c0_212 = arith.constant 0 : index
    %756 = vector.load %arg11[%c3_210, %c0_211, %c0_212] : memref<4x8x32xf32, #tpu.memory_space<vmem>>, vector<1x8x32xf32>
    %757 = vector.shape_cast %756 : vector<1x8x32xf32> to vector<8x32xf32>
    %758 = vector.shape_cast %749 : vector<8x32xf32> to vector<1x8x32xf32>
    tpu.vector_store %arg11[%c3_210, %c0_211, %c0_212], %758 {strides = array<i32>} : memref<4x8x32xf32, #tpu.memory_space<vmem>>, vector<1x8x32xf32>,
    %c0_213 = arith.constant 0 : index
    %c0_214 = arith.constant 0 : index
    %759 = vector.load %arg12[%c0_213, %c0_214] : memref<64x32xf32, #tpu.memory_space<vmem>>, vector<64x32xf32>
    %760 = arith.truncf %759 : vector<64x32xf32> to vector<64x32xbf16>
    %c0_215 = arith.constant 0 : index
    %c0_216 = arith.constant 0 : index
    %761 = vector.load %arg7[%c0_215, %c0_216] : memref<32x128xbf16, #tpu.memory_space<vmem>>, vector<32x128xbf16>
    %cst_217 = arith.constant dense<0.000000e+00> : vector<64x128xf32>
    %762 = tpu.matmul %760, %761, %cst_217 {dimension_numbers = #tpu.dot_dimension_numbers<[1], [0], [0], [1], [0, 0, 1, 1], [], []>} : vector<64x32xbf16>, vector<32x128xbf16>, vector<64x128xf32> -> vector<64x128xf32>
    %c0_218 = arith.constant 0 : index
    %c0_219 = arith.constant 0 : index
    %763 = vector.load %arg8[%c0_218, %c0_219] : memref<1x128xf32, #tpu.memory_space<vmem>>, vector<1x128xf32>
    %764 = vector.broadcast %763 : vector<1x128xf32> to vector<64x128xf32>
    %765 = arith.addf %762, %764 : vector<64x128xf32>
    %766 = arith.negf %765 : vector<64x128xf32>
    %767 = math.exp %766 : vector<64x128xf32>
    %cst_220 = arith.constant 1.000000e+00 : f32
    %768 = vector.broadcast %cst_220 : f32 to vector<64x128xf32>
    %769 = arith.addf %768, %767 : vector<64x128xf32>
    %770 = arith.divf %768, %769 : vector<64x128xf32>
    %771 = vector.shape_cast %770 : vector<64x128xf32> to vector<8x8x128xf32>
    %c0_221 = arith.constant 0 : index
    %c0_222 = arith.constant 0 : index
    %c0_223 = arith.constant 0 : index
    %772 = vector.load %arg9[%c0_221, %c0_222, %c0_223] : memref<8x8x128xf32, #tpu.memory_space<vmem>>, vector<8x8x128xf32>
    tpu.vector_store %arg9[%c0_221, %c0_222, %c0_223], %771 {strides = array<i32>} : memref<8x8x128xf32, #tpu.memory_space<vmem>>, vector<8x8x128xf32>,
    return
  }
  func.func @transform_0(%arg0: i32, %arg1: i32) -> (i32, i32, i32) {
    %c0_i32 = arith.constant 0 : i32
    %c0_i32_0 = arith.constant 0 : i32
    return %arg1, %arg0, %c0_i32 : i32, i32, i32
  }
  func.func @transform_1(%arg0: i32, %arg1: i32) -> (i32, i32) {
    %c0_i32 = arith.constant 0 : i32
    %c0_i32_0 = arith.constant 0 : i32
    %c0_i32_1 = arith.constant 0 : i32
    return %c0_i32, %c0_i32_0 : i32, i32
  }
  func.func @transform_2(%arg0: i32, %arg1: i32) -> (i32, i32, i32) {
    %c0_i32 = arith.constant 0 : i32
    %c0_i32_0 = arith.constant 0 : i32
    %c0_i32_1 = arith.constant 0 : i32
    %c0_i32_2 = arith.constant 0 : i32
    return %c0_i32, %c0_i32_0, %c0_i32_1 : i32, i32, i32
  }
  func.func @transform_3(%arg0: i32, %arg1: i32) -> (i32, i32, i32) {
    %c0_i32 = arith.constant 0 : i32
    %c0_i32_0 = arith.constant 0 : i32
    %c0_i32_1 = arith.constant 0 : i32
    %c0_i32_2 = arith.constant 0 : i32
    return %c0_i32, %c0_i32_0, %c0_i32_1 : i32, i32, i32
  }
  func.func @transform_4(%arg0: i32, %arg1: i32) -> (i32, i32, i32) {
    %c0_i32 = arith.constant 0 : i32
    %c0_i32_0 = arith.constant 0 : i32
    %c0_i32_1 = arith.constant 0 : i32
    %c0_i32_2 = arith.constant 0 : i32
    return %c0_i32, %c0_i32_0, %c0_i32_1 : i32, i32, i32
  }
  func.func @transform_5(%arg0: i32, %arg1: i32) -> (i32, i32) {
    %c0_i32 = arith.constant 0 : i32
    %c0_i32_0 = arith.constant 0 : i32
    %c0_i32_1 = arith.constant 0 : i32
    return %c0_i32, %c0_i32_0 : i32, i32
  }
  func.func @transform_6(%arg0: i32, %arg1: i32) -> (i32, i32) {
    %c0_i32 = arith.constant 0 : i32
    %c0_i32_0 = arith.constant 0 : i32
    %c0_i32_1 = arith.constant 0 : i32
    return %c0_i32, %c0_i32_0 : i32, i32
  }
  func.func @transform_7(%arg0: i32, %arg1: i32) -> (i32, i32, i32) {
    %c0_i32 = arith.constant 0 : i32
    %c0_i32_0 = arith.constant 0 : i32
    return %arg1, %arg0, %c0_i32 : i32, i32, i32
  }
}

</mosaic_0001>

<bundles_post_ra>
// kernel: dkt_c_rasch_forward.1
= control target key start
LH: loop header
LB: loop body
LE: loop exit
PB: predicated region body
PF: predicated region fallthrough
CT: control target
= control target key end

     0   :  { %s4785_s24 = smov 0   ;;  %s4787_s25 = smov 0   ;;  %s5704_s0 = inlined_call_operand.vmem [shape: f32[16,16,32], index: 0, kind: input, shape index: {}]   ;;  %s5705_s1 = inlined_call_operand.vmem [shape: bf16[32,128], index: 1, kind: input, shape index: {}]   ;;  %s5706_s2 = inlined_call_operand.vmem [shape: bf16[3,32,128], index: 2, kind: input, shape index: {}]   ;;  %s5707_s3 = inlined_call_operand.vmem [shape: bf16[4,32,128], index: 3, kind: input, shape index: {}]   ;;  %s5708_s4 = inlined_call_operand.vmem [shape: f32[4,1,128], index: 4, kind: input, shape index: {}]   ;;  %s5709_s5 = inlined_call_operand.vmem [shape: bf16[32,128], index: 5, kind: input, shape index: {}]   ;;  %s5710_s6 = inlined_call_operand.vmem [shape: f32[1,128], index: 6, kind: input, shape index: {}]   ;;  %s5711_s7 = inlined_call_operand.vmem [shape: f32[16,16,128], index: 7, kind: output, shape index: {}]  }
   0x1   :  { %s4789_s26 = smov 0   ;;  %s4791_s27 = smov 0  }
   0x2   :  { %s4793_s28 = smov 0   ;;  %s4795_s29 = smov 0  }
   0x3   :  { %s4797_s30 = smov 0  }
   0x4 LB: > { %s26_s8 = sadd.s32 1, %s4729_s28  ;;  %s29_s9 = sadd.s32 1, %s4733_s29  ;;  %s4737_s30 = sphi %s4797_s30, %s17_s30   ;;  %s4733_s29 = sphi %s4795_s29, %s5718_s29   ;;  %s4729_s28 = sphi %s4793_s28, %s5717_s28   ;;  %s4725_s27 = sphi %s4791_s27, %s5716_s27   ;;  %s4721_s26 = sphi %s4789_s26, %s5715_s26   ;;  %s4717_s25 = sphi %s4787_s25, %s5714_s25   ;;  %s4713_s24 = sphi %s4785_s24, %s5713_s24  }
   0x5   : > { %p27_p0 = scmp.ge.s32.totalorder %s26_s8, 2  ;;  %s3711_s10 = sadd.s32 4294967295, %s4737_s30  }
   0x6   : > { %p45_p1 = scmp.ne.s32.totalorder %s4717_s25, %s4713_s24  ;;  %p46_p2 = scmp.eq.s32.totalorder %s4737_s30, 0 }
   0x7   : > { %s5720_s8 = smov (%p27_p0, %s26_s8), 0  ;;  %s5722_s9 = smov (!%p27_p0, %s29_s9), %s4733_s29 }
   0x8   : > { %p31_p3 = scmp.ge.s32.totalorder %s5722_s9, 2  ;;  %p203_p4 = scmp.eq.s32.totalorder %s3711_s10, 3 }
   0x9   : > { %s33_s11 = ssub.s32 %s4729_s28, %s5720_s8  ;;  %p47_p5 = por %p46_p2, %p45_p1 }
   0xa   : > { %s5724_s9 = smov (%p31_p3, %s5722_s9), 0  ;;  %p4833_p6 = por %p203_p4, %p45_p1 }
   0xb   : > { %s34_s13 = ssub.s32 %s4733_s29, %s5724_s9  ;;  %s38_s15 = sadd.s32 1, %s4717_s25 }
   0xc   : > { %s35_s14 = sor.u32 %s34_s13, %s33_s11  ;;  %p3714_p8 = scmp.ge.s32.totalorder %s4737_s30, 4 }
   0xd   : > { %p36_p7 = scmp.eq.s32.totalorder %s35_s14, 0 }
   0xe   : > { %243 = sbr.rel (%p3714_p8) target bundleno = 29 (0x1d), region = 40 }
   0xf   : > { %s4841_s16 = scalar_select %p36_p7, %s4717_s25, %s38_s15  }
  0x13   : > { %246 = sbr.rel (!%p47_p5) target bundleno = 29 (0x1d), region = 44  ;;  %s248_s17 = sand.u32 (%p47_p5), 1, %s4717_s25  }
  0x14   : > { %s3867_s18 = sshll.u32 (%p47_p5), %s4729_s28, 4  ;;  %s3715_s19 = sshll.u32 (%p47_p5), %s248_s17, 6 }
  0x15   : > { %s253_s20 = sadd.s32 (%p47_p5), %s4733_s29, %s3867_s18  ;;  %s250_s11 = scalar_lea.vmem (%p47_p5), [#allocation5], %s3715_s19 }
  0x16   : > { %s3718_s21 = sshll.u32 (%p47_p5), %s253_s20, 3 }
  0x17   : > { %s255_s10 = scalar_lea.vmem (%p47_p5), %s5704_s0, %s3718_s21 }
  0x18   : > { %v298_v0 = vld [vmem:[%s255_s10] sm:$0xff]  ;;  %v300_v1 = vld [vmem:[%s255_s10 + $0x10] sm:$0xff] }
  0x19   : > { %v302_v2 = vld [vmem:[%s255_s10 + $0x20] sm:$0xff]  ;;  %299 = vst [vmem:[%s250_s11] sm:$0xff] %v298_v0  ;;  %301 = vst [vmem:[%s250_s11 + $0x8] sm:$0xff] %v300_v1  ;;  %v304_v3 = vld [vmem:[%s255_s10 + $0x30] sm:$0xff] }
  0x1a   : > { %303 = vst [vmem:[%s250_s11 + $0x10] sm:$0xff] %v302_v2  ;;  %v306_v4 = vld [vmem:[%s255_s10 + $0x40] sm:$0xff]  ;;  %v308_v5 = vld [vmem:[%s255_s10 + $0x50] sm:$0xff]  ;;  %305 = vst [vmem:[%s250_s11 + $0x18] sm:$0xff] %v304_v3 }
  0x1b   : > { %307 = vst [vmem:[%s250_s11 + $0x20] sm:$0xff] %v306_v4  ;;  %309 = vst [vmem:[%s250_s11 + $0x28] sm:$0xff] %v308_v5  ;;  %v310_v6 = vld [vmem:[%s255_s10 + $0x60] sm:$0xff]  ;;  %v312_v7 = vld [vmem:[%s255_s10 + $0x70] sm:$0xff] }
  0x1c   : > { %311 = vst [vmem:[%s250_s11 + $0x30] sm:$0xff] %v310_v6  ;;  %313 = vst [vmem:[%s250_s11 + $0x38] sm:$0xff] %v312_v7 }
  0x1d PF: > { %p3719_p9 = scmp.ge.s32.totalorder %s4737_s30, 1  ;;  %p318_p10 = scmp.lt.s32.totalorder %s4737_s30, 5 }
  0x1f   : > { %p319_p11 = pnand %p3719_p9, %p318_p10 }
  0x20   : > { %s325_s13 = sand.u32 (!%p319_p11), 1, %s4713_s24   ;;  %p3722_p12 = scmp.ne.s32.totalorder (!%p319_p11), %s4721_s26, 0 }
  0x21   : > { %322 = sbr.rel (%p319_p11) target bundleno = 20378 (0x4f9a), region = 82  ;;  %s3720_s14 = sshll.u32 (!%p319_p11), %s325_s13, 6 }
  0x22   : > { %s4853_s15 = scalar_lea.vmem (!%p319_p11), [#allocation5], %s3720_s14  ;;  %s4855_s17 = scalar_lea.vmem (!%p319_p11), [#allocation6], %s3720_s14 }
  0x26   : > { %361 = sbr.rel (%p3722_p12) target bundleno = 48 (0x30), region = 90 }
  0x2b   : > { %vm362_vm0 = vcmask 261120   ;;  %v4739_v8 = vmov 0.0  }
  0x2c   : > { %363 = vst.msk [vmem:[#allocation2] sm:$0xff] %vm362_vm0, %v4739_v8  ;;  %364 = vst.msk [vmem:[#allocation2 + $0x8] sm:$0xff] %vm362_vm0, %v4739_v8 }
  0x2d   : > { %365 = vst.msk [vmem:[#allocation2 + $0x10] sm:$0xff] %vm362_vm0, %v4739_v8  ;;  %366 = vst.msk [vmem:[#allocation2 + $0x18] sm:$0xff] %vm362_vm0, %v4739_v8 }
  0x2e   : > { %367 = vst.msk [vmem:[#allocation3] sm:$0xff] %vm362_vm0, %v4739_v8  ;;  %368 = vst.msk [vmem:[#allocation3 + $0x8] sm:$0xff] %vm362_vm0, %v4739_v8 }
  0x2f   : > { %369 = vst.msk [vmem:[#allocation3 + $0x10] sm:$0xff] %vm362_vm0, %v4739_v8  ;;  %370 = vst.msk [vmem:[#allocation3 + $0x18] sm:$0xff] %vm362_vm0, %v4739_v8 }
  0x30 PF: > { %v4377_v9 = vld [vmem:[%s5705_s1 + $0x8] sm:$0xff]   ;;  %v4378_v10 = vld [vmem:[%s5705_s1] sm:$0xff]   ;;  %vm406_vm1 = vcmask 261120   ;;  %v373_v16 = vld [vmem:[%s4853_s15 + $0x10] sm:$0xff]  ;;  %v4740_v24 = vmov 0.0   ;;  %vm4741_vm2 = vmmov 0  }
  0x31   : > { %3995 = vmatprep.subr.bf16.mxu0 %v4377_v9  ;;  %4311 = vmatprep.subr.bf16.mxu1 %v4377_v9  ;;  %v371_v11 = vld [vmem:[%s4853_s15] sm:$0xff]  ;;  %v372_v12 = vld [vmem:[%s4853_s15 + $0x8] sm:$0xff]  ;;  %v374_v17 = vld [vmem:[%s4853_s15 + $0x18] sm:$0xff]  ;;  %s4742_s14 = smov 32   ;;  %s4744_s24 = smov 96  }
  0x32   : > { %v375_v13 = vld [vmem:[%s4853_s15 + $0x20] sm:$0xff]  ;;  %3996 = vmatpush3.bf16.msra.mxu0 %v4377_v9  ;;  %4313 = vmatpush3.bf16.msra.mxu1 %v4377_v9  ;;  %v379_v14 = vpack.c.bf16 %v372_v12, %v371_v11  ;;  %v376_v15 = vld [vmem:[%s4853_s15 + $0x28] sm:$0xff]  ;;  %v377_v19 = vld [vmem:[%s4853_s15 + $0x30] sm:$0xff]  ;;  %v380_v21 = vpack.c.bf16 %v374_v17, %v373_v16  ;;  %s3868_s22 = sshll.u32 (%p4833_p6), %s4721_s26, 4 }
  0x33   : > { %3997 = vmatprep.subr.bf16.mxu0 %v4378_v10  ;;  %4312 = vmatprep.subr.bf16.mxu1 %v4378_v10  ;;  %v381_v18 = vpack.c.bf16 %v376_v15, %v375_v13  ;;  %v378_v20 = vld [vmem:[%s4853_s15 + $0x38] sm:$0xff]  ;;  %v4877_v23 = vld [vmem:[%s5707_s3 + $0x8] sm:$0xff]   ;;  %v4884_v25 = vld [vmem:[%s5707_s3] sm:$0xff]   ;;  %s4743_s15 = smov 64   ;;  %s3575_s23 = sadd.s32 (%p4833_p6), %s4725_s27, %s3868_s22 }
  0x34   : > { %3999 = vmatprep.mubr.msk.bf16.mxu0 %vm406_vm1, %v379_v14  ;;  %v382_v22 = vpack.c.bf16 %v378_v20, %v377_v19  ;;  %v488_v26 = vld [vmem:[#allocation2] sm:$0xff]  ;;  %s3864_s12 = sshll.u32 (%p4833_p6), %s3575_s23, 3 }
  0x35   : > { %4003 = vmatprep.mubr.msk.bf16.mxu1 %vm406_vm1, %v381_v18  ;;  %v490_v27 = vpack.c.bf16 %v488_v26, %v488_v26  ;;  %v3723_v28 = vld [vmem:[%s5708_s4] ss:$0 sm:$0xff]  ;;  %s3577_s13 = scalar_lea.vmem (%p4833_p6), %s5711_s7, %s3864_s12 }
  0x36   : > { %3998 = vmatpush3.bf16.msra.mxu0 %v4378_v10  ;;  %4314 = vmatpush3.bf16.msra.mxu1 %v4378_v10  ;;  %v489_v49 = vld [vmem:[#allocation3] sm:$0xff] }
  0x37   : > { %4007 = vmatprep.subr.bf16.mxu1 %v4740_v24  ;;  %4023 = vmatprep.subr.bf16.mxu0 %v4740_v24 }
  0x39   : > { %4000 = vmatmul.mubr.msk.bf16.vlgmr.msra.gmra.mxu0 %vm406_vm1, %v380_v21  ;;  %4004 = vmatmul.mubr.msk.bf16.vlgmr.msra.gmra.mxu1 %vm406_vm1, %v382_v22 }
  0x3a   : > { %4008 = vmatpush3.bf16.msra.mxu1 %v4877_v23  ;;  %4011 = vmatprep.mubr.msk.bf16.mxu1 %vm4741_vm2, %v4740_v24 }
  0x3b   : > { %4009 = vmatprep.subr.bf16.mxu1 %v4740_v24  ;;  %4024 = vmatpush3.bf16.msra.mxu0 %v4877_v23 }
  0x3c   : > { %4025 = vmatprep.subr.bf16.mxu0 %v4740_v24  ;;  %4027 = vmatprep.mubr.msk.bf16.mxu0 %vm4741_vm2, %v4740_v24 }
  0x3e   : > { %4010 = vmatpush3.bf16.msra.mxu1 %v4884_v25 }
  0x3f   : > { %4015 = vmatprep.subr.bf16.mxu1 %v4740_v24  ;;  %4026 = vmatpush3.bf16.msra.mxu0 %v4884_v25 }
  0x40   : > { %4039 = vmatprep.subr.bf16.mxu0 %v4740_v24 }
  0x41   : > { %4012 = vmatmul.mubr.msk.bf16.vlgmr.msra.gmra.mxu1 %vm406_vm1, %v490_v27 }
  0x42   : > { %4016 = vmatpush3.bf16.msra.mxu1 %v4877_v23  ;;  %4019 = vmatprep.mubr.msk.bf16.mxu1 %vm4741_vm2, %v4740_v24 }
  0x43   : > { %4017 = vmatprep.subr.bf16.mxu1 %v4740_v24 }
  0x46   : > { %4018 = vmatpush3.bf16.msra.mxu1 %v4884_v25 }
  0x47   : > { %4031 = vmatprep.subr.bf16.mxu1 %v4740_v24 }
  0xf9   : > { %v4001_v29 = vpop.f32.mrf.mxu0  ;;  %v4005_v30 = vpop.f32.mrf.mxu1 }
  0xfa   : > { %v4910_v31 = vadd.f32 %v4001_v29, %v3723_v28  ;;  %v4912_v32 = vadd.f32 %v4005_v30, %v3723_v28 }
  0xfb   : > { %v453_v33 = vpop.f32.mrf.mxu0  ;;  %v469_v34 = vpop.f32.mrf.mxu1 }
  0xfc   : > { %v4914_v35 = vadd.f32 %v3723_v28, %v469_v34  ;;  %v454_v41 = vadd.f32 %v3723_v28, %v453_v33 }
  0xfd   : > { %v4002_v36 = vpop.f32.mrf.mxu0  ;;  %v4006_v37 = vpop.f32.mrf.mxu1 }
  0xfe   : > { %v4916_v38 = vadd.f32 %v4002_v36, %v3723_v28  ;;  %v4918_v39 = vadd.f32 %v4006_v37, %v3723_v28 }
  0xff   : > { %v472_v40 = vpop.f32.mrf.mxu1  ;;  %v456_v1 = vpop.f32.mrf.mxu0 }
 0x100   : > { %v4920_v42 = vadd.f32 %v3723_v28, %v472_v40  ;;  %v457_v2 = vadd.f32 %v3723_v28, %v456_v1 }
 0x101   : > { %v540_v43 = vpop.f32.mrf.mxu1 }
 0x102   : > { %v546_v44 = vadd.f32 %v540_v43, %v454_v41 }
 0x103   : > { %v4013_v45 = vpop.f32.mrf.mxu1 }
 0x104   : > { %4395 = vtanh.f32 %v546_v44  ;;  %v3733_v50 = vmul.f32 -1.442695, %v546_v44 }
 0x105   : > { %v543_v46 = vpop.f32.mrf.mxu1 }
 0x106   : > { %4397 = vpow2.f32 %v3733_v50 }
 0x107   : > { %v4014_v47 = vpop.f32.mrf.mxu1 }
 0x111   : > { %v4396_v48 = vpop.eup %4395 }
 0x112   : > { %560 = vrot.lane.b32.xlu0 %v4396_v48, %s4742_s14 }
 0x113   : > { %v4398_v51 = vpop.eup %4397 }
 0x114   : > { %v550_v52 = vadd.f32 1.0, %v4398_v51 }
 0x116   : > { %555 = vrot.lane.b32.xlu0 %v489_v49, %s4742_s14  ;;  %4399 = vrcp.f32 %v550_v52 }
 0x123   : > { %v4400_v53 = vpop.eup %4399 }
 0x184   : > { %v561_v54 = vpop.permute.xlu0 %560 }
 0x185   : > { %v563_v55 = vmul.f32 %v4400_v53, %v561_v54 }
 0x187   : > { %565 = vrot.lane.b32.xlu1 %v563_v55, %s4742_s14 }
 0x188   : > { %v556_v56 = vpop.permute.xlu0 %555 }
 0x189   : > { %v558_v57 = vmul.f32 %v4400_v53, %v556_v56 }
 0x1f9   : > { %v566_v58 = vpop.permute.xlu1 %565 }
 0x1fa   : > { %v568_v59 = vadd.f32 %v566_v58, %v558_v57 }
 0x1fc   : > { %4401 = vtanh.f32 %v568_v59 }
 0x209   : > { %v4402_v60 = vpop.eup %4401 }
 0x20a   : > { %571 = vrot.lane.b32.xlu1 %v4402_v60, %s4742_s14 }
 0x27c   : > { %v572_v61 = vpop.permute.xlu1 %571 }
 0x27d   : > { %v4926_v62 = vmul.f32 %v4400_v53, %v572_v61 }
 0x27f   : > { %v580_v63 = vpack.c.bf16 %v4926_v62, %v4926_v62 }
 0x281   : > { %582 = vrot.lane.b32.xlu0 %v580_v63, %s4743_s15 }
 0x2f3   : > { %v583_v0 = vpop.permute.xlu0 %582 }
 0x2f4   : > { %4020 = vmatmul.mubr.msk.bf16.vlgmr.msra.gmra.mxu1 %vm406_vm1, %v583_v0 }
 0x2f5   : > { %4032 = vmatpush3.bf16.msra.mxu1 %v4877_v23  ;;  %4035 = vmatprep.mubr.msk.bf16.mxu1 %vm4741_vm2, %v4740_v24 }
 0x2f6   : > { %4033 = vmatprep.subr.bf16.mxu1 %v4740_v24 }
 0x2f9   : > { %4034 = vmatpush3.bf16.msra.mxu1 %v4884_v25 }
 0x2fa   : > { %4047 = vmatprep.subr.bf16.mxu1 %v4740_v24 }
 0x3b4   : > { %v621_v3 = vpop.f32.mrf.mxu1 }
 0x3b5   : > { %v627_v4 = vadd.f32 %v621_v3, %v457_v2 }
 0x3b6   : > { %v4021_v5 = vpop.f32.mrf.mxu1 }
 0x3b7   : > { %4403 = vtanh.f32 %v627_v4  ;;  %v3735_v9 = vmul.f32 -1.442695, %v627_v4 }
 0x3b8   : > { %v624_v6 = vpop.f32.mrf.mxu1 }
 0x3b9   : > { %4405 = vpow2.f32 %v3735_v9 }
 0x3ba   : > { %v4022_v7 = vpop.f32.mrf.mxu1 }
 0x3c4   : > { %v4404_v8 = vpop.eup %4403 }
 0x3c5   : > { %637 = vrot.lane.b32.xlu1 %v4404_v8, %s4742_s14 }
 0x3c6   : > { %v4406_v10 = vpop.eup %4405 }
 0x3c7   : > { %v631_v11 = vadd.f32 1.0, %v4406_v10 }
 0x3c9   : > { %4407 = vrcp.f32 %v631_v11 }
 0x3d6   : > { %v4408_v12 = vpop.eup %4407 }
 0x3d7   : > { %v635_v15 = vmul.f32 %v4408_v12, %v568_v59 }
 0x437   : > { %v638_v13 = vpop.permute.xlu1 %637 }
 0x438   : > { %v640_v14 = vmul.f32 %v4408_v12, %v638_v13 }
 0x43a   : > { %642 = vrot.lane.b32.xlu0 %v640_v14, %s4742_s14 }
 0x4ac   : > { %v643_v16 = vpop.permute.xlu0 %642 }
 0x4ad   : > { %v645_v17 = vadd.f32 %v643_v16, %v635_v15 }
 0x4af   : > { %4409 = vtanh.f32 %v645_v17 }
 0x4bc   : > { %v4410_v18 = vpop.eup %4409 }
 0x4bd   : > { %648 = vrot.lane.b32.xlu1 %v4410_v18, %s4742_s14 }
 0x52f   : > { %v649_v19 = vpop.permute.xlu1 %648 }
 0x530   : > { %v4941_v20 = vmul.f32 %v4408_v12, %v649_v19 }
 0x532   : > { %v657_v21 = vpack.c.bf16 %v4941_v20, %v4941_v20 }
 0x534   : > { %659 = vrot.lane.b32.xlu0 %v657_v21, %s4743_s15 }
 0x5a6   : > { %v660_v22 = vpop.permute.xlu0 %659 }
 0x5a7   : > { %4028 = vmatmul.mubr.msk.bf16.vlgmr.msra.gmra.mxu0 %vm406_vm1, %v660_v22 }
 0x5a8   : > { %4040 = vmatpush3.bf16.msra.mxu0 %v4877_v23  ;;  %4043 = vmatprep.mubr.msk.bf16.mxu0 %vm4741_vm2, %v4740_v24 }
 0x5a9   : > { %4041 = vmatprep.subr.bf16.mxu0 %v4740_v24 }
 0x5ac   : > { %4042 = vmatpush3.bf16.msra.mxu0 %v4884_v25 }
 0x5ad   : > { %4055 = vmatprep.subr.bf16.mxu0 %v4740_v24 }
 0x667   : > { %v698_v26 = vpop.f32.mrf.mxu0 }
 0x668   : > { %v704_v27 = vadd.f32 %v698_v26, %v4910_v31 }
 0x669   : > { %v4029_v28 = vpop.f32.mrf.mxu0 }
 0x66a   : > { %4411 = vtanh.f32 %v704_v27  ;;  %v3737_v34 = vmul.f32 -1.442695, %v704_v27 }
 0x66b   : > { %v701_v29 = vpop.f32.mrf.mxu0 }
 0x66c   : > { %4413 = vpow2.f32 %v3737_v34 }
 0x66d   : > { %v4030_v30 = vpop.f32.mrf.mxu0 }
 0x677   : > { %v4412_v33 = vpop.eup %4411 }
 0x678   : > { %714 = vrot.lane.b32.xlu1 %v4412_v33, %s4742_s14 }
 0x679   : > { %v4414_v36 = vpop.eup %4413 }
 0x67a   : > { %v708_v37 = vadd.f32 1.0, %v4414_v36 }
 0x67c   : > { %4415 = vrcp.f32 %v708_v37 }
 0x689   : > { %v4416_v40 = vpop.eup %4415 }
 0x68a   : > { %v712_v44 = vmul.f32 %v4416_v40, %v645_v17 }
 0x6ea   : > { %v715_v41 = vpop.permute.xlu1 %714 }
 0x6eb   : > { %v717_v43 = vmul.f32 %v4416_v40, %v715_v41 }
 0x6ed   : > { %719 = vrot.lane.b32.xlu0 %v717_v43, %s4742_s14 }
 0x75f   : > { %v720_v45 = vpop.permute.xlu0 %719 }
 0x760   : > { %v722_v31 = vadd.f32 %v720_v45, %v712_v44 }
 0x762   : > { %4417 = vtanh.f32 %v722_v31 }
 0x76f   : > { %v4418_v46 = vpop.eup %4417 }
 0x770   : > { %725 = vrot.lane.b32.xlu1 %v4418_v46, %s4742_s14 }
 0x7e2   : > { %v726_v47 = vpop.permute.xlu1 %725 }
 0x7e3   : > { %v4957_v48 = vmul.f32 %v4416_v40, %v726_v47 }
 0x7e5   : > { %v734_v49 = vpack.c.bf16 %v4957_v48, %v4957_v48 }
 0x7e7   : > { %736 = vrot.lane.b32.xlu0 %v734_v49, %s4743_s15 }
 0x859   : > { %v737_v50 = vpop.permute.xlu0 %736 }
 0x85a   : > { %4036 = vmatmul.mubr.msk.bf16.vlgmr.msra.gmra.mxu1 %vm406_vm1, %v737_v50 }
 0x85b   : > { %4048 = vmatpush3.bf16.msra.mxu1 %v4877_v23  ;;  %4051 = vmatprep.mubr.msk.bf16.mxu1 %vm4741_vm2, %v4740_v24 }
 0x85c   : > { %4049 = vmatprep.subr.bf16.mxu1 %v4740_v24 }
 0x85f   : > { %4050 = vmatpush3.bf16.msra.mxu1 %v4884_v25 }
 0x860   : > { %4063 = vmatprep.subr.bf16.mxu1 %v4740_v24 }
 0x91a   : > { %v775_v51 = vpop.f32.mrf.mxu1 }
 0x91b   : > { %v781_v52 = vadd.f32 %v775_v51, %v4916_v38 }
 0x91c   : > { %v4037_v53 = vpop.f32.mrf.mxu1 }
 0x91d   : > { %4419 = vtanh.f32 %v781_v52  ;;  %v3739_v57 = vmul.f32 -1.442695, %v781_v52 }
 0x91e   : > { %v778_v54 = vpop.f32.mrf.mxu1 }
 0x91f   : > { %4421 = vpow2.f32 %v3739_v57 }
 0x920   : > { %v4038_v55 = vpop.f32.mrf.mxu1 }
 0x92a   : > { %v4420_v56 = vpop.eup %4419 }
 0x92b   : > { %791 = vrot.lane.b32.xlu1 %v4420_v56, %s4742_s14 }
 0x92c   : > { %v4422_v58 = vpop.eup %4421 }
 0x92d   : > { %v785_v59 = vadd.f32 1.0, %v4422_v58 }
 0x92f   : > { %4423 = vrcp.f32 %v785_v59 }
 0x93c   : > { %v4424_v60 = vpop.eup %4423 }
 0x93d   : > { %v789_v0 = vmul.f32 %v4424_v60, %v722_v31 }
 0x99d   : > { %v792_v61 = vpop.permute.xlu1 %791 }
 0x99e   : > { %v794_v63 = vmul.f32 %v4424_v60, %v792_v61 }
 0x9a0   : > { %796 = vrot.lane.b32.xlu0 %v794_v63, %s4742_s14 }
 0xa12   : > { %v797_v1 = vpop.permute.xlu0 %796 }
 0xa13   : > { %v799_v38 = vadd.f32 %v797_v1, %v789_v0 }
 0xa15   : > { %4425 = vtanh.f32 %v799_v38 }
 0xa22   : > { %v4426_v2 = vpop.eup %4425 }
 0xa23   : > { %802 = vrot.lane.b32.xlu1 %v4426_v2, %s4742_s14 }
 0xa95   : > { %v803_v3 = vpop.permute.xlu1 %802 }
 0xa96   : > { %v4973_v4 = vmul.f32 %v4424_v60, %v803_v3 }
 0xa98   : > { %v811_v5 = vpack.c.bf16 %v4973_v4, %v4973_v4 }
 0xa9a   : > { %813 = vrot.lane.b32.xlu0 %v811_v5, %s4743_s15 }
 0xb0c   : > { %v814_v6 = vpop.permute.xlu0 %813 }
 0xb0d   : > { %4044 = vmatmul.mubr.msk.bf16.vlgmr.msra.gmra.mxu0 %vm406_vm1, %v814_v6  ;;  %v4381_v6 = vld [vmem:[%s5706_s2 + $0x8] sm:$0xff]  }
 0xb0e   : > { %4056 = vmatpush3.bf16.msra.mxu0 %v4877_v23  ;;  %4059 = vmatprep.mubr.msk.bf16.mxu0 %vm4741_vm2, %v4740_v24 }
 0xb0f   : > { %4057 = vmatprep.subr.bf16.mxu0 %v4740_v24 }
 0xb12   : > { %4058 = vmatpush3.bf16.msra.mxu0 %v4884_v25 }
 0xb13   : > { %4071 = vmatprep.subr.bf16.mxu0 %v4381_v6 }
 0xbcd   : > { %v852_v7 = vpop.f32.mrf.mxu0 }
 0xbce   : > { %v858_v8 = vadd.f32 %v852_v7, %v4914_v35 }
 0xbcf   : > { %v4045_v9 = vpop.f32.mrf.mxu0 }
 0xbd0   : > { %4427 = vtanh.f32 %v858_v8  ;;  %v3741_v13 = vmul.f32 -1.442695, %v858_v8 }
 0xbd1   : > { %v855_v10 = vpop.f32.mrf.mxu0 }
 0xbd2   : > { %4429 = vpow2.f32 %v3741_v13 }
 0xbd3   : > { %v4046_v11 = vpop.f32.mrf.mxu0 }
 0xbdd   : > { %v4428_v12 = vpop.eup %4427 }
 0xbde   : > { %868 = vrot.lane.b32.xlu1 %v4428_v12, %s4742_s14 }
 0xbdf   : > { %v4430_v14 = vpop.eup %4429 }
 0xbe0   : > { %v862_v15 = vadd.f32 1.0, %v4430_v14 }
 0xbe2   : > { %4431 = vrcp.f32 %v862_v15 }
 0xbef   : > { %v4432_v16 = vpop.eup %4431 }
 0xbf0   : > { %v866_v19 = vmul.f32 %v4432_v16, %v799_v38 }
 0xc50   : > { %v869_v17 = vpop.permute.xlu1 %868 }
 0xc51   : > { %v871_v18 = vmul.f32 %v4432_v16, %v869_v17  ;;  %v5053_v17 = vld [vmem:[%s5707_s3 + $0x10] sm:$0xff]  }
 0xc53   : > { %873 = vrot.lane.b32.xlu0 %v871_v18, %s4742_s14  ;;  %v1246_v18 = vld [vmem:[#allocation3 + $0x8] sm:$0xff] }
 0xcc5   : > { %v874_v21 = vpop.permute.xlu0 %873 }
 0xcc6   : > { %v876_v35 = vadd.f32 %v874_v21, %v866_v19  ;;  %v1244_v21 = vld [vmem:[#allocation2 + $0x8] sm:$0xff] }
 0xcc8   : > { %4433 = vtanh.f32 %v876_v35 }
 0xcd5   : > { %v4434_v22 = vpop.eup %4433 }
 0xcd6   : > { %879 = vrot.lane.b32.xlu1 %v4434_v22, %s4742_s14 }
 0xd48   : > { %v880_v26 = vpop.permute.xlu1 %879 }
 0xd49   : > { %v4988_v27 = vmul.f32 %v4432_v16, %v880_v26  ;;  %v5045_v16 = vld [vmem:[%s5707_s3 + $0x18] sm:$0xff]  }
 0xd4b   : > { %v888_v28 = vpack.c.bf16 %v4988_v27, %v4988_v27 }
 0xd4d   : > { %890 = vrot.lane.b32.xlu0 %v888_v28, %s4743_s15 }
 0xdbf   : > { %v891_v29 = vpop.permute.xlu0 %890 }
 0xdc0   : > { %4052 = vmatmul.mubr.msk.bf16.vlgmr.msra.gmra.mxu1 %vm406_vm1, %v891_v29 }
 0xdc1   : > { %4064 = vmatpush3.bf16.msra.mxu1 %v4877_v23  ;;  %4067 = vmatprep.mubr.msk.bf16.mxu1 %vm4741_vm2, %v4740_v24 }
 0xdc2   : > { %4065 = vmatprep.subr.bf16.mxu1 %v4740_v24 }
 0xdc5   : > { %4066 = vmatpush3.bf16.msra.mxu1 %v4884_v25 }
 0xdc6   : > { %4083 = vmatprep.subr.bf16.mxu1 %v4740_v24 }
 0xe80   : > { %v929_v30 = vpop.f32.mrf.mxu1 }
 0xe81   : > { %v935_v33 = vadd.f32 %v929_v30, %v4920_v42 }
 0xe82   : > { %v4053_v34 = vpop.f32.mrf.mxu1 }
 0xe83   : > { %4435 = vtanh.f32 %v935_v33  ;;  %v3743_v23 = vmul.f32 -1.442695, %v935_v33  ;;  %v5078_v34 = vld [vmem:[%s5708_s4 + $0x1] ss:$0 sm:$0xff] }
 0xe84   : > { %v932_v36 = vpop.f32.mrf.mxu1 }
 0xe85   : > { %4437 = vpow2.f32 %v3743_v23 }
 0xe86   : > { %v4054_v37 = vpop.f32.mrf.mxu1 }
 0xe90   : > { %v4436_v40 = vpop.eup %4435 }
 0xe91   : > { %945 = vrot.lane.b32.xlu1 %v4436_v40, %s4742_s14 }
 0xe92   : > { %v4438_v41 = vpop.eup %4437 }
 0xe93   : > { %v939_v43 = vadd.f32 1.0, %v4438_v41 }
 0xe95   : > { %4439 = vrcp.f32 %v939_v43 }
 0xea2   : > { %v4440_v44 = vpop.eup %4439 }
 0xea3   : > { %v943_v31 = vmul.f32 %v4440_v44, %v876_v35  ;;  %v1247_v35 = vpack.c.bf16 %v1244_v21, %v1244_v21 }
 0xf03   : > { %v946_v45 = vpop.permute.xlu1 %945 }
 0xf04   : > { %v948_v25 = vmul.f32 %v4440_v44, %v946_v45 }
 0xf06   : > { %950 = vrot.lane.b32.xlu0 %v948_v25, %s4742_s14 }
 0xf78   : > { %v951_v46 = vpop.permute.xlu0 %950 }
 0xf79   : > { %v953_v42 = vadd.f32 %v951_v46, %v943_v31 }
 0xf7b   : > { %4441 = vtanh.f32 %v953_v42 }
 0xf88   : > { %v4442_v47 = vpop.eup %4441 }
 0xf89   : > { %956 = vrot.lane.b32.xlu1 %v4442_v47, %s4742_s14 }
 0xffb   : > { %v957_v49 = vpop.permute.xlu1 %956 }
 0xffc   : > { %v5004_v50 = vmul.f32 %v4440_v44, %v957_v49 }
 0xffe   : > { %v965_v51 = vpack.c.bf16 %v5004_v50, %v5004_v50 }
0x1000   : > { %967 = vrot.lane.b32.xlu0 %v965_v51, %s4743_s15 }
0x1072   : > { %v968_v52 = vpop.permute.xlu0 %967 }
0x1073   : > { %4060 = vmatmul.mubr.msk.bf16.vlgmr.msra.gmra.mxu0 %vm406_vm1, %v968_v52 }
0x1074   : > { %4072 = vmatpush3.bf16.msra.mxu0 %v4381_v6 }
0x1133   : > { %v1006_v53 = vpop.f32.mrf.mxu0 }
0x1134   : > { %v1012_v54 = vadd.f32 %v1006_v53, %v4912_v32 }
0x1135   : > { %v4061_v55 = vpop.f32.mrf.mxu0 }
0x1136   : > { %4443 = vtanh.f32 %v1012_v54  ;;  %v3745_v59 = vmul.f32 -1.442695, %v1012_v54 }
0x1137   : > { %v1009_v56 = vpop.f32.mrf.mxu0 }
0x1138   : > { %4445 = vpow2.f32 %v3745_v59 }
0x1139   : > { %v4062_v57 = vpop.f32.mrf.mxu0 }
0x1143   : > { %v4444_v58 = vpop.eup %4443 }
0x1144   : > { %1022 = vrot.lane.b32.xlu1 %v4444_v58, %s4742_s14 }
0x1145   : > { %v4446_v60 = vpop.eup %4445 }
0x1146   : > { %v1016_v61 = vadd.f32 1.0, %v4446_v60 }
0x1148   : > { %4447 = vrcp.f32 %v1016_v61 }
0x1155   : > { %v4448_v63 = vpop.eup %4447 }
0x1156   : > { %v1020_v32 = vmul.f32 %v4448_v63, %v953_v42 }
0x11b6   : > { %v1023_v0 = vpop.permute.xlu1 %1022 }
0x11b7   : > { %v1025_v1 = vmul.f32 %v4448_v63, %v1023_v0 }
0x11b9   : > { %1027 = vrot.lane.b32.xlu0 %v1025_v1, %s4742_s14 }
0x11bd   : > { %576 = vrot.lane.b32.xlu0 %v4926_v62, %s4743_s15  ;;  %v4382_v62 = vld [vmem:[%s5706_s2] sm:$0xff]  }
0x11be   : > { %4073 = vmatprep.subr.bf16.mxu0 %v4382_v62 }
0x11bf   : > { %4074 = vmatpush3.bf16.msra.mxu0 %v4382_v62 }
0x11c0   : > { %4099 = vmatprep.subr.bf16.mxu0 %v4740_v24 }
0x11c1   : > { %730 = vrot.lane.b32.xlu0 %v4957_v48, %s4743_s15 }
0x122b   : > { %v1028_v38 = vpop.permute.xlu0 %1027 }
0x122c   : > { %v5017_v2 = vadd.f32 %v1028_v38, %v1020_v32 }
0x122e   : > { %4449 = vtanh.f32 %v5017_v2 }
0x122f   : > { %v577_v3 = vpop.permute.xlu0 %576 }
0x1230   : > { %579 = vst.msk [vmem:[#allocation4] sm:$0xff] %vm406_vm1, %v577_v3 }
0x1233   : > { %v731_v5 = vpop.permute.xlu0 %730 }
0x1234   : > { %733 = vst.msk [vmem:[#allocation4 + $0x10] sm:$0xff] %vm406_vm1, %v731_v5 }
0x1237   : > { %v1129_v12 = vld [vmem:[#allocation4] sm:$0xff] }
0x123b   : > { %v4450_v48 = vpop.eup %4449 }
0x123c   : > { %1033 = vrot.lane.b32.xlu1 %v4450_v48, %s4742_s14 }
0x1240   : > { %653 = vrot.lane.b32.xlu1 %v4941_v20, %s4743_s15 }
0x1244   : > { %807 = vrot.lane.b32.xlu1 %v4973_v4, %s4743_s15  ;;  %v1131_v4 = vld [vmem:[#allocation4 + $0x10] sm:$0xff] }
0x12ae   : > { %v1034_v7 = vpop.permute.xlu1 %1033 }
0x12af   : > { %v5034_v8 = vmul.f32 %v4448_v63, %v1034_v7 }
0x12b1   : > { %v1042_v9 = vpack.c.bf16 %v5034_v8, %v5034_v8 }
0x12b2   : > { %v654_v10 = vpop.permute.xlu1 %653 }
0x12b3   : > { %656 = vst.msk [vmem:[#allocation4 + $0x8] sm:$0xff] %vm406_vm1, %v654_v10  ;;  %1044 = vrot.lane.b32.xlu0 %v1042_v9, %s4743_s15 }
0x12b6   : > { %v808_v11 = vpop.permute.xlu1 %807 }
0x12b7   : > { %810 = vst.msk [vmem:[#allocation4 + $0x18] sm:$0xff] %vm406_vm1, %v808_v11  ;;  %1312 = vrot.lane.b32.xlu0 %v1246_v18, %s4742_s14 }
0x12ba   : > { %v1130_v13 = vld [vmem:[#allocation4 + $0x8] sm:$0xff] }
0x12bb   : > { %v1137_v20 = vpack.c.bf16 %v1130_v13, %v1129_v12 }
0x12bd   : > { %4075 = vmatprep.mubr.msk.bf16.mxu0 %vm406_vm1, %v1137_v20 }
0x12be   : > { %v1132_v14 = vld [vmem:[#allocation4 + $0x18] sm:$0xff] }
0x12bf   : > { %v1138_v15 = vpack.c.bf16 %v1132_v14, %v1131_v4 }
0x12c1   : > { %4076 = vmatmul.mubr.msk.bf16.vlgmr.msra.gmra.mxu0 %vm406_vm1, %v1138_v15 }
0x12c2   : > { %4100 = vmatpush3.bf16.msra.mxu0 %v5045_v16 }
0x12c3   : > { %4101 = vmatprep.subr.bf16.mxu0 %v4740_v24 }
0x12c6   : > { %4102 = vmatpush3.bf16.msra.mxu0 %v5053_v17 }
0x12c7   : > { %4115 = vmatprep.subr.bf16.mxu0 %v4740_v24 }
0x1325   : > { %v1045_v19 = vpop.permute.xlu0 %1044 }
0x1326   : > { %4068 = vmatmul.mubr.msk.bf16.vlgmr.msra.gmra.mxu1 %vm406_vm1, %v1045_v19 }
0x1327   : > { %4084 = vmatpush3.bf16.msra.mxu1 %v5045_v16  ;;  %4087 = vmatprep.mubr.msk.bf16.mxu1 %vm4741_vm2, %v4740_v24 }
0x1328   : > { %4085 = vmatprep.subr.bf16.mxu1 %v4740_v24 }
0x1329   : > { %v1313_v49 = vpop.permute.xlu0 %1312 }
0x132b   : > { %4086 = vmatpush3.bf16.msra.mxu1 %v5053_v17 }
0x132c   : > { %4091 = vmatprep.subr.bf16.mxu1 %v4740_v24 }
0x132e   : > { %4088 = vmatmul.mubr.msk.bf16.vlgmr.msra.gmra.mxu1 %vm406_vm1, %v1247_v35 }
0x132f   : > { %4092 = vmatpush3.bf16.msra.mxu1 %v5045_v16  ;;  %4095 = vmatprep.mubr.msk.bf16.mxu1 %vm4741_vm2, %v4740_v24 }
0x1330   : > { %4093 = vmatprep.subr.bf16.mxu1 %v4740_v24 }
0x1333   : > { %4094 = vmatpush3.bf16.msra.mxu1 %v5053_v17 }
0x1334   : > { %4107 = vmatprep.subr.bf16.mxu1 %v4740_v24 }
0x1381   : > { %v5072_v22 = vpop.f32.mrf.mxu0 }
0x1383   : > { %v1207_v30 = vpop.f32.mrf.mxu0 }
0x1384   : > { %v1208_v37 = vadd.f32 %v5078_v34, %v1207_v30 }
0x1385   : > { %v5109_v7 = vpop.f32.mrf.mxu0 }
0x1387   : > { %v1210_v9 = vpop.f32.mrf.mxu0 }
0x1388   : > { %v1211_v10 = vadd.f32 %v5078_v34, %v1210_v9 }
0x13e6   : > { %v1083_v26 = vpop.f32.mrf.mxu1 }
0x13e7   : > { %v1089_v28 = vadd.f32 %v1083_v26, %v4918_v39 }
0x13e8   : > { %v4069_v29 = vpop.f32.mrf.mxu1 }
0x13e9   : > { %v3747_v56 = vmul.f32 -1.442695, %v1089_v28 }
0x13ea   : > { %v1086_v33 = vpop.f32.mrf.mxu1 }
0x13ec   : > { %v4070_v36 = vpop.f32.mrf.mxu1 }
0x13ee   : > { %v1297_v40 = vpop.f32.mrf.mxu1 }
0x13ef   : > { %v1303_v23 = vadd.f32 %v1297_v40, %v1208_v37 }
0x13f0   : > { %v4089_v41 = vpop.f32.mrf.mxu1 }
0x13f1   : > { %4451 = vtanh.f32 %v1303_v23  ;;  %v3763_v39 = vmul.f32 -1.442695, %v1303_v23 }
0x13f2   : > { %v1300_v43 = vpop.f32.mrf.mxu1 }
0x13f3   : > { %4453 = vpow2.f32 %v3763_v39 }
0x13f4   : > { %v4090_v44 = vpop.f32.mrf.mxu1 }
0x13fe   : > { %v4452_v45 = vpop.eup %4451 }
0x13ff   : > { %1317 = vrot.lane.b32.xlu1 %v4452_v45, %s4742_s14 }
0x1400   : > { %v4454_v25 = vpop.eup %4453 }
0x1401   : > { %v1307_v31 = vadd.f32 1.0, %v4454_v25 }
0x1403   : > { %4455 = vrcp.f32 %v1307_v31 }
0x1410   : > { %v4456_v46 = vpop.eup %4455 }
0x1411   : > { %v1315_v51 = vmul.f32 %v4456_v46, %v1313_v49  ;;  %v1216_v49 = vadd.f32 %v5072_v22, %v5078_v34 }
0x1471   : > { %v1318_v42 = vpop.permute.xlu1 %1317 }
0x1472   : > { %v1320_v47 = vmul.f32 %v4456_v46, %v1318_v42 }
0x1474   : > { %1322 = vrot.lane.b32.xlu1 %v1320_v47, %s4742_s14 }
0x14e6   : > { %v1323_v52 = vpop.permute.xlu1 %1322 }
0x14e7   : > { %v1325_v53 = vadd.f32 %v1323_v52, %v1315_v51 }
0x14e9   : > { %4457 = vtanh.f32 %v1325_v53 }
0x14ea   : > { %4459 = vtanh.f32 %v1089_v28 }
0x14eb   : > { %4461 = vpow2.f32 %v3747_v56 }
0x14f6   : > { %v4458_v54 = vpop.eup %4457 }
0x14f7   : > { %1328 = vrot.lane.b32.xlu0 %v4458_v54, %s4742_s14  ;;  %v4460_v55 = vpop.eup %4459 }
0x14f8   : > { %v4462_v57 = vpop.eup %4461 }
0x14f9   : > { %v1093_v58 = vadd.f32 1.0, %v4462_v57 }
0x14fb   : > { %1099 = vrot.lane.b32.xlu0 %v4460_v55, %s4742_s14  ;;  %4463 = vrcp.f32 %v1093_v58 }
0x1508   : > { %v4464_v63 = vpop.eup %4463 }
0x1509   : > { %v1097_v38 = vmul.f32 %v4464_v63, %v5017_v2 }
0x1569   : > { %v1329_v59 = vpop.permute.xlu0 %1328 }
0x156a   : > { %v5085_v60 = vmul.f32 %v4456_v46, %v1329_v59 }
0x156c   : > { %v1337_v61 = vpack.c.bf16 %v5085_v60, %v5085_v60 }
0x156d   : > { %v1100_v0 = vpop.permute.xlu0 %1099 }
0x156e   : > { %v1102_v1 = vmul.f32 %v4464_v63, %v1100_v0  ;;  %1339 = vrot.lane.b32.xlu1 %v1337_v61, %s4743_s15 }
0x1570   : > { %1104 = vrot.lane.b32.xlu0 %v1102_v1, %s4742_s14 }
0x15e0   : > { %v1340_v32 = vpop.permute.xlu1 %1339 }
0x15e1   : > { %4096 = vmatmul.mubr.msk.bf16.vlgmr.msra.gmra.mxu1 %vm406_vm1, %v1340_v32 }
0x15e2   : > { %v1105_v3 = vpop.permute.xlu0 %1104  ;;  %4108 = vmatpush3.bf16.msra.mxu1 %v5045_v16  ;;  %4111 = vmatprep.mubr.msk.bf16.mxu1 %vm4741_vm2, %v4740_v24 }
0x15e3   : > { %v5096_v5 = vadd.f32 %v1105_v3, %v1097_v38  ;;  %4109 = vmatprep.subr.bf16.mxu1 %v4740_v24 }
0x15e5   : > { %4465 = vtanh.f32 %v5096_v5 }
0x15e6   : > { %4110 = vmatpush3.bf16.msra.mxu1 %v5053_v17 }
0x15e7   : > { %4123 = vmatprep.subr.bf16.mxu1 %v4740_v24 }
0x15f2   : > { %v4466_v6 = vpop.eup %4465 }
0x15f3   : > { %1110 = vrot.lane.b32.xlu0 %v4466_v6, %s4742_s14 }
0x15f7   : > { %884 = vrot.lane.b32.xlu0 %v4988_v27, %s4743_s15 }
0x15fb   : > { %1038 = vrot.lane.b32.xlu0 %v5034_v8, %s4743_s15 }
0x1665   : > { %v1111_v2 = vpop.permute.xlu0 %1110 }
0x1666   : > { %v1113_v30 = vmul.f32 %v4464_v63, %v1111_v2 }
0x1669   : > { %v885_v62 = vpop.permute.xlu0 %884 }
0x166a   : > { %887 = vst.msk [vmem:[#allocation4 + $0x20] sm:$0xff] %vm406_vm1, %v885_v62 }
0x166d   : > { %v1039_v48 = vpop.permute.xlu0 %1038 }
0x166e   : > { %1041 = vst.msk [vmem:[#allocation4 + $0x30] sm:$0xff] %vm406_vm1, %v1039_v48  ;;  %v1219_v48 = vadd.f32 %v5109_v7, %v5078_v34 }
0x1675   : > { %v1135_v44 = vld [vmem:[#allocation4 + $0x30] sm:$0xff] }
0x16a1   : > { %v1378_v11 = vpop.f32.mrf.mxu1 }
0x16a2   : > { %v1384_v12 = vadd.f32 %v1378_v11, %v1211_v10 }
0x16a3   : > { %v4097_v13 = vpop.f32.mrf.mxu1 }
0x16a4   : > { %4467 = vtanh.f32 %v1384_v12  ;;  %v3765_v8 = vmul.f32 -1.442695, %v1384_v12 }
0x16a5   : > { %v1381_v27 = vpop.f32.mrf.mxu1 }
0x16a6   : > { %4469 = vpow2.f32 %v3765_v8 }
0x16a7   : > { %v4098_v20 = vpop.f32.mrf.mxu1 }
0x16b1   : > { %v4468_v4 = vpop.eup %4467 }
0x16b2   : > { %1394 = vrot.lane.b32.xlu1 %v4468_v4, %s4742_s14 }
0x16b3   : > { %v4470_v14 = vpop.eup %4469 }
0x16b4   : > { %v1388_v15 = vadd.f32 1.0, %v4470_v14 }
0x16b6   : > { %4471 = vrcp.f32 %v1388_v15 }
0x16c3   : > { %v4472_v18 = vpop.eup %4471 }
0x16c4   : > { %v1392_v35 = vmul.f32 %v4472_v18, %v1325_v53 }
0x1724   : > { %v1395_v19 = vpop.permute.xlu1 %1394 }
0x1725   : > { %v1397_v21 = vmul.f32 %v4472_v18, %v1395_v19 }
0x1727   : > { %1399 = vrot.lane.b32.xlu1 %v1397_v21, %s4742_s14 }
0x1799   : > { %v1400_v26 = vpop.permute.xlu1 %1399 }
0x179a   : > { %v1402_v28 = vadd.f32 %v1400_v26, %v1392_v35 }
0x179c   : > { %4473 = vtanh.f32 %v1402_v28 }
0x17a9   : > { %v4474_v29 = vpop.eup %4473 }
0x17aa   : > { %1405 = vrot.lane.b32.xlu1 %v4474_v29, %s4742_s14 }
0x17ae   : > { %961 = vrot.lane.b32.xlu1 %v5004_v50, %s4743_s15  ;;  %v1133_v50 = vld [vmem:[#allocation4 + $0x20] sm:$0xff] }
0x17b2   : > { %1115 = vrot.lane.b32.xlu1 %v1113_v30, %s4743_s15 }
0x181c   : > { %v1406_v33 = vpop.permute.xlu1 %1405 }
0x181d   : > { %v5118_v36 = vmul.f32 %v4472_v18, %v1406_v33 }
0x181f   : > { %v1414_v37 = vpack.c.bf16 %v5118_v36, %v5118_v36 }
0x1820   : > { %v962_v40 = vpop.permute.xlu1 %961 }
0x1821   : > { %964 = vst.msk [vmem:[#allocation4 + $0x28] sm:$0xff] %vm406_vm1, %v962_v40  ;;  %1416 = vrot.lane.b32.xlu0 %v1414_v37, %s4743_s15 }
0x1824   : > { %v1116_v23 = vpop.permute.xlu1 %1115 }
0x1825   : > { %1118 = vst.msk [vmem:[#allocation4 + $0x38] sm:$0xff] %vm406_vm1, %v1116_v23  ;;  %1119 = vst.msk [vmem:[#allocation2] sm:$0xff] %vm406_vm1, %v1116_v23 }
0x1828   : > { %v1134_v41 = vld [vmem:[#allocation4 + $0x28] sm:$0xff] }
0x1829   : > { %v1139_v43 = vpack.c.bf16 %v1134_v41, %v1133_v50 }
0x182b   : > { %4079 = vmatprep.mubr.msk.bf16.mxu0 %vm406_vm1, %v1139_v43 }
0x182c   : > { %v1136_v45 = vld [vmem:[#allocation4 + $0x38] sm:$0xff] }
0x182d   : > { %v1140_v39 = vpack.c.bf16 %v1136_v45, %v1135_v44 }
0x182f   : > { %4080 = vmatmul.mubr.msk.bf16.gmra.mxu0 %vm406_vm1, %v1140_v39 }
0x1830   : > { %4103 = vmatprep.mubr.msk.bf16.mxu0 %vm4741_vm2, %v4740_v24 }
0x1893   : > { %v1417_v25 = vpop.permute.xlu0 %1416 }
0x1894   : > { %4104 = vmatmul.mubr.msk.bf16.vlgmr.msra.gmra.mxu0 %vm406_vm1, %v1417_v25 }
0x1895   : > { %4116 = vmatpush3.bf16.msra.mxu0 %v5045_v16  ;;  %4119 = vmatprep.mubr.msk.bf16.mxu0 %vm4741_vm2, %v4740_v24 }
0x1896   : > { %4117 = vmatprep.subr.bf16.mxu0 %v4740_v24 }
0x1899   : > { %4118 = vmatpush3.bf16.msra.mxu0 %v5053_v17 }
0x189a   : > { %4131 = vmatprep.subr.bf16.mxu0 %v4740_v24 }
0x18ef   : > { %v5137_v31 = vpop.f32.mrf.mxu0 }
0x18f1   : > { %v5139_v46 = vpop.f32.mrf.mxu0 }
0x18f2   : > { %v1224_v33 = vadd.f32 %v5078_v34, %v5139_v46 }
0x18f3   : > { %v5141_v42 = vpop.f32.mrf.mxu0 }
0x18f5   : > { %v5143_v47 = vpop.f32.mrf.mxu0 }
0x1954   : > { %v1455_v51 = vpop.f32.mrf.mxu0 }
0x1955   : > { %v1461_v52 = vadd.f32 %v1455_v51, %v1216_v49 }
0x1956   : > { %v4105_v53 = vpop.f32.mrf.mxu0 }
0x1957   : > { %4475 = vtanh.f32 %v1461_v52  ;;  %v3767_v57 = vmul.f32 -1.442695, %v1461_v52 }
0x1958   : > { %v1458_v54 = vpop.f32.mrf.mxu0 }
0x1959   : > { %4477 = vpow2.f32 %v3767_v57 }
0x195a   : > { %v4106_v55 = vpop.f32.mrf.mxu0 }
0x1964   : > { %v4476_v56 = vpop.eup %4475 }
0x1965   : > { %1471 = vrot.lane.b32.xlu1 %v4476_v56, %s4742_s14 }
0x1966   : > { %v4478_v58 = vpop.eup %4477 }
0x1967   : > { %v1465_v59 = vadd.f32 1.0, %v4478_v58 }
0x1969   : > { %4479 = vrcp.f32 %v1465_v59  ;;  %v1227_v59 = vadd.f32 %v5078_v34, %v5143_v47 }
0x1976   : > { %v4480_v61 = vpop.eup %4479 }
0x1977   : > { %v1469_v22 = vmul.f32 %v4480_v61, %v1402_v28 }
0x19d7   : > { %v1472_v63 = vpop.permute.xlu1 %1471 }
0x19d8   : > { %v1474_v0 = vmul.f32 %v4480_v61, %v1472_v63 }
0x19da   : > { %1476 = vrot.lane.b32.xlu0 %v1474_v0, %s4742_s14 }
0x1a4c   : > { %v1477_v1 = vpop.permute.xlu0 %1476 }
0x1a4d   : > { %v1479_v32 = vadd.f32 %v1477_v1, %v1469_v22 }
0x1a4f   : > { %4481 = vtanh.f32 %v1479_v32 }
0x1a5c   : > { %v4482_v38 = vpop.eup %4481 }
0x1a5d   : > { %1482 = vrot.lane.b32.xlu1 %v4482_v38, %s4742_s14 }
0x1acf   : > { %v1483_v3 = vpop.permute.xlu1 %1482 }
0x1ad0   : > { %v5150_v6 = vmul.f32 %v4480_v61, %v1483_v3 }
0x1ad2   : > { %v1491_v2 = vpack.c.bf16 %v5150_v6, %v5150_v6 }
0x1ad4   : > { %1493 = vrot.lane.b32.xlu0 %v1491_v2, %s4743_s15 }
0x1b46   : > { %v1494_v62 = vpop.permute.xlu0 %1493 }
0x1b47   : > { %4112 = vmatmul.mubr.msk.bf16.vlgmr.msra.gmra.mxu1 %vm406_vm1, %v1494_v62 }
0x1b48   : > { %4124 = vmatpush3.bf16.msra.mxu1 %v5045_v16  ;;  %4127 = vmatprep.mubr.msk.bf16.mxu1 %vm4741_vm2, %v4740_v24 }
0x1b49   : > { %4125 = vmatprep.subr.bf16.mxu1 %v4740_v24 }
0x1b4c   : > { %4126 = vmatpush3.bf16.msra.mxu1 %v5053_v17 }
0x1b4d   : > { %4139 = vmatprep.subr.bf16.mxu1 %v4740_v24 }
0x1c07   : > { %v1532_v9 = vpop.f32.mrf.mxu1 }
0x1c08   : > { %v1538_v10 = vadd.f32 %v1532_v9, %v1219_v48 }
0x1c09   : > { %v4113_v11 = vpop.f32.mrf.mxu1 }
0x1c0a   : > { %4483 = vtanh.f32 %v1538_v10  ;;  %v3769_v20 = vmul.f32 -1.442695, %v1538_v10 }
0x1c0b   : > { %v1535_v12 = vpop.f32.mrf.mxu1 }
0x1c0c   : > { %4485 = vpow2.f32 %v3769_v20  ;;  %v1232_v20 = vadd.f32 %v5137_v31, %v5078_v34 }
0x1c0d   : > { %v4114_v13 = vpop.f32.mrf.mxu1 }
0x1c17   : > { %v4484_v27 = vpop.eup %4483 }
0x1c18   : > { %1548 = vrot.lane.b32.xlu1 %v4484_v27, %s4742_s14 }
0x1c19   : > { %v4486_v4 = vpop.eup %4485 }
0x1c1a   : > { %v1542_v8 = vadd.f32 1.0, %v4486_v4 }
0x1c1c   : > { %4487 = vrcp.f32 %v1542_v8 }
0x1c29   : > { %v4488_v14 = vpop.eup %4487 }
0x1c2a   : > { %v1546_v7 = vmul.f32 %v4488_v14, %v1479_v32 }
0x1c8a   : > { %v1549_v15 = vpop.permute.xlu1 %1548 }
0x1c8b   : > { %v1551_v18 = vmul.f32 %v4488_v14, %v1549_v15 }
0x1c8d   : > { %1553 = vrot.lane.b32.xlu0 %v1551_v18, %s4742_s14 }
0x1cff   : > { %v1554_v19 = vpop.permute.xlu0 %1553 }
0x1d00   : > { %v1556_v21 = vadd.f32 %v1554_v19, %v1546_v7 }
0x1d02   : > { %4489 = vtanh.f32 %v1556_v21 }
0x1d0f   : > { %v4490_v35 = vpop.eup %4489 }
0x1d10   : > { %1559 = vrot.lane.b32.xlu1 %v4490_v35, %s4742_s14 }
0x1d82   : > { %v1560_v26 = vpop.permute.xlu1 %1559 }
0x1d83   : > { %v5167_v28 = vmul.f32 %v4488_v14, %v1560_v26 }
0x1d85   : > { %v1568_v29 = vpack.c.bf16 %v5167_v28, %v5167_v28 }
0x1d87   : > { %1570 = vrot.lane.b32.xlu0 %v1568_v29, %s4743_s15 }
0x1df9   : > { %v1571_v30 = vpop.permute.xlu0 %1570 }
0x1dfa   : > { %4120 = vmatmul.mubr.msk.bf16.vlgmr.msra.gmra.mxu0 %vm406_vm1, %v1571_v30 }
0x1dfb   : > { %4132 = vmatpush3.bf16.msra.mxu0 %v5045_v16  ;;  %4135 = vmatprep.mubr.msk.bf16.mxu0 %vm4741_vm2, %v4740_v24 }
0x1dfc   : > { %4133 = vmatprep.subr.bf16.mxu0 %v4740_v24 }
0x1dff   : > { %4134 = vmatpush3.bf16.msra.mxu0 %v5053_v17 }
0x1eba   : > { %v1609_v37 = vpop.f32.mrf.mxu0 }
0x1ebb   : > { %v1615_v40 = vadd.f32 %v1609_v37, %v1224_v33 }
0x1ebc   : > { %v4121_v23 = vpop.f32.mrf.mxu0 }
0x1ebd   : > { %4491 = vtanh.f32 %v1615_v40  ;;  %v3771_v44 = vmul.f32 -1.442695, %v1615_v40 }
0x1ebe   : > { %v1612_v50 = vpop.f32.mrf.mxu0 }
0x1ebf   : > { %4493 = vpow2.f32 %v3771_v44  ;;  %v4385_v50 = vld [vmem:[%s5706_s2 + $0x18] sm:$0xff]  }
0x1ec0   : > { %v4122_v41 = vpop.f32.mrf.mxu0  ;;  %4147 = vmatprep.subr.bf16.mxu0 %v4385_v50 }
0x1eca   : > { %v4492_v43 = vpop.eup %4491 }
0x1ecb   : > { %1625 = vrot.lane.b32.xlu1 %v4492_v43, %s4742_s14 }
0x1ecc   : > { %v4494_v45 = vpop.eup %4493 }
0x1ecd   : > { %v1619_v39 = vadd.f32 1.0, %v4494_v45 }
0x1ecf   : > { %4495 = vrcp.f32 %v1619_v39 }
0x1edc   : > { %v4496_v25 = vpop.eup %4495 }
0x1edd   : > { %v1623_v46 = vmul.f32 %v4496_v25, %v1556_v21 }
0x1f3d   : > { %v1626_v49 = vpop.permute.xlu1 %1625 }
0x1f3e   : > { %v1628_v51 = vmul.f32 %v4496_v25, %v1626_v49 }
0x1f40   : > { %1630 = vrot.lane.b32.xlu0 %v1628_v51, %s4742_s14 }
0x1fb2   : > { %v1631_v52 = vpop.permute.xlu0 %1630 }
0x1fb3   : > { %v1633_v53 = vadd.f32 %v1631_v52, %v1623_v46  ;;  %v5242_v52 = vld [vmem:[%s5707_s3 + $0x28] sm:$0xff]  }
0x1fb5   : > { %4497 = vtanh.f32 %v1633_v53 }
0x1fc2   : > { %v4498_v54 = vpop.eup %4497 }
0x1fc3   : > { %1636 = vrot.lane.b32.xlu1 %v4498_v54, %s4742_s14  ;;  %v2004_v54 = vld [vmem:[#allocation3 + $0x10] sm:$0xff] }
0x2035   : > { %v1637_v55 = vpop.permute.xlu1 %1636 }
0x2036   : > { %v5183_v56 = vmul.f32 %v4496_v25, %v1637_v55 }
0x2038   : > { %v1645_v57 = vpack.c.bf16 %v5183_v56, %v5183_v56 }
0x203a   : > { %1647 = vrot.lane.b32.xlu0 %v1645_v57, %s4743_s15  ;;  %v2002_v57 = vld [vmem:[#allocation2 + $0x10] sm:$0xff] }
0x20ac   : > { %v1648_v58 = vpop.permute.xlu0 %1647 }
0x20ad   : > { %4128 = vmatmul.mubr.msk.bf16.vlgmr.msra.gmra.mxu1 %vm406_vm1, %v1648_v58  ;;  %v2005_v58 = vpack.c.bf16 %v2002_v57, %v2002_v57 }
0x20ae   : > { %4140 = vmatpush3.bf16.msra.mxu1 %v5045_v16  ;;  %4143 = vmatprep.mubr.msk.bf16.mxu1 %vm4741_vm2, %v4740_v24 }
0x20af   : > { %4141 = vmatprep.subr.bf16.mxu1 %v4740_v24 }
0x20b2   : > { %4142 = vmatpush3.bf16.msra.mxu1 %v5053_v17 }
0x20b3   : > { %4159 = vmatprep.subr.bf16.mxu1 %v4740_v24 }
0x216d   : > { %v1686_v61 = vpop.f32.mrf.mxu1 }
0x216e   : > { %v1692_v63 = vadd.f32 %v1686_v61, %v1227_v59  ;;  %v1235_v59 = vadd.f32 %v5141_v42, %v5078_v34 }
0x216f   : > { %v4129_v0 = vpop.f32.mrf.mxu1 }
0x2170   : > { %4499 = vtanh.f32 %v1692_v63  ;;  %v3773_v16 = vmul.f32 -1.442695, %v1692_v63 }
0x2171   : > { %v1689_v22 = vpop.f32.mrf.mxu1 }
0x2172   : > { %4501 = vpow2.f32 %v3773_v16  ;;  %v5276_v16 = vld [vmem:[%s5708_s4 + $0x2] ss:$0 sm:$0xff] }
0x2173   : > { %v4130_v1 = vpop.f32.mrf.mxu1 }
0x217d   : > { %v4500_v32 = vpop.eup %4499 }
0x217e   : > { %1702 = vrot.lane.b32.xlu1 %v4500_v32, %s4742_s14 }
0x217f   : > { %v4502_v38 = vpop.eup %4501 }
0x2180   : > { %v1696_v3 = vadd.f32 1.0, %v4502_v38 }
0x2182   : > { %4503 = vrcp.f32 %v1696_v3 }
0x218f   : > { %v4504_v17 = vpop.eup %4503 }
0x2190   : > { %v1700_v47 = vmul.f32 %v4504_v17, %v1633_v53  ;;  %v5250_v53 = vld [vmem:[%s5707_s3 + $0x20] sm:$0xff]  }
0x21f0   : > { %v1703_v2 = vpop.permute.xlu1 %1702 }
0x21f1   : > { %v1705_v62 = vmul.f32 %v4504_v17, %v1703_v2 }
0x21f3   : > { %1707 = vrot.lane.b32.xlu0 %v1705_v62, %s4742_s14 }
0x2265   : > { %v1708_v48 = vpop.permute.xlu0 %1707 }
0x2266   : > { %v1710_v9 = vadd.f32 %v1708_v48, %v1700_v47 }
0x2268   : > { %4505 = vtanh.f32 %v1710_v9 }
0x2275   : > { %v4506_v10 = vpop.eup %4505 }
0x2276   : > { %1713 = vrot.lane.b32.xlu1 %v4506_v10, %s4742_s14 }
0x22e8   : > { %v1714_v11 = vpop.permute.xlu1 %1713 }
0x22e9   : > { %v5200_v12 = vmul.f32 %v4504_v17, %v1714_v11 }
0x22eb   : > { %v1722_v13 = vpack.c.bf16 %v5200_v12, %v5200_v12 }
0x22ed   : > { %1724 = vrot.lane.b32.xlu0 %v1722_v13, %s4743_s15 }
0x235f   : > { %v1725_v27 = vpop.permute.xlu0 %1724 }
0x2360   : > { %4136 = vmatmul.mubr.msk.bf16.vlgmr.msra.gmra.mxu0 %vm406_vm1, %v1725_v27 }
0x2361   : > { %4148 = vmatpush3.bf16.msra.mxu0 %v4385_v50 }
0x2420   : > { %v1763_v4 = vpop.f32.mrf.mxu0 }
0x2421   : > { %v1769_v8 = vadd.f32 %v1763_v4, %v1232_v20 }
0x2422   : > { %v4137_v14 = vpop.f32.mrf.mxu0 }
0x2423   : > { %4507 = vtanh.f32 %v1769_v8  ;;  %v3775_v19 = vmul.f32 -1.442695, %v1769_v8 }
0x2424   : > { %v1766_v15 = vpop.f32.mrf.mxu0 }
0x2425   : > { %4509 = vpow2.f32 %v3775_v19 }
0x2426   : > { %v4138_v18 = vpop.f32.mrf.mxu0 }
0x2430   : > { %v4508_v7 = vpop.eup %4507 }
0x2431   : > { %1779 = vrot.lane.b32.xlu1 %v4508_v7, %s4742_s14 }
0x2432   : > { %v4510_v21 = vpop.eup %4509 }
0x2433   : > { %v1773_v35 = vadd.f32 1.0, %v4510_v21 }
0x2435   : > { %4511 = vrcp.f32 %v1773_v35 }
0x2442   : > { %v4512_v26 = vpop.eup %4511 }
0x2443   : > { %v1777_v31 = vmul.f32 %v4512_v26, %v1710_v9 }
0x24a3   : > { %v1780_v29 = vpop.permute.xlu1 %1779 }
0x24a4   : > { %v1782_v30 = vmul.f32 %v4512_v26, %v1780_v29 }
0x24a6   : > { %1784 = vrot.lane.b32.xlu0 %v1782_v30, %s4742_s14 }
0x24aa   : > { %1333 = vrot.lane.b32.xlu0 %v5085_v60, %s4743_s15  ;;  %v4386_v60 = vld [vmem:[%s5706_s2 + $0x10] sm:$0xff]  }
0x24ab   : > { %4149 = vmatprep.subr.bf16.mxu0 %v4386_v60 }
0x24ac   : > { %4150 = vmatpush3.bf16.msra.mxu0 %v4386_v60 }
0x24ad   : > { %4175 = vmatprep.subr.bf16.mxu0 %v4740_v24 }
0x24ae   : > { %1487 = vrot.lane.b32.xlu0 %v5150_v6, %s4743_s15 }
0x2518   : > { %v1785_v33 = vpop.permute.xlu0 %1784 }
0x2519   : > { %v5214_v37 = vadd.f32 %v1785_v33, %v1777_v31 }
0x251b   : > { %4513 = vtanh.f32 %v5214_v37 }
0x251c   : > { %v1334_v40 = vpop.permute.xlu0 %1333 }
0x251d   : > { %1336 = vst.msk [vmem:[#allocation4] sm:$0xff] %vm406_vm1, %v1334_v40 }
0x2520   : > { %v1488_v23 = vpop.permute.xlu0 %1487 }
0x2521   : > { %1490 = vst.msk [vmem:[#allocation4 + $0x10] sm:$0xff] %vm406_vm1, %v1488_v23 }
0x2524   : > { %v1887_v25 = vld [vmem:[#allocation4] sm:$0xff] }
0x2528   : > { %v4514_v6 = vpop.eup %4513 }
0x2529   : > { %1790 = vrot.lane.b32.xlu1 %v4514_v6, %s4742_s14 }
0x252d   : > { %1410 = vrot.lane.b32.xlu1 %v5118_v36, %s4743_s15 }
0x2531   : > { %1564 = vrot.lane.b32.xlu1 %v5167_v28, %s4743_s15  ;;  %v1889_v28 = vld [vmem:[#allocation4 + $0x10] sm:$0xff] }
0x259b   : > { %v1791_v41 = vpop.permute.xlu1 %1790 }
0x259c   : > { %v5231_v43 = vmul.f32 %v4512_v26, %v1791_v41 }
0x259e   : > { %v1799_v44 = vpack.c.bf16 %v5231_v43, %v5231_v43 }
0x259f   : > { %v1411_v45 = vpop.permute.xlu1 %1410 }
0x25a0   : > { %1413 = vst.msk [vmem:[#allocation4 + $0x8] sm:$0xff] %vm406_vm1, %v1411_v45  ;;  %1801 = vrot.lane.b32.xlu0 %v1799_v44, %s4743_s15 }
0x25a3   : > { %v1565_v39 = vpop.permute.xlu1 %1564 }
0x25a4   : > { %1567 = vst.msk [vmem:[#allocation4 + $0x18] sm:$0xff] %vm406_vm1, %v1565_v39  ;;  %2070 = vrot.lane.b32.xlu0 %v2004_v54, %s4742_s14 }
0x25a7   : > { %v1888_v49 = vld [vmem:[#allocation4 + $0x8] sm:$0xff] }
0x25a8   : > { %v1895_v36 = vpack.c.bf16 %v1888_v49, %v1887_v25 }
0x25aa   : > { %4151 = vmatprep.mubr.msk.bf16.mxu0 %vm406_vm1, %v1895_v36 }
0x25ab   : > { %v1890_v51 = vld [vmem:[#allocation4 + $0x18] sm:$0xff] }
0x25ac   : > { %v1896_v46 = vpack.c.bf16 %v1890_v51, %v1889_v28 }
0x25ae   : > { %4152 = vmatmul.mubr.msk.bf16.vlgmr.msra.gmra.mxu0 %vm406_vm1, %v1896_v46 }
0x25af   : > { %4176 = vmatpush3.bf16.msra.mxu0 %v5242_v52 }
0x25b0   : > { %4177 = vmatprep.subr.bf16.mxu0 %v4740_v24 }
0x25b3   : > { %4178 = vmatpush3.bf16.msra.mxu0 %v5250_v53 }
0x25b4   : > { %4191 = vmatprep.subr.bf16.mxu0 %v4740_v24 }
0x2612   : > { %v1802_v55 = vpop.permute.xlu0 %1801 }
0x2613   : > { %4144 = vmatmul.mubr.msk.bf16.vlgmr.msra.gmra.mxu1 %vm406_vm1, %v1802_v55 }
0x2614   : > { %4160 = vmatpush3.bf16.msra.mxu1 %v5242_v52  ;;  %4163 = vmatprep.mubr.msk.bf16.mxu1 %vm4741_vm2, %v4740_v24 }
0x2615   : > { %4161 = vmatprep.subr.bf16.mxu1 %v4740_v24 }
0x2616   : > { %v2071_v20 = vpop.permute.xlu0 %2070 }
0x2618   : > { %4162 = vmatpush3.bf16.msra.mxu1 %v5250_v53 }
0x2619   : > { %4167 = vmatprep.subr.bf16.mxu1 %v4740_v24 }
0x261b   : > { %4164 = vmatmul.mubr.msk.bf16.vlgmr.msra.gmra.mxu1 %vm406_vm1, %v2005_v58 }
0x261c   : > { %4168 = vmatpush3.bf16.msra.mxu1 %v5242_v52  ;;  %4171 = vmatprep.mubr.msk.bf16.mxu1 %vm4741_vm2, %v4740_v24 }
0x261d   : > { %4169 = vmatprep.subr.bf16.mxu1 %v4740_v24 }
0x2620   : > { %4170 = vmatpush3.bf16.msra.mxu1 %v5250_v53 }
0x2621   : > { %4183 = vmatprep.subr.bf16.mxu1 %v4740_v24 }
0x266e   : > { %v5271_v61 = vpop.f32.mrf.mxu0 }
0x2670   : > { %v1965_v1 = vpop.f32.mrf.mxu0 }
0x2671   : > { %v1966_v3 = vadd.f32 %v5276_v16, %v1965_v1 }
0x2672   : > { %v5307_v45 = vpop.f32.mrf.mxu0 }
0x2674   : > { %v1968_v39 = vpop.f32.mrf.mxu0 }
0x2675   : > { %v1969_v25 = vadd.f32 %v5276_v16, %v1968_v39  ;;  %v1977_v39 = vadd.f32 %v5307_v45, %v5276_v16 }
0x26d3   : > { %v1840_v63 = vpop.f32.mrf.mxu1 }
0x26d4   : > { %v1846_v0 = vadd.f32 %v1840_v63, %v1235_v59 }
0x26d5   : > { %v4145_v22 = vpop.f32.mrf.mxu1 }
0x26d6   : > { %v3777_v7 = vmul.f32 -1.442695, %v1846_v0 }
0x26d7   : > { %v1843_v32 = vpop.f32.mrf.mxu1 }
0x26d9   : > { %v4146_v38 = vpop.f32.mrf.mxu1 }
0x26db   : > { %v2055_v17 = vpop.f32.mrf.mxu1 }
0x26dc   : > { %v2061_v2 = vadd.f32 %v2055_v17, %v1966_v3 }
0x26dd   : > { %v4165_v62 = vpop.f32.mrf.mxu1 }
0x26de   : > { %4515 = vtanh.f32 %v2061_v2  ;;  %v3797_v48 = vmul.f32 -1.442695, %v2061_v2 }
0x26df   : > { %v2058_v34 = vpop.f32.mrf.mxu1 }
0x26e0   : > { %4517 = vpow2.f32 %v3797_v48 }
0x26e1   : > { %v4166_v42 = vpop.f32.mrf.mxu1 }
0x26eb   : > { %v4516_v47 = vpop.eup %4515 }
0x26ec   : > { %2075 = vrot.lane.b32.xlu1 %v4516_v47, %s4742_s14 }
0x26ed   : > { %v4518_v9 = vpop.eup %4517 }
0x26ee   : > { %v2065_v10 = vadd.f32 1.0, %v4518_v9 }
0x26f0   : > { %4519 = vrcp.f32 %v2065_v10 }
0x26fd   : > { %v4520_v11 = vpop.eup %4519 }
0x26fe   : > { %v2073_v4 = vmul.f32 %v4520_v11, %v2071_v20 }
0x275e   : > { %v2076_v13 = vpop.permute.xlu1 %2075 }
0x275f   : > { %v2078_v27 = vmul.f32 %v4520_v11, %v2076_v13 }
0x2761   : > { %2080 = vrot.lane.b32.xlu1 %v2078_v27, %s4742_s14 }
0x27d3   : > { %v2081_v8 = vpop.permute.xlu1 %2080 }
0x27d4   : > { %v2083_v14 = vadd.f32 %v2081_v8, %v2073_v4  ;;  %v1974_v4 = vadd.f32 %v5271_v61, %v5276_v16 }
0x27d6   : > { %4521 = vtanh.f32 %v2083_v14 }
0x27d7   : > { %4523 = vtanh.f32 %v1846_v0 }
0x27d8   : > { %4525 = vpow2.f32 %v3777_v7 }
0x27e3   : > { %v4522_v15 = vpop.eup %4521 }
0x27e4   : > { %2086 = vrot.lane.b32.xlu0 %v4522_v15, %s4742_s14  ;;  %v4524_v18 = vpop.eup %4523 }
0x27e5   : > { %v4526_v19 = vpop.eup %4525 }
0x27e6   : > { %v1850_v21 = vadd.f32 1.0, %v4526_v19 }
0x27e8   : > { %1856 = vrot.lane.b32.xlu0 %v4524_v18, %s4742_s14  ;;  %4527 = vrcp.f32 %v1850_v21 }
0x27f5   : > { %v4528_v30 = vpop.eup %4527 }
0x27f6   : > { %v1854_v23 = vmul.f32 %v4528_v30, %v5214_v37 }
0x2856   : > { %v2087_v35 = vpop.permute.xlu0 %2086 }
0x2857   : > { %v5283_v26 = vmul.f32 %v4520_v11, %v2087_v35 }
0x2859   : > { %v2095_v29 = vpack.c.bf16 %v5283_v26, %v5283_v26 }
0x285a   : > { %v1857_v31 = vpop.permute.xlu0 %1856 }
0x285b   : > { %v1859_v33 = vmul.f32 %v4528_v30, %v1857_v31  ;;  %2097 = vrot.lane.b32.xlu1 %v2095_v29, %s4743_s15 }
0x285d   : > { %1861 = vrot.lane.b32.xlu0 %v1859_v33, %s4742_s14 }
0x28cd   : > { %v2098_v40 = vpop.permute.xlu1 %2097 }
0x28ce   : > { %4172 = vmatmul.mubr.msk.bf16.vlgmr.msra.gmra.mxu1 %vm406_vm1, %v2098_v40 }
0x28cf   : > { %v1862_v50 = vpop.permute.xlu0 %1861  ;;  %4184 = vmatpush3.bf16.msra.mxu1 %v5242_v52  ;;  %4187 = vmatprep.mubr.msk.bf16.mxu1 %vm4741_vm2, %v4740_v24 }
0x28d0   : > { %v5294_v60 = vadd.f32 %v1862_v50, %v1854_v23  ;;  %4185 = vmatprep.subr.bf16.mxu1 %v4740_v24 }
0x28d2   : > { %4529 = vtanh.f32 %v5294_v60 }
0x28d3   : > { %4186 = vmatpush3.bf16.msra.mxu1 %v5250_v53 }
0x28d4   : > { %4199 = vmatprep.subr.bf16.mxu1 %v4740_v24 }
0x28df   : > { %v4530_v6 = vpop.eup %4529 }
0x28e0   : > { %1867 = vrot.lane.b32.xlu0 %v4530_v6, %s4742_s14 }
0x28e4   : > { %1641 = vrot.lane.b32.xlu0 %v5183_v56, %s4743_s15 }
0x28e8   : > { %1795 = vrot.lane.b32.xlu0 %v5231_v43, %s4743_s15 }
0x2952   : > { %v1868_v37 = vpop.permute.xlu0 %1867 }
0x2953   : > { %v1870_v32 = vmul.f32 %v4528_v30, %v1868_v37 }
0x2956   : > { %v1642_v41 = vpop.permute.xlu0 %1641 }
0x2957   : > { %1644 = vst.msk [vmem:[#allocation4 + $0x20] sm:$0xff] %vm406_vm1, %v1642_v41 }
0x295a   : > { %v1796_v44 = vpop.permute.xlu0 %1795 }
0x295b   : > { %1798 = vst.msk [vmem:[#allocation4 + $0x30] sm:$0xff] %vm406_vm1, %v1796_v44 }
0x2962   : > { %v1893_v47 = vld [vmem:[#allocation4 + $0x30] sm:$0xff] }
0x298e   : > { %v2136_v49 = vpop.f32.mrf.mxu1 }
0x298f   : > { %v2142_v36 = vadd.f32 %v2136_v49, %v1969_v25 }
0x2990   : > { %v4173_v28 = vpop.f32.mrf.mxu1 }
0x2991   : > { %4531 = vtanh.f32 %v2142_v36  ;;  %v3799_v43 = vmul.f32 -1.442695, %v2142_v36 }
0x2992   : > { %v2139_v56 = vpop.f32.mrf.mxu1 }
0x2993   : > { %4533 = vpow2.f32 %v3799_v43 }
0x2994   : > { %v4174_v51 = vpop.f32.mrf.mxu1 }
0x299e   : > { %v4532_v46 = vpop.eup %4531 }
0x299f   : > { %2152 = vrot.lane.b32.xlu1 %v4532_v46, %s4742_s14 }
0x29a0   : > { %v4534_v54 = vpop.eup %4533 }
0x29a1   : > { %v2146_v55 = vadd.f32 1.0, %v4534_v54 }
0x29a3   : > { %4535 = vrcp.f32 %v2146_v55 }
0x29b0   : > { %v4536_v57 = vpop.eup %4535 }
0x29b1   : > { %v2150_v63 = vmul.f32 %v4536_v57, %v2083_v14 }
0x2a11   : > { %v2153_v58 = vpop.permute.xlu1 %2152 }
0x2a12   : > { %v2155_v59 = vmul.f32 %v4536_v57, %v2153_v58 }
0x2a14   : > { %2157 = vrot.lane.b32.xlu1 %v2155_v59, %s4742_s14 }
0x2a86   : > { %v2158_v0 = vpop.permute.xlu1 %2157 }
0x2a87   : > { %v2160_v22 = vadd.f32 %v2158_v0, %v2150_v63 }
0x2a89   : > { %4537 = vtanh.f32 %v2160_v22 }
0x2a96   : > { %v4538_v1 = vpop.eup %4537 }
0x2a97   : > { %2163 = vrot.lane.b32.xlu1 %v4538_v1, %s4742_s14 }
0x2a9b   : > { %1718 = vrot.lane.b32.xlu1 %v5200_v12, %s4743_s15  ;;  %v1891_v12 = vld [vmem:[#allocation4 + $0x20] sm:$0xff] }
0x2a9f   : > { %1872 = vrot.lane.b32.xlu1 %v1870_v32, %s4743_s15 }
0x2b09   : > { %v2164_v38 = vpop.permute.xlu1 %2163 }
0x2b0a   : > { %v5316_v3 = vmul.f32 %v4536_v57, %v2164_v38 }
0x2b0c   : > { %v2172_v17 = vpack.c.bf16 %v5316_v3, %v5316_v3 }
0x2b0d   : > { %v1719_v2 = vpop.permute.xlu1 %1718 }
0x2b0e   : > { %1721 = vst.msk [vmem:[#allocation4 + $0x28] sm:$0xff] %vm406_vm1, %v1719_v2  ;;  %2174 = vrot.lane.b32.xlu0 %v2172_v17, %s4743_s15 }
0x2b11   : > { %v1873_v62 = vpop.permute.xlu1 %1872 }
0x2b12   : > { %1875 = vst.msk [vmem:[#allocation4 + $0x38] sm:$0xff] %vm406_vm1, %v1873_v62  ;;  %1876 = vst.msk [vmem:[#allocation2 + $0x8] sm:$0xff] %vm406_vm1, %v1873_v62 }
0x2b15   : > { %v1892_v34 = vld [vmem:[#allocation4 + $0x28] sm:$0xff] }
0x2b16   : > { %v1897_v42 = vpack.c.bf16 %v1892_v34, %v1891_v12 }
0x2b18   : > { %4155 = vmatprep.mubr.msk.bf16.mxu0 %vm406_vm1, %v1897_v42 }
0x2b19   : > { %v1894_v48 = vld [vmem:[#allocation4 + $0x38] sm:$0xff] }
0x2b1a   : > { %v1898_v9 = vpack.c.bf16 %v1894_v48, %v1893_v47 }
0x2b1c   : > { %4156 = vmatmul.mubr.msk.bf16.gmra.mxu0 %vm406_vm1, %v1898_v9 }
0x2b1d   : > { %4179 = vmatprep.mubr.msk.bf16.mxu0 %vm4741_vm2, %v4740_v24 }
0x2b80   : > { %v2175_v10 = vpop.permute.xlu0 %2174 }
0x2b81   : > { %4180 = vmatmul.mubr.msk.bf16.vlgmr.msra.gmra.mxu0 %vm406_vm1, %v2175_v10 }
0x2b82   : > { %4192 = vmatpush3.bf16.msra.mxu0 %v5242_v52  ;;  %4195 = vmatprep.mubr.msk.bf16.mxu0 %vm4741_vm2, %v4740_v24 }
0x2b83   : > { %4193 = vmatprep.subr.bf16.mxu0 %v4740_v24 }
0x2b86   : > { %4194 = vmatpush3.bf16.msra.mxu0 %v5250_v53 }
0x2b87   : > { %4207 = vmatprep.subr.bf16.mxu0 %v4740_v24 }
0x2bdc   : > { %v5335_v11 = vpop.f32.mrf.mxu0 }
0x2bde   : > { %v5337_v13 = vpop.f32.mrf.mxu0 }
0x2bdf   : > { %v1982_v17 = vadd.f32 %v5276_v16, %v5337_v13 }
0x2be0   : > { %v5339_v27 = vpop.f32.mrf.mxu0 }
0x2be2   : > { %v5341_v20 = vpop.f32.mrf.mxu0 }
0x2c41   : > { %v2213_v8 = vpop.f32.mrf.mxu0 }
0x2c42   : > { %v2219_v14 = vadd.f32 %v2213_v8, %v1974_v4 }
0x2c43   : > { %v4181_v15 = vpop.f32.mrf.mxu0 }
0x2c44   : > { %4539 = vtanh.f32 %v2219_v14  ;;  %v3801_v21 = vmul.f32 -1.442695, %v2219_v14 }
0x2c45   : > { %v2216_v18 = vpop.f32.mrf.mxu0 }
0x2c46   : > { %4541 = vpow2.f32 %v3801_v21 }
0x2c47   : > { %v4182_v7 = vpop.f32.mrf.mxu0 }
0x2c51   : > { %v4540_v19 = vpop.eup %4539 }
0x2c52   : > { %2229 = vrot.lane.b32.xlu1 %v4540_v19, %s4742_s14 }
0x2c53   : > { %v4542_v35 = vpop.eup %4541 }
0x2c54   : > { %v2223_v29 = vadd.f32 1.0, %v4542_v35 }
0x2c56   : > { %4543 = vrcp.f32 %v2223_v29 }
0x2c63   : > { %v4544_v30 = vpop.eup %4543 }
0x2c64   : > { %v2227_v61 = vmul.f32 %v4544_v30, %v2160_v22 }
0x2cc4   : > { %v2230_v31 = vpop.permute.xlu1 %2229 }
0x2cc5   : > { %v2232_v33 = vmul.f32 %v4544_v30, %v2230_v31 }
0x2cc7   : > { %2234 = vrot.lane.b32.xlu0 %v2232_v33, %s4742_s14 }
0x2d39   : > { %v2235_v40 = vpop.permute.xlu0 %2234 }
0x2d3a   : > { %v2237_v23 = vadd.f32 %v2235_v40, %v2227_v61 }
0x2d3c   : > { %4545 = vtanh.f32 %v2237_v23 }
0x2d49   : > { %v4546_v50 = vpop.eup %4545 }
0x2d4a   : > { %2240 = vrot.lane.b32.xlu1 %v4546_v50, %s4742_s14 }
0x2dbc   : > { %v2241_v6 = vpop.permute.xlu1 %2240 }
0x2dbd   : > { %v5348_v37 = vmul.f32 %v4544_v30, %v2241_v6  ;;  %v1985_v30 = vadd.f32 %v5276_v16, %v5341_v20 }
0x2dbf   : > { %v2249_v41 = vpack.c.bf16 %v5348_v37, %v5348_v37 }
0x2dc1   : > { %2251 = vrot.lane.b32.xlu0 %v2249_v41, %s4743_s15 }
0x2e33   : > { %v2252_v44 = vpop.permute.xlu0 %2251 }
0x2e34   : > { %4188 = vmatmul.mubr.msk.bf16.vlgmr.msra.gmra.mxu1 %vm406_vm1, %v2252_v44 }
0x2e35   : > { %4200 = vmatpush3.bf16.msra.mxu1 %v5242_v52  ;;  %4203 = vmatprep.mubr.msk.bf16.mxu1 %vm4741_vm2, %v4740_v24 }
0x2e36   : > { %4201 = vmatprep.subr.bf16.mxu1 %v4740_v24 }
0x2e39   : > { %4202 = vmatpush3.bf16.msra.mxu1 %v5250_v53 }
0x2e3a   : > { %4215 = vmatprep.subr.bf16.mxu1 %v4740_v24 }
0x2ef4   : > { %v2290_v25 = vpop.f32.mrf.mxu1 }
0x2ef5   : > { %v2296_v49 = vadd.f32 %v2290_v25, %v1977_v39 }
0x2ef6   : > { %v4189_v36 = vpop.f32.mrf.mxu1 }
0x2ef7   : > { %4547 = vtanh.f32 %v2296_v49  ;;  %v3803_v46 = vmul.f32 -1.442695, %v2296_v49 }
0x2ef8   : > { %v2293_v28 = vpop.f32.mrf.mxu1 }
0x2ef9   : > { %4549 = vpow2.f32 %v3803_v46 }
0x2efa   : > { %v4190_v56 = vpop.f32.mrf.mxu1 }
0x2f04   : > { %v4548_v51 = vpop.eup %4547 }
0x2f05   : > { %2306 = vrot.lane.b32.xlu1 %v4548_v51, %s4742_s14 }
0x2f06   : > { %v4550_v43 = vpop.eup %4549 }
0x2f07   : > { %v2300_v54 = vadd.f32 1.0, %v4550_v43  ;;  %v1990_v43 = vadd.f32 %v5335_v11, %v5276_v16 }
0x2f09   : > { %4551 = vrcp.f32 %v2300_v54 }
0x2f16   : > { %v4552_v55 = vpop.eup %4551 }
0x2f17   : > { %v2304_v45 = vmul.f32 %v4552_v55, %v2237_v23 }
0x2f77   : > { %v2307_v57 = vpop.permute.xlu1 %2306 }
0x2f78   : > { %v2309_v58 = vmul.f32 %v4552_v55, %v2307_v57 }
0x2f7a   : > { %2311 = vrot.lane.b32.xlu0 %v2309_v58, %s4742_s14 }
0x2fec   : > { %v2312_v59 = vpop.permute.xlu0 %2311 }
0x2fed   : > { %v2314_v63 = vadd.f32 %v2312_v59, %v2304_v45 }
0x2fef   : > { %4553 = vtanh.f32 %v2314_v63 }
0x2ffc   : > { %v4554_v0 = vpop.eup %4553 }
0x2ffd   : > { %2317 = vrot.lane.b32.xlu1 %v4554_v0, %s4742_s14 }
0x306f   : > { %v2318_v22 = vpop.permute.xlu1 %2317 }
0x3070   : > { %v5365_v1 = vmul.f32 %v4552_v55, %v2318_v22 }
0x3072   : > { %v2326_v32 = vpack.c.bf16 %v5365_v1, %v5365_v1 }
0x3074   : > { %2328 = vrot.lane.b32.xlu0 %v2326_v32, %s4743_s15 }
0x30e6   : > { %v2329_v38 = vpop.permute.xlu0 %2328 }
0x30e7   : > { %4196 = vmatmul.mubr.msk.bf16.vlgmr.msra.gmra.mxu0 %vm406_vm1, %v2329_v38 }
0x30e8   : > { %4208 = vmatpush3.bf16.msra.mxu0 %v5242_v52  ;;  %4211 = vmatprep.mubr.msk.bf16.mxu0 %vm4741_vm2, %v4740_v24 }
0x30e9   : > { %4209 = vmatprep.subr.bf16.mxu0 %v4740_v24 }
0x30ec   : > { %4210 = vmatpush3.bf16.msra.mxu0 %v5250_v53 }
0x31a7   : > { %v2367_v2 = vpop.f32.mrf.mxu0 }
0x31a8   : > { %v2373_v62 = vadd.f32 %v2367_v2, %v1982_v17 }
0x31a9   : > { %v4197_v12 = vpop.f32.mrf.mxu0 }
0x31aa   : > { %4555 = vtanh.f32 %v2373_v62  ;;  %v3805_v48 = vmul.f32 -1.442695, %v2373_v62 }
0x31ab   : > { %v2370_v34 = vpop.f32.mrf.mxu0 }
0x31ac   : > { %4557 = vpow2.f32 %v3805_v48 }
0x31ad   : > { %v4198_v42 = vpop.f32.mrf.mxu0 }
0x31ae   : > { %v4389_v42 = vld [vmem:[%s5706_s2 + $0x28] sm:$0xff]  }
0x31af   : > { %4223 = vmatprep.subr.bf16.mxu0 %v4389_v42 }
0x31b7   : > { %v4556_v47 = vpop.eup %4555 }
0x31b8   : > { %2383 = vrot.lane.b32.xlu1 %v4556_v47, %s4742_s14 }
0x31b9   : > { %v4558_v9 = vpop.eup %4557 }
0x31ba   : > { %v2377_v10 = vadd.f32 1.0, %v4558_v9 }
0x31bc   : > { %4559 = vrcp.f32 %v2377_v10 }
0x31c9   : > { %v4560_v4 = vpop.eup %4559 }
0x31ca   : > { %v2381_v13 = vmul.f32 %v4560_v4, %v2314_v63 }
0x322a   : > { %v2384_v8 = vpop.permute.xlu1 %2383 }
0x322b   : > { %v2386_v14 = vmul.f32 %v4560_v4, %v2384_v8 }
0x322d   : > { %2388 = vrot.lane.b32.xlu0 %v2386_v14, %s4742_s14 }
0x329f   : > { %v2389_v15 = vpop.permute.xlu0 %2388 }
0x32a0   : > { %v2391_v18 = vadd.f32 %v2389_v15, %v2381_v13 }
0x32a2   : > { %4561 = vtanh.f32 %v2391_v18 }
0x32af   : > { %v4562_v7 = vpop.eup %4561 }
0x32b0   : > { %2394 = vrot.lane.b32.xlu1 %v4562_v7, %s4742_s14  ;;  %v5448_v7 = vld [vmem:[%s5707_s3 + $0x30] sm:$0xff]  }
0x3322   : > { %v2395_v19 = vpop.permute.xlu1 %2394 }
0x3323   : > { %v5381_v21 = vmul.f32 %v4560_v4, %v2395_v19  ;;  %v2762_v19 = vld [vmem:[#allocation3 + $0x18] sm:$0xff] }
0x3325   : > { %v2403_v35 = vpack.c.bf16 %v5381_v21, %v5381_v21 }
0x3327   : > { %2405 = vrot.lane.b32.xlu0 %v2403_v35, %s4743_s15 }
0x3399   : > { %v2406_v29 = vpop.permute.xlu0 %2405 }
0x339a   : > { %4204 = vmatmul.mubr.msk.bf16.vlgmr.msra.gmra.mxu1 %vm406_vm1, %v2406_v29  ;;  %v2760_v29 = vld [vmem:[#allocation2 + $0x18] sm:$0xff] }
0x339b   : > { %4216 = vmatpush3.bf16.msra.mxu1 %v5242_v52  ;;  %4219 = vmatprep.mubr.msk.bf16.mxu1 %vm4741_vm2, %v4740_v24 }
0x339c   : > { %4217 = vmatprep.subr.bf16.mxu1 %v4740_v24 }
0x339f   : > { %4218 = vmatpush3.bf16.msra.mxu1 %v5250_v53 }
0x33a0   : > { %4235 = vmatprep.subr.bf16.mxu1 %v4740_v24 }
0x345a   : > { %v2444_v31 = vpop.f32.mrf.mxu1 }
0x345b   : > { %v2450_v33 = vadd.f32 %v2444_v31, %v1985_v30  ;;  %v2763_v30 = vpack.c.bf16 %v2760_v29, %v2760_v29  ;;  %v1993_v31 = vadd.f32 %v5339_v27, %v5276_v16 }
0x345c   : > { %v4205_v61 = vpop.f32.mrf.mxu1 }
0x345d   : > { %4563 = vtanh.f32 %v2450_v33  ;;  %v3807_v52 = vmul.f32 -1.442695, %v2450_v33 }
0x345e   : > { %v2447_v40 = vpop.f32.mrf.mxu1 }
0x345f   : > { %4565 = vpow2.f32 %v3807_v52 }
0x3460   : > { %v4206_v23 = vpop.f32.mrf.mxu1 }
0x346a   : > { %v4564_v50 = vpop.eup %4563 }
0x346b   : > { %2460 = vrot.lane.b32.xlu1 %v4564_v50, %s4742_s14 }
0x346c   : > { %v4566_v6 = vpop.eup %4565 }
0x346d   : > { %v2454_v41 = vadd.f32 1.0, %v4566_v6  ;;  %v5474_v6 = vld [vmem:[%s5708_s4 + $0x3] ss:$0 sm:$0xff] }
0x346f   : > { %4567 = vrcp.f32 %v2454_v41 }
0x347c   : > { %v4568_v53 = vpop.eup %4567 }
0x347d   : > { %v2458_v20 = vmul.f32 %v4568_v53, %v2391_v18  ;;  %v5440_v18 = vld [vmem:[%s5707_s3 + $0x38] sm:$0xff]  }
0x34dd   : > { %v2461_v44 = vpop.permute.xlu1 %2460 }
0x34de   : > { %v2463_v39 = vmul.f32 %v4568_v53, %v2461_v44 }
0x34e0   : > { %2465 = vrot.lane.b32.xlu0 %v2463_v39, %s4742_s14 }
0x3552   : > { %v2466_v25 = vpop.permute.xlu0 %2465 }
0x3553   : > { %v2468_v49 = vadd.f32 %v2466_v25, %v2458_v20 }
0x3555   : > { %4569 = vtanh.f32 %v2468_v49 }
0x3562   : > { %v4570_v36 = vpop.eup %4569 }
0x3563   : > { %2471 = vrot.lane.b32.xlu1 %v4570_v36, %s4742_s14 }
0x35d5   : > { %v2472_v28 = vpop.permute.xlu1 %2471 }
0x35d6   : > { %v5398_v56 = vmul.f32 %v4568_v53, %v2472_v28 }
0x35d8   : > { %v2480_v51 = vpack.c.bf16 %v5398_v56, %v5398_v56 }
0x35da   : > { %2482 = vrot.lane.b32.xlu0 %v2480_v51, %s4743_s15 }
0x364c   : > { %v2483_v46 = vpop.permute.xlu0 %2482 }
0x364d   : > { %4212 = vmatmul.mubr.msk.bf16.vlgmr.msra.gmra.mxu0 %vm406_vm1, %v2483_v46 }
0x364e   : > { %4224 = vmatpush3.bf16.msra.mxu0 %v4389_v42 }
0x370d   : > { %v2521_v54 = vpop.f32.mrf.mxu0 }
0x370e   : > { %v2527_v55 = vadd.f32 %v2521_v54, %v1990_v43 }
0x370f   : > { %v4213_v57 = vpop.f32.mrf.mxu0 }
0x3710   : > { %4571 = vtanh.f32 %v2527_v55  ;;  %v3809_v63 = vmul.f32 -1.442695, %v2527_v55 }
0x3711   : > { %v2524_v58 = vpop.f32.mrf.mxu0 }
0x3712   : > { %4573 = vpow2.f32 %v3809_v63 }
0x3713   : > { %v4214_v45 = vpop.f32.mrf.mxu0 }
0x371d   : > { %v4572_v59 = vpop.eup %4571 }
0x371e   : > { %2537 = vrot.lane.b32.xlu1 %v4572_v59, %s4742_s14 }
0x371f   : > { %v4574_v0 = vpop.eup %4573 }
0x3720   : > { %v2531_v22 = vadd.f32 1.0, %v4574_v0 }
0x3722   : > { %4575 = vrcp.f32 %v2531_v22 }
0x372f   : > { %v4576_v32 = vpop.eup %4575 }
0x3730   : > { %v2535_v11 = vmul.f32 %v4576_v32, %v2468_v49 }
0x3790   : > { %v2538_v38 = vpop.permute.xlu1 %2537 }
0x3791   : > { %v2540_v17 = vmul.f32 %v4576_v32, %v2538_v38 }
0x3793   : > { %2542 = vrot.lane.b32.xlu0 %v2540_v17, %s4742_s14 }
0x3797   : > { %2091 = vrot.lane.b32.xlu0 %v5283_v26, %s4743_s15  ;;  %v4390_v26 = vld [vmem:[%s5706_s2 + $0x20] sm:$0xff]  }
0x3798   : > { %4225 = vmatprep.subr.bf16.mxu0 %v4390_v26 }
0x3799   : > { %4226 = vmatpush3.bf16.msra.mxu0 %v4390_v26 }
0x379a   : > { %4251 = vmatprep.subr.bf16.mxu0 %v4740_v24 }
0x379b   : > { %2245 = vrot.lane.b32.xlu0 %v5348_v37, %s4743_s15 }
0x3805   : > { %v2543_v2 = vpop.permute.xlu0 %2542 }
0x3806   : > { %v5412_v62 = vadd.f32 %v2543_v2, %v2535_v11 }
0x3808   : > { %4577 = vtanh.f32 %v5412_v62 }
0x3809   : > { %v2092_v12 = vpop.permute.xlu0 %2091 }
0x380a   : > { %2094 = vst.msk [vmem:[#allocation4] sm:$0xff] %vm406_vm1, %v2092_v12 }
0x380d   : > { %v2246_v34 = vpop.permute.xlu0 %2245 }
0x380e   : > { %2248 = vst.msk [vmem:[#allocation4 + $0x10] sm:$0xff] %vm406_vm1, %v2246_v34 }
0x3811   : > { %v2645_v8 = vld [vmem:[#allocation4] sm:$0xff] }
0x3815   : > { %v4578_v37 = vpop.eup %4577 }
0x3816   : > { %2548 = vrot.lane.b32.xlu1 %v4578_v37, %s4742_s14 }
0x381a   : > { %2168 = vrot.lane.b32.xlu1 %v5316_v3, %s4743_s15 }
0x381e   : > { %2322 = vrot.lane.b32.xlu1 %v5365_v1, %s4743_s15  ;;  %v2647_v1 = vld [vmem:[#allocation4 + $0x10] sm:$0xff] }
0x3888   : > { %v2549_v47 = vpop.permute.xlu1 %2548 }
0x3889   : > { %v5429_v48 = vmul.f32 %v4576_v32, %v2549_v47 }
0x388b   : > { %v2557_v9 = vpack.c.bf16 %v5429_v48, %v5429_v48 }
0x388c   : > { %v2169_v10 = vpop.permute.xlu1 %2168 }
0x388d   : > { %2171 = vst.msk [vmem:[#allocation4 + $0x8] sm:$0xff] %vm406_vm1, %v2169_v10  ;;  %2559 = vrot.lane.b32.xlu0 %v2557_v9, %s4743_s15 }
0x3890   : > { %v2323_v4 = vpop.permute.xlu1 %2322 }
0x3891   : > { %2325 = vst.msk [vmem:[#allocation4 + $0x18] sm:$0xff] %vm406_vm1, %v2323_v4  ;;  %2828 = vrot.lane.b32.xlu0 %v2762_v19, %s4742_s14 }
0x3894   : > { %v2646_v14 = vld [vmem:[#allocation4 + $0x8] sm:$0xff] }
0x3895   : > { %v2653_v3 = vpack.c.bf16 %v2646_v14, %v2645_v8 }
0x3897   : > { %4227 = vmatprep.mubr.msk.bf16.mxu0 %vm406_vm1, %v2653_v3 }
0x3898   : > { %v2648_v13 = vld [vmem:[#allocation4 + $0x18] sm:$0xff] }
0x3899   : > { %v2654_v15 = vpack.c.bf16 %v2648_v13, %v2647_v1 }
0x389b   : > { %4228 = vmatmul.mubr.msk.bf16.vlgmr.msra.gmra.mxu0 %vm406_vm1, %v2654_v15 }
0x389c   : > { %4252 = vmatpush3.bf16.msra.mxu0 %v5440_v18 }
0x389d   : > { %4253 = vmatprep.subr.bf16.mxu0 %v4740_v24 }
0x38a0   : > { %4254 = vmatpush3.bf16.msra.mxu0 %v5448_v7 }
0x38a1   : > { %4267 = vmatprep.subr.bf16.mxu0 %v4740_v24 }
0x38ff   : > { %v2560_v35 = vpop.permute.xlu0 %2559 }
0x3900   : > { %4220 = vmatmul.mubr.msk.bf16.vlgmr.msra.gmra.mxu1 %vm406_vm1, %v2560_v35 }
0x3901   : > { %4236 = vmatpush3.bf16.msra.mxu1 %v5440_v18  ;;  %4239 = vmatprep.mubr.msk.bf16.mxu1 %vm4741_vm2, %v4740_v24 }
0x3902   : > { %4237 = vmatprep.subr.bf16.mxu1 %v4740_v24 }
0x3903   : > { %v2829_v54 = vpop.permute.xlu0 %2828 }
0x3905   : > { %4238 = vmatpush3.bf16.msra.mxu1 %v5448_v7 }
0x3906   : > { %4243 = vmatprep.subr.bf16.mxu1 %v4740_v24 }
0x3908   : > { %4240 = vmatmul.mubr.msk.bf16.vlgmr.msra.gmra.mxu1 %vm406_vm1, %v2763_v30 }
0x3909   : > { %4244 = vmatpush3.bf16.msra.mxu1 %v5440_v18  ;;  %4247 = vmatprep.mubr.msk.bf16.mxu1 %vm4741_vm2, %v4740_v24 }
0x390a   : > { %4245 = vmatprep.subr.bf16.mxu1 %v4740_v24 }
0x390d   : > { %4246 = vmatpush3.bf16.msra.mxu1 %v5448_v7 }
0x390e   : > { %4259 = vmatprep.subr.bf16.mxu1 %v4740_v24 }
0x395b   : > { %v5469_v33 = vpop.f32.mrf.mxu0 }
0x395d   : > { %v2723_v50 = vpop.f32.mrf.mxu0 }
0x395e   : > { %v2724_v53 = vadd.f32 %v5474_v6, %v2723_v50 }
0x395f   : > { %v5505_v4 = vpop.f32.mrf.mxu0 }
0x3961   : > { %v2726_v8 = vpop.f32.mrf.mxu0 }
0x3962   : > { %v2727_v14 = vadd.f32 %v5474_v6, %v2726_v8 }
0x39c0   : > { %v2598_v61 = vpop.f32.mrf.mxu1 }
0x39c1   : > { %v2604_v40 = vadd.f32 %v2598_v61, %v1993_v31 }
0x39c2   : > { %v4221_v23 = vpop.f32.mrf.mxu1 }
0x39c3   : > { %v3811_v63 = vmul.f32 -1.442695, %v2604_v40 }
0x39c4   : > { %v2601_v52 = vpop.f32.mrf.mxu1 }
0x39c6   : > { %v4222_v41 = vpop.f32.mrf.mxu1 }
0x39c8   : > { %v2813_v44 = vpop.f32.mrf.mxu1 }
0x39c9   : > { %v2819_v39 = vadd.f32 %v2813_v44, %v2724_v53 }
0x39ca   : > { %v4241_v20 = vpop.f32.mrf.mxu1 }
0x39cb   : > { %4579 = vtanh.f32 %v2819_v39  ;;  %v3831_v49 = vmul.f32 -1.442695, %v2819_v39 }
0x39cc   : > { %v2816_v16 = vpop.f32.mrf.mxu1 }
0x39cd   : > { %4581 = vpow2.f32 %v3831_v49 }
0x39ce   : > { %v4242_v27 = vpop.f32.mrf.mxu1 }
0x39d8   : > { %v4580_v25 = vpop.eup %4579 }
0x39d9   : > { %2833 = vrot.lane.b32.xlu1 %v4580_v25, %s4742_s14 }
0x39da   : > { %v4582_v36 = vpop.eup %4581 }
0x39db   : > { %v2823_v28 = vadd.f32 1.0, %v4582_v36 }
0x39dd   : > { %4583 = vrcp.f32 %v2823_v28 }
0x39ea   : > { %v4584_v51 = vpop.eup %4583 }
0x39eb   : > { %v2831_v55 = vmul.f32 %v4584_v51, %v2829_v54 }
0x3a4b   : > { %v2834_v46 = vpop.permute.xlu1 %2833 }
0x3a4c   : > { %v2836_v43 = vmul.f32 %v4584_v51, %v2834_v46 }
0x3a4e   : > { %2838 = vrot.lane.b32.xlu1 %v2836_v43, %s4742_s14 }
0x3ac0   : > { %v2839_v57 = vpop.permute.xlu1 %2838 }
0x3ac1   : > { %v2841_v58 = vadd.f32 %v2839_v57, %v2831_v55  ;;  %v2732_v57 = vadd.f32 %v5469_v33, %v5474_v6 }
0x3ac3   : > { %4585 = vtanh.f32 %v2841_v58 }
0x3ac4   : > { %4587 = vtanh.f32 %v2604_v40 }
0x3ac5   : > { %4589 = vpow2.f32 %v3811_v63 }
0x3ad0   : > { %v4586_v45 = vpop.eup %4585 }
0x3ad1   : > { %2844 = vrot.lane.b32.xlu0 %v4586_v45, %s4742_s14  ;;  %v4588_v59 = vpop.eup %4587 }
0x3ad2   : > { %v4590_v0 = vpop.eup %4589 }
0x3ad3   : > { %v2608_v22 = vadd.f32 1.0, %v4590_v0 }
0x3ad5   : > { %2614 = vrot.lane.b32.xlu0 %v4588_v59, %s4742_s14  ;;  %4591 = vrcp.f32 %v2608_v22 }
0x3ae2   : > { %v4592_v11 = vpop.eup %4591 }
0x3ae3   : > { %v2612_v42 = vmul.f32 %v4592_v11, %v5412_v62 }
0x3b43   : > { %v2845_v32 = vpop.permute.xlu0 %2844 }
0x3b44   : > { %v5481_v38 = vmul.f32 %v4584_v51, %v2845_v32 }
0x3b46   : > { %v2853_v17 = vpack.c.bf16 %v5481_v38, %v5481_v38 }
0x3b47   : > { %v2615_v2 = vpop.permute.xlu0 %2614 }
0x3b48   : > { %v2617_v12 = vmul.f32 %v4592_v11, %v2615_v2  ;;  %2855 = vrot.lane.b32.xlu1 %v2853_v17, %s4743_s15 }
0x3b4a   : > { %2619 = vrot.lane.b32.xlu0 %v2617_v12, %s4742_s14 }
0x3bba   : > { %v2856_v34 = vpop.permute.xlu1 %2855 }
0x3bbb   : > { %4248 = vmatmul.mubr.msk.bf16.vlgmr.msra.gmra.mxu1 %vm406_vm1, %v2856_v34 }
0x3bbc   : > { %v2620_v26 = vpop.permute.xlu0 %2619  ;;  %4260 = vmatpush3.bf16.msra.mxu1 %v5440_v18  ;;  %4263 = vmatprep.mubr.msk.bf16.mxu1 %vm4741_vm2, %v4740_v24 }
0x3bbd   : > { %v5492_v37 = vadd.f32 %v2620_v26, %v2612_v42  ;;  %4261 = vmatprep.subr.bf16.mxu1 %v4740_v24 }
0x3bbf   : > { %4593 = vtanh.f32 %v5492_v37 }
0x3bc0   : > { %4262 = vmatpush3.bf16.msra.mxu1 %v5448_v7 }
0x3bc1   : > { %4275 = vmatprep.subr.bf16.mxu1 %v4740_v24 }
0x3bcc   : > { %v4594_v47 = vpop.eup %4593 }
0x3bcd   : > { %2625 = vrot.lane.b32.xlu0 %v4594_v47, %s4742_s14 }
0x3bd1   : > { %2399 = vrot.lane.b32.xlu0 %v5381_v21, %s4743_s15 }
0x3bd5   : > { %2553 = vrot.lane.b32.xlu0 %v5429_v48, %s4743_s15 }
0x3c3f   : > { %v2626_v62 = vpop.permute.xlu0 %2625 }
0x3c40   : > { %v2628_v41 = vmul.f32 %v4592_v11, %v2626_v62 }
0x3c43   : > { %v2400_v9 = vpop.permute.xlu0 %2399 }
0x3c44   : > { %2402 = vst.msk [vmem:[#allocation4 + $0x20] sm:$0xff] %vm406_vm1, %v2400_v9 }
0x3c47   : > { %v2554_v10 = vpop.permute.xlu0 %2553 }
0x3c48   : > { %2556 = vst.msk [vmem:[#allocation4 + $0x30] sm:$0xff] %vm406_vm1, %v2554_v10 }
0x3c4f   : > { %v2651_v49 = vld [vmem:[#allocation4 + $0x30] sm:$0xff] }
0x3c7b   : > { %v2894_v3 = vpop.f32.mrf.mxu1 }
0x3c7c   : > { %v2900_v1 = vadd.f32 %v2894_v3, %v2727_v14  ;;  %v2735_v14 = vadd.f32 %v5505_v4, %v5474_v6 }
0x3c7d   : > { %v4249_v13 = vpop.f32.mrf.mxu1 }
0x3c7e   : > { %4595 = vtanh.f32 %v2900_v1  ;;  %v3833_v48 = vmul.f32 -1.442695, %v2900_v1 }
0x3c7f   : > { %v2897_v21 = vpop.f32.mrf.mxu1 }
0x3c80   : > { %4597 = vpow2.f32 %v3833_v48 }
0x3c81   : > { %v4250_v15 = vpop.f32.mrf.mxu1 }
0x3c8b   : > { %v4596_v19 = vpop.eup %4595 }
0x3c8c   : > { %2910 = vrot.lane.b32.xlu1 %v4596_v19, %s4742_s14 }
0x3c8d   : > { %v4598_v35 = vpop.eup %4597 }
0x3c8e   : > { %v2904_v29 = vadd.f32 1.0, %v4598_v35 }
0x3c90   : > { %4599 = vrcp.f32 %v2904_v29 }
0x3c9d   : > { %v4600_v30 = vpop.eup %4599 }
0x3c9e   : > { %v2908_v40 = vmul.f32 %v4600_v30, %v2841_v58 }
0x3cfe   : > { %v2911_v31 = vpop.permute.xlu1 %2910 }
0x3cff   : > { %v2913_v61 = vmul.f32 %v4600_v30, %v2911_v31 }
0x3d01   : > { %2915 = vrot.lane.b32.xlu1 %v2913_v61, %s4742_s14 }
0x3d73   : > { %v2916_v23 = vpop.permute.xlu1 %2915 }
0x3d74   : > { %v2918_v50 = vadd.f32 %v2916_v23, %v2908_v40 }
0x3d76   : > { %4601 = vtanh.f32 %v2918_v50 }
0x3d83   : > { %v4602_v52 = vpop.eup %4601 }
0x3d84   : > { %2921 = vrot.lane.b32.xlu1 %v4602_v52, %s4742_s14 }
0x3d88   : > { %2476 = vrot.lane.b32.xlu1 %v5398_v56, %s4743_s15  ;;  %v2649_v56 = vld [vmem:[#allocation4 + $0x20] sm:$0xff] }
0x3d8c   : > { %2630 = vrot.lane.b32.xlu1 %v2628_v41, %s4743_s15 }
0x3df6   : > { %v2922_v53 = vpop.permute.xlu1 %2921 }
0x3df7   : > { %v5514_v44 = vmul.f32 %v4600_v30, %v2922_v53 }
0x3df9   : > { %v2930_v39 = vpack.c.bf16 %v5514_v44, %v5514_v44 }
0x3dfa   : > { %v2477_v20 = vpop.permute.xlu1 %2476 }
0x3dfb   : > { %2479 = vst.msk [vmem:[#allocation4 + $0x28] sm:$0xff] %vm406_vm1, %v2477_v20  ;;  %2932 = vrot.lane.b32.xlu0 %v2930_v39, %s4743_s15 }
0x3dfe   : > { %v2631_v16 = vpop.permute.xlu1 %2630 }
0x3dff   : > { %2633 = vst.msk [vmem:[#allocation4 + $0x38] sm:$0xff] %vm406_vm1, %v2631_v16  ;;  %2634 = vst.msk [vmem:[#allocation2 + $0x10] sm:$0xff] %vm406_vm1, %v2631_v16 }
0x3e02   : > { %v2650_v27 = vld [vmem:[#allocation4 + $0x28] sm:$0xff] }
0x3e03   : > { %v2655_v25 = vpack.c.bf16 %v2650_v27, %v2649_v56 }
0x3e05   : > { %4231 = vmatprep.mubr.msk.bf16.mxu0 %vm406_vm1, %v2655_v25 }
0x3e06   : > { %v2652_v36 = vld [vmem:[#allocation4 + $0x38] sm:$0xff] }
0x3e07   : > { %v2656_v28 = vpack.c.bf16 %v2652_v36, %v2651_v49 }
0x3e09   : > { %4232 = vmatmul.mubr.msk.bf16.gmra.mxu0 %vm406_vm1, %v2656_v28 }
0x3e0a   : > { %4255 = vmatprep.mubr.msk.bf16.mxu0 %vm4741_vm2, %v4740_v24 }
0x3e6d   : > { %v2933_v51 = vpop.permute.xlu0 %2932 }
0x3e6e   : > { %4256 = vmatmul.mubr.msk.bf16.vlgmr.msra.gmra.mxu0 %vm406_vm1, %v2933_v51 }
0x3e6f   : > { %4268 = vmatpush3.bf16.msra.mxu0 %v5440_v18  ;;  %4271 = vmatprep.mubr.msk.bf16.mxu0 %vm4741_vm2, %v4740_v24 }
0x3e70   : > { %4269 = vmatprep.subr.bf16.mxu0 %v4740_v24 }
0x3e73   : > { %4270 = vmatpush3.bf16.msra.mxu0 %v5448_v7 }
0x3e74   : > { %4283 = vmatprep.subr.bf16.mxu0 %v4740_v24 }
0x3ec9   : > { %v5533_v46 = vpop.f32.mrf.mxu0 }
0x3ecb   : > { %v5535_v43 = vpop.f32.mrf.mxu0 }
0x3ecc   : > { %v2740_v20 = vadd.f32 %v5474_v6, %v5535_v43 }
0x3ecd   : > { %v5537_v54 = vpop.f32.mrf.mxu0 }
0x3ecf   : > { %v5539_v55 = vpop.f32.mrf.mxu0 }
0x3f2e   : > { %v2971_v58 = vpop.f32.mrf.mxu0 }
0x3f2f   : > { %v2977_v45 = vadd.f32 %v2971_v58, %v2732_v57 }
0x3f30   : > { %v4257_v59 = vpop.f32.mrf.mxu0 }
0x3f31   : > { %4603 = vtanh.f32 %v2977_v45  ;;  %v3835_v32 = vmul.f32 -1.442695, %v2977_v45 }
0x3f32   : > { %v2974_v63 = vpop.f32.mrf.mxu0 }
0x3f33   : > { %4605 = vpow2.f32 %v3835_v32 }
0x3f34   : > { %v4258_v0 = vpop.f32.mrf.mxu0 }
0x3f3e   : > { %v4604_v22 = vpop.eup %4603 }
0x3f3f   : > { %2987 = vrot.lane.b32.xlu1 %v4604_v22, %s4742_s14 }
0x3f40   : > { %v4606_v17 = vpop.eup %4605 }
0x3f41   : > { %v2981_v11 = vadd.f32 1.0, %v4606_v17 }
0x3f43   : > { %4607 = vrcp.f32 %v2981_v11 }
0x3f50   : > { %v4608_v2 = vpop.eup %4607 }
0x3f51   : > { %v2985_v33 = vmul.f32 %v4608_v2, %v2918_v50 }
0x3fb1   : > { %v2988_v12 = vpop.permute.xlu1 %2987 }
0x3fb2   : > { %v2990_v34 = vmul.f32 %v4608_v2, %v2988_v12  ;;  %v2743_v12 = vadd.f32 %v5474_v6, %v5539_v55 }
0x3fb4   : > { %2992 = vrot.lane.b32.xlu0 %v2990_v34, %s4742_s14 }
0x4026   : > { %v2993_v42 = vpop.permute.xlu0 %2992 }
0x4027   : > { %v2995_v26 = vadd.f32 %v2993_v42, %v2985_v33 }
0x4029   : > { %4609 = vtanh.f32 %v2995_v26 }
0x4036   : > { %v4610_v47 = vpop.eup %4609 }
0x4037   : > { %2998 = vrot.lane.b32.xlu1 %v4610_v47, %s4742_s14 }
0x40a9   : > { %v2999_v62 = vpop.permute.xlu1 %2998 }
0x40aa   : > { %v5546_v9 = vmul.f32 %v4608_v2, %v2999_v62 }
0x40ac   : > { %v3007_v10 = vpack.c.bf16 %v5546_v9, %v5546_v9 }
0x40ae   : > { %3009 = vrot.lane.b32.xlu0 %v3007_v10, %s4743_s15 }
0x4120   : > { %v3010_v8 = vpop.permute.xlu0 %3009 }
0x4121   : > { %4264 = vmatmul.mubr.msk.bf16.vlgmr.msra.gmra.mxu1 %vm406_vm1, %v3010_v8 }
0x4122   : > { %4276 = vmatpush3.bf16.msra.mxu1 %v5440_v18  ;;  %4279 = vmatprep.mubr.msk.bf16.mxu1 %vm4741_vm2, %v4740_v24 }
0x4123   : > { %4277 = vmatprep.subr.bf16.mxu1 %v4740_v24 }
0x4126   : > { %4278 = vmatpush3.bf16.msra.mxu1 %v5448_v7 }
0x4127   : > { %4291 = vmatprep.subr.bf16.mxu1 %v4740_v24 }
0x41e1   : > { %v3048_v3 = vpop.f32.mrf.mxu1 }
0x41e2   : > { %v3054_v1 = vadd.f32 %v3048_v3, %v2735_v14 }
0x41e3   : > { %v4265_v13 = vpop.f32.mrf.mxu1 }
0x41e4   : > { %4611 = vtanh.f32 %v3054_v1  ;;  %v3837_v48 = vmul.f32 -1.442695, %v3054_v1 }
0x41e5   : > { %v3051_v21 = vpop.f32.mrf.mxu1 }
0x41e6   : > { %4613 = vpow2.f32 %v3837_v48 }
0x41e7   : > { %v4266_v15 = vpop.f32.mrf.mxu1 }
0x41f1   : > { %v4612_v19 = vpop.eup %4611 }
0x41f2   : > { %3064 = vrot.lane.b32.xlu1 %v4612_v19, %s4742_s14 }
0x41f3   : > { %v4614_v35 = vpop.eup %4613 }
0x41f4   : > { %v3058_v29 = vadd.f32 1.0, %v4614_v35  ;;  %v2748_v35 = vadd.f32 %v5533_v46, %v5474_v6 }
0x41f6   : > { %4615 = vrcp.f32 %v3058_v29 }
0x4203   : > { %v4616_v30 = vpop.eup %4615 }
0x4204   : > { %v3062_v4 = vmul.f32 %v4616_v30, %v2995_v26 }
0x4264   : > { %v3065_v31 = vpop.permute.xlu1 %3064 }
0x4265   : > { %v3067_v61 = vmul.f32 %v4616_v30, %v3065_v31 }
0x4267   : > { %3069 = vrot.lane.b32.xlu0 %v3067_v61, %s4742_s14 }
0x42d9   : > { %v3070_v40 = vpop.permute.xlu0 %3069 }
0x42da   : > { %v3072_v23 = vadd.f32 %v3070_v40, %v3062_v4 }
0x42dc   : > { %4617 = vtanh.f32 %v3072_v23 }
0x42e9   : > { %v4618_v50 = vpop.eup %4617 }
0x42ea   : > { %3075 = vrot.lane.b32.xlu1 %v4618_v50, %s4742_s14 }
0x435c   : > { %v3076_v52 = vpop.permute.xlu1 %3075 }
0x435d   : > { %v5563_v41 = vmul.f32 %v4616_v30, %v3076_v52 }
0x435f   : > { %v3084_v53 = vpack.c.bf16 %v5563_v41, %v5563_v41 }
0x4361   : > { %3086 = vrot.lane.b32.xlu0 %v3084_v53, %s4743_s15 }
0x43d3   : > { %v3087_v39 = vpop.permute.xlu0 %3086 }
0x43d4   : > { %4272 = vmatmul.mubr.msk.bf16.vlgmr.msra.gmra.mxu0 %vm406_vm1, %v3087_v39 }
0x43d5   : > { %4284 = vmatpush3.bf16.msra.mxu0 %v5440_v18  ;;  %4287 = vmatprep.mubr.msk.bf16.mxu0 %vm4741_vm2, %v4740_v24 }
0x43d6   : > { %4285 = vmatprep.subr.bf16.mxu0 %v4740_v24 }
0x43d9   : > { %4286 = vmatpush3.bf16.msra.mxu0 %v5448_v7 }
0x4494   : > { %v3125_v16 = vpop.f32.mrf.mxu0 }
0x4495   : > { %v3131_v56 = vadd.f32 %v3125_v16, %v2740_v20 }
0x4496   : > { %v4273_v27 = vpop.f32.mrf.mxu0 }
0x4497   : > { %4619 = vtanh.f32 %v3131_v56  ;;  %v3839_v28 = vmul.f32 -1.442695, %v3131_v56 }
0x4498   : > { %v3128_v25 = vpop.f32.mrf.mxu0 }
0x4499   : > { %4621 = vpow2.f32 %v3839_v28 }
0x449a   : > { %v4274_v49 = vpop.f32.mrf.mxu0 }
0x44a4   : > { %v4620_v36 = vpop.eup %4619 }
0x44a5   : > { %3141 = vrot.lane.b32.xlu1 %v4620_v36, %s4742_s14 }
0x44a6   : > { %v4622_v51 = vpop.eup %4621 }
0x44a7   : > { %v3135_v57 = vadd.f32 1.0, %v4622_v51  ;;  %v2751_v51 = vadd.f32 %v5537_v54, %v5474_v6 }
0x44a9   : > { %4623 = vrcp.f32 %v3135_v57 }
0x44b6   : > { %v4624_v58 = vpop.eup %4623 }
0x44b7   : > { %v3139_v43 = vmul.f32 %v4624_v58, %v3072_v23 }
0x4517   : > { %v3142_v45 = vpop.permute.xlu1 %3141 }
0x4518   : > { %v3144_v59 = vmul.f32 %v4624_v58, %v3142_v45 }
0x451a   : > { %3146 = vrot.lane.b32.xlu0 %v3144_v59, %s4742_s14 }
0x458c   : > { %v3147_v63 = vpop.permute.xlu0 %3146 }
0x458d   : > { %v3149_v0 = vadd.f32 %v3147_v63, %v3139_v43 }
0x458f   : > { %4625 = vtanh.f32 %v3149_v0 }
0x459c   : > { %v4626_v22 = vpop.eup %4625 }
0x459d   : > { %3152 = vrot.lane.b32.xlu1 %v4626_v22, %s4742_s14 }
0x460f   : > { %v3153_v32 = vpop.permute.xlu1 %3152 }
0x4610   : > { %v5579_v17 = vmul.f32 %v4624_v58, %v3153_v32 }
0x4612   : > { %v3161_v11 = vpack.c.bf16 %v5579_v17, %v5579_v17 }
0x4614   : > { %3163 = vrot.lane.b32.xlu0 %v3161_v11, %s4743_s15 }
0x4686   : > { %v3164_v2 = vpop.permute.xlu0 %3163 }
0x4687   : > { %4280 = vmatmul.mubr.msk.bf16.vlgmr.msra.gmra.mxu1 %vm406_vm1, %v3164_v2 }
0x4688   : > { %4292 = vmatpush3.bf16.msra.mxu1 %v5440_v18  ;;  %4295 = vmatprep.mubr.msk.bf16.mxu1 %vm4741_vm2, %v4740_v24 }
0x4689   : > { %4293 = vmatprep.subr.bf16.mxu1 %v4740_v24 }
0x468c   : > { %4294 = vmatpush3.bf16.msra.mxu1 %v5448_v7 }
0x4747   : > { %v3202_v34 = vpop.f32.mrf.mxu1 }
0x4748   : > { %v3208_v33 = vadd.f32 %v3202_v34, %v2743_v12 }
0x4749   : > { %v4281_v42 = vpop.f32.mrf.mxu1 }
0x474a   : > { %4627 = vtanh.f32 %v3208_v33  ;;  %v3841_v18 = vmul.f32 -1.442695, %v3208_v33  ;;  %v4393_v33 = vld [vmem:[%s5709_s5 + $0x8] sm:$0xff]   ;;  %v4394_v42 = vld [vmem:[%s5709_s5] sm:$0xff]  }
0x474b   : > { %v3205_v26 = vpop.f32.mrf.mxu1  ;;  %4299 = vmatprep.subr.bf16.mxu0 %v4393_v33 }
0x474c   : > { %4629 = vpow2.f32 %v3841_v18 }
0x474d   : > { %v4282_v47 = vpop.f32.mrf.mxu1 }
0x4757   : > { %v4628_v62 = vpop.eup %4627 }
0x4758   : > { %3218 = vrot.lane.b32.xlu1 %v4628_v62, %s4742_s14 }
0x4759   : > { %v4630_v10 = vpop.eup %4629 }
0x475a   : > { %v3212_v8 = vadd.f32 1.0, %v4630_v10 }
0x475c   : > { %4631 = vrcp.f32 %v3212_v8 }
0x4769   : > { %v4632_v24 = vpop.eup %4631 }
0x476a   : > { %v3216_v55 = vmul.f32 %v4632_v24, %v3149_v0 }
0x47ca   : > { %v3219_v14 = vpop.permute.xlu1 %3218 }
0x47cb   : > { %v3221_v7 = vmul.f32 %v4632_v24, %v3219_v14 }
0x47cd   : > { %3223 = vrot.lane.b32.xlu0 %v3221_v7, %s4742_s14 }
0x483f   : > { %v3224_v3 = vpop.permute.xlu0 %3223 }
0x4840   : > { %v3226_v1 = vadd.f32 %v3224_v3, %v3216_v55 }
0x4842   : > { %4633 = vtanh.f32 %v3226_v1 }
0x484f   : > { %v4634_v13 = vpop.eup %4633 }
0x4850   : > { %3229 = vrot.lane.b32.xlu1 %v4634_v13, %s4742_s14 }
0x48c2   : > { %v3230_v21 = vpop.permute.xlu1 %3229 }
0x48c3   : > { %v5595_v15 = vmul.f32 %v4632_v24, %v3230_v21 }
0x48c5   : > { %v3238_v19 = vpack.c.bf16 %v5595_v15, %v5595_v15 }
0x48c7   : > { %3240 = vrot.lane.b32.xlu0 %v3238_v19, %s4743_s15 }
0x4939   : > { %v3241_v48 = vpop.permute.xlu0 %3240 }
0x493a   : > { %4288 = vmatmul.mubr.msk.bf16.vlgmr.msra.gmra.mxu0 %vm406_vm1, %v3241_v48 }
0x493b   : > { %4300 = vmatpush3.bf16.msra.mxu0 %v4393_v33 }
0x493c   : > { %4301 = vmatprep.subr.bf16.mxu0 %v4394_v42 }
0x493f   : > { %4302 = vmatpush3.bf16.msra.mxu0 %v4394_v42 }
0x49fa   : > { %v3279_v29 = vpop.f32.mrf.mxu0 }
0x49fb   : > { %v3285_v30 = vadd.f32 %v3279_v29, %v2748_v35 }
0x49fc   : > { %v4289_v31 = vpop.f32.mrf.mxu0 }
0x49fd   : > { %4635 = vtanh.f32 %v3285_v30  ;;  %v3843_v23 = vmul.f32 -1.442695, %v3285_v30  ;;  %v3846_v30 = vld [vmem:[%s5710_s6] ss:$0 sm:$0xff] }
0x49fe   : > { %v3282_v61 = vpop.f32.mrf.mxu0 }
0x49ff   : > { %4637 = vpow2.f32 %v3843_v23 }
0x4a00   : > { %v4290_v4 = vpop.f32.mrf.mxu0 }
0x4a0a   : > { %v4636_v40 = vpop.eup %4635 }
0x4a0b   : > { %3295 = vrot.lane.b32.xlu1 %v4636_v40, %s4742_s14 }
0x4a0c   : > { %v4638_v50 = vpop.eup %4637 }
0x4a0d   : > { %v3289_v52 = vadd.f32 1.0, %v4638_v50 }
0x4a0f   : > { %4639 = vrcp.f32 %v3289_v52 }
0x4a1c   : > { %v4640_v53 = vpop.eup %4639 }
0x4a1d   : > { %v3293_v46 = vmul.f32 %v4640_v53, %v3226_v1 }
0x4a7d   : > { %v3296_v39 = vpop.permute.xlu1 %3295 }
0x4a7e   : > { %v3298_v20 = vmul.f32 %v4640_v53, %v3296_v39 }
0x4a80   : > { %3300 = vrot.lane.b32.xlu0 %v3298_v20, %s4742_s14 }
0x4af2   : > { %v3301_v16 = vpop.permute.xlu0 %3300 }
0x4af3   : > { %v3303_v56 = vadd.f32 %v3301_v16, %v3293_v46 }
0x4af5   : > { %4641 = vtanh.f32 %v3303_v56 }
0x4b02   : > { %v4642_v27 = vpop.eup %4641 }
0x4b03   : > { %3306 = vrot.lane.b32.xlu1 %v4642_v27, %s4742_s14 }
0x4b75   : > { %v3307_v25 = vpop.permute.xlu1 %3306 }
0x4b76   : > { %v3309_v49 = vmul.f32 %v4640_v53, %v3307_v25 }
0x4b78   : > { %v3315_v36 = vpack.c.bf16 %v3309_v49, %v3309_v49 }
0x4b7a   : > { %3317 = vrot.lane.b32.xlu0 %v3315_v36, %s4743_s15 }
0x4bec   : > { %v3318_v28 = vpop.permute.xlu0 %3317 }
0x4bed   : > { %4296 = vmatmul.mubr.msk.bf16.vlgmr.msra.gmra.mxu1 %vm406_vm1, %v3318_v28 }
0x4cad   : > { %v3356_v57 = vpop.f32.mrf.mxu1 }
0x4cae   : > { %v3362_v58 = vadd.f32 %v3356_v57, %v2751_v51 }
0x4caf   : > { %v4297_v45 = vpop.f32.mrf.mxu1 }
0x4cb0   : > { %4643 = vtanh.f32 %v3362_v58  ;;  %v3845_v0 = vmul.f32 -1.442695, %v3362_v58 }
0x4cb1   : > { %v3359_v59 = vpop.f32.mrf.mxu1 }
0x4cb2   : > { %4645 = vpow2.f32 %v3845_v0 }
0x4cb3   : > { %v4298_v43 = vpop.f32.mrf.mxu1 }
0x4cbd   : > { %v4644_v63 = vpop.eup %4643 }
0x4cbe   : > { %3372 = vrot.lane.b32.xlu1 %v4644_v63, %s4742_s14 }
0x4cbf   : > { %v4646_v22 = vpop.eup %4645 }
0x4cc0   : > { %v3366_v32 = vadd.f32 1.0, %v4646_v22 }
0x4cc2   : > { %4647 = vrcp.f32 %v3366_v32 }
0x4ccf   : > { %v4648_v11 = vpop.eup %4647 }
0x4cd0   : > { %v3370_v6 = vmul.f32 %v4648_v11, %v3303_v56 }
0x4d30   : > { %v3373_v2 = vpop.permute.xlu1 %3372 }
0x4d31   : > { %v3375_v12 = vmul.f32 %v4648_v11, %v3373_v2 }
0x4d33   : > { %3377 = vrot.lane.b32.xlu0 %v3375_v12, %s4742_s14 }
0x4d37   : > { %2849 = vrot.lane.b32.xlu0 %v5481_v38, %s4743_s15 }
0x4d3b   : > { %3003 = vrot.lane.b32.xlu0 %v5546_v9, %s4743_s15 }
0x4d3f   : > { %3157 = vrot.lane.b32.xlu0 %v5579_v17, %s4743_s15 }
0x4d43   : > { %3311 = vrot.lane.b32.xlu0 %v3309_v49, %s4743_s15 }
0x4d47   : > { %1121 = vrot.lane.b32.xlu0 %v5096_v5, %s4744_s24 }
0x4d4b   : > { %2636 = vrot.lane.b32.xlu0 %v5492_v37, %s4744_s24 }
0x4da5   : > { %v3378_v54 = vpop.permute.xlu0 %3377 }
0x4da6   : > { %v3380_v34 = vadd.f32 %v3378_v54, %v3370_v6 }
0x4da8   : > { %4649 = vtanh.f32 %v3380_v34 }
0x4da9   : > { %v2850_v38 = vpop.permute.xlu0 %2849 }
0x4daa   : > { %2852 = vst.msk [vmem:[#allocation4] sm:$0xff] %vm406_vm1, %v2850_v38 }
0x4dad   : > { %v3004_v9 = vpop.permute.xlu0 %3003 }
0x4dae   : > { %3006 = vst.msk [vmem:[#allocation4 + $0x10] sm:$0xff] %vm406_vm1, %v3004_v9 }
0x4db1   : > { %v3158_v17 = vpop.permute.xlu0 %3157 }
0x4db2   : > { %3160 = vst.msk [vmem:[#allocation4 + $0x20] sm:$0xff] %vm406_vm1, %v3158_v17 }
0x4db5   : > { %v4650_v5 = vpop.eup %4649  ;;  %v3312_v37 = vpop.permute.xlu0 %3311  ;;  %v3400_v7 = vld [vmem:[#allocation4 + $0x10] sm:$0xff] }
0x4db6   : > { %3314 = vst.msk [vmem:[#allocation4 + $0x30] sm:$0xff] %vm406_vm1, %v3312_v37  ;;  %3383 = vrot.lane.b32.xlu1 %v4650_v5, %s4742_s14 }
0x4db9   : > { %v1122_v26 = vpop.permute.xlu0 %1121  ;;  %v3402_v1 = vld [vmem:[#allocation4 + $0x20] sm:$0xff] }
0x4dba   : > { %1124 = vst.msk [vmem:[#allocation3] sm:$0xff] %vm406_vm1, %v1122_v26  ;;  %2926 = vrot.lane.b32.xlu1 %v5514_v44, %s4743_s15 }
0x4dbd   : > { %v2637_v47 = vpop.permute.xlu0 %2636  ;;  %v3404_v48 = vld [vmem:[#allocation4 + $0x30] sm:$0xff] }
0x4dbe   : > { %2639 = vst.msk [vmem:[#allocation3 + $0x10] sm:$0xff] %vm406_vm1, %v2637_v47  ;;  %3080 = vrot.lane.b32.xlu1 %v5563_v41, %s4743_s15  ;;  %v3398_v41 = vld [vmem:[#allocation4] sm:$0xff] }
0x4dc2   : > { %3234 = vrot.lane.b32.xlu1 %v5595_v15, %s4743_s15 }
0x4e28   : > { %v3384_v62 = vpop.permute.xlu1 %3383 }
0x4e29   : > { %v3386_v18 = vmul.f32 %v4648_v11, %v3384_v62 }
0x4e2b   : > { %3388 = vrot.lane.b32.xlu1 %v3386_v18, %s4743_s15 }
0x4e2c   : > { %v2927_v10 = vpop.permute.xlu1 %2926 }
0x4e2d   : > { %2929 = vst.msk [vmem:[#allocation4 + $0x8] sm:$0xff] %vm406_vm1, %v2927_v10 }
0x4e2f   : > { %1878 = vrot.lane.b32.xlu1 %v5294_v60, %s4744_s24 }
0x4e30   : > { %v3081_v44 = vpop.permute.xlu1 %3080 }
0x4e31   : > { %3083 = vst.msk [vmem:[#allocation4 + $0x18] sm:$0xff] %vm406_vm1, %v3081_v44 }
0x4e33   : > { %3394 = vrot.lane.b32.xlu1 %v3380_v34, %s4744_s24 }
0x4e34   : > { %v3235_v8 = vpop.permute.xlu1 %3234  ;;  %v3399_v24 = vld [vmem:[#allocation4 + $0x8] sm:$0xff] }
0x4e35   : > { %3237 = vst.msk [vmem:[#allocation4 + $0x28] sm:$0xff] %vm406_vm1, %v3235_v8  ;;  %v3406_v14 = vpack.c.bf16 %v3399_v24, %v3398_v41 }
0x4e37   : > { %4303 = vmatprep.mubr.msk.bf16.mxu0 %vm406_vm1, %v3406_v14 }
0x4e38   : > { %v3401_v55 = vld [vmem:[#allocation4 + $0x18] sm:$0xff] }
0x4e39   : > { %v3407_v3 = vpack.c.bf16 %v3401_v55, %v3400_v7 }
0x4e3b   : > { %4304 = vmatmul.mubr.msk.bf16.vlgmr.msra.gmra.mxu0 %vm406_vm1, %v3407_v3 }
0x4e3c   : > { %v3403_v60 = vld [vmem:[#allocation4 + $0x28] sm:$0xff] }
0x4e3d   : > { %v3408_v13 = vpack.c.bf16 %v3403_v60, %v3402_v1 }
0x4e3f   : > { %4307 = vmatprep.mubr.msk.bf16.mxu0 %vm406_vm1, %v3408_v13 }
0x4e9d   : > { %v3389_v21 = vpop.permute.xlu1 %3388 }
0x4e9e   : > { %3391 = vst.msk [vmem:[#allocation4 + $0x38] sm:$0xff] %vm406_vm1, %v3389_v21  ;;  %3392 = vst.msk [vmem:[#allocation2 + $0x18] sm:$0xff] %vm406_vm1, %v3389_v21 }
0x4ea1   : > { %v1879_v15 = vpop.permute.xlu1 %1878 }
0x4ea2   : > { %1881 = vst.msk [vmem:[#allocation3 + $0x8] sm:$0xff] %vm406_vm1, %v1879_v15 }
0x4ea5   : > { %v3395_v19 = vpop.permute.xlu1 %3394  ;;  %v3405_v35 = vld [vmem:[#allocation4 + $0x38] sm:$0xff] }
0x4ea6   : > { %3397 = vst.msk [vmem:[#allocation3 + $0x18] sm:$0xff] %vm406_vm1, %v3395_v19  ;;  %v3409_v29 = vpack.c.bf16 %v3405_v35, %v3404_v48 }
0x4ea8   : > { %4308 = vmatmul.mubr.msk.bf16.gmra.mxu0 %vm406_vm1, %v3409_v29 }
0x4efb   : > { %v4305_v31 = vpop.f32.mrf.mxu0 }
0x4efc   : > { %v3488_v61 = vadd.f32 %v4305_v31, %v3846_v30 }
0x4efd   : > { %v3479_v4 = vpop.f32.mrf.mxu0 }
0x4efe   : > { %v3855_v40 = vmul.f32 -1.442695, %v3488_v61  ;;  %v3480_v23 = vadd.f32 %v3846_v30, %v3479_v4 }
0x4eff   : > { %v4306_v50 = vpop.f32.mrf.mxu0 }
0x4f00   : > { %4651 = vpow2.f32 %v3855_v40  ;;  %v3853_v52 = vmul.f32 -1.442695, %v3480_v23  ;;  %v3491_v53 = vadd.f32 %v4306_v50, %v3846_v30 }
0x4f01   : > { %v3482_v39 = vpop.f32.mrf.mxu0 }
0x4f02   : > { %4653 = vpow2.f32 %v3853_v52  ;;  %v3856_v20 = vmul.f32 -1.442695, %v3491_v53  ;;  %v3483_v46 = vadd.f32 %v3846_v30, %v3482_v39 }
0x4f04   : > { %4655 = vpow2.f32 %v3856_v20  ;;  %v3854_v16 = vmul.f32 -1.442695, %v3483_v46 }
0x4f06   : > { %4657 = vpow2.f32 %v3854_v16 }
0x4f0d   : > { %v4652_v56 = vpop.eup %4651 }
0x4f0e   : > { %v3536_v27 = vadd.f32 1.0, %v4652_v56 }
0x4f0f   : > { %v4654_v25 = vpop.eup %4653 }
0x4f10   : > { %4659 = vrcp.f32 %v3536_v27  ;;  %v3534_v49 = vadd.f32 1.0, %v4654_v25 }
0x4f11   : > { %v4656_v36 = vpop.eup %4655 }
0x4f12   : > { %4661 = vrcp.f32 %v3534_v49  ;;  %v3537_v28 = vadd.f32 1.0, %v4656_v36 }
0x4f13   : > { %v4658_v51 = vpop.eup %4657 }
0x4f14   : > { %4663 = vrcp.f32 %v3537_v28  ;;  %v3535_v57 = vadd.f32 1.0, %v4658_v51 }
0x4f16   : > { %4665 = vrcp.f32 %v3535_v57 }
0x4f1d   : > { %v4660_v58 = vpop.eup %4659 }
0x4f1e   : > { %3560 = vst [vmem:[%s4855_s17 + $0x10] sm:$0xff] %v4660_v58 }
0x4f1f   : > { %v4662_v45 = vpop.eup %4661 }
0x4f20   : > { %3558 = vst [vmem:[%s4855_s17] sm:$0xff] %v4662_v45 }
0x4f21   : > { %v4664_v59 = vpop.eup %4663 }
0x4f22   : > { %3561 = vst [vmem:[%s4855_s17 + $0x18] sm:$0xff] %v4664_v59 }
0x4f23   : > { %v4666_v43 = vpop.eup %4665 }
0x4f24   : > { %3559 = vst [vmem:[%s4855_s17 + $0x8] sm:$0xff] %v4666_v43 }
0x4f25   : > { %v3624_v14 = vld [vmem:[%s4855_s17 + $0x10] sm:$0xff] (%p4833_p6) }
0x4f26   : > { %3625 = vst [vmem:[%s3577_s13 + $0x20] sm:$0xff] (%p4833_p6), %v3624_v14 }
0x4f27   : > { %v3620_v41 = vld [vmem:[%s4855_s17] sm:$0xff] (%p4833_p6) }
0x4f28   : > { %3621 = vst [vmem:[%s3577_s13] sm:$0xff] (%p4833_p6), %v3620_v41 }
0x4f29   : > { %v3626_v7 = vld [vmem:[%s4855_s17 + $0x18] sm:$0xff] (%p4833_p6) }
0x4f2a   : > { %3627 = vst [vmem:[%s3577_s13 + $0x30] sm:$0xff] (%p4833_p6), %v3626_v7 }
0x4f2b   : > { %v3622_v24 = vld [vmem:[%s4855_s17 + $0x8] sm:$0xff] (%p4833_p6) }
0x4f2c   : > { %3623 = vst [vmem:[%s3577_s13 + $0x10] sm:$0xff] (%p4833_p6), %v3622_v24 }
0x4f68   : > { %v4309_v63 = vpop.f32.mrf.mxu0 }
0x4f69   : > { %v3504_v0 = vadd.f32 %v4309_v63, %v3846_v30 }
0x4f6a   : > { %v3495_v22 = vpop.f32.mrf.mxu0 }
0x4f6b   : > { %v3859_v32 = vmul.f32 -1.442695, %v3504_v0  ;;  %v3496_v11 = vadd.f32 %v3846_v30, %v3495_v22 }
0x4f6c   : > { %v4310_v2 = vpop.f32.mrf.mxu0 }
0x4f6d   : > { %4667 = vpow2.f32 %v3859_v32  ;;  %v3857_v12 = vmul.f32 -1.442695, %v3496_v11  ;;  %v3507_v6 = vadd.f32 %v4310_v2, %v3846_v30 }
0x4f6e   : > { %v3498_v54 = vpop.f32.mrf.mxu0 }
0x4f6f   : > { %4669 = vpow2.f32 %v3857_v12  ;;  %v3860_v34 = vmul.f32 -1.442695, %v3507_v6  ;;  %v3499_v38 = vadd.f32 %v3846_v30, %v3498_v54 }
0x4f71   : > { %4671 = vpow2.f32 %v3860_v34  ;;  %v3858_v9 = vmul.f32 -1.442695, %v3499_v38 }
0x4f73   : > { %4673 = vpow2.f32 %v3858_v9 }
0x4f7a   : > { %v4668_v17 = vpop.eup %4667 }
0x4f7b   : > { %v3540_v33 = vadd.f32 1.0, %v4668_v17 }
0x4f7c   : > { %v4670_v5 = vpop.eup %4669 }
0x4f7d   : > { %4675 = vrcp.f32 %v3540_v33  ;;  %v3538_v37 = vadd.f32 1.0, %v4670_v5 }
0x4f7e   : > { %v4672_v42 = vpop.eup %4671 }
0x4f7f   : > { %4677 = vrcp.f32 %v3538_v37  ;;  %v3541_v26 = vadd.f32 1.0, %v4672_v42 }
0x4f80   : > { %v4674_v47 = vpop.eup %4673 }
0x4f81   : > { %4679 = vrcp.f32 %v3541_v26  ;;  %v3539_v62 = vadd.f32 1.0, %v4674_v47 }
0x4f83   : > { %4681 = vrcp.f32 %v3539_v62 }
0x4f8a   : > { %v4676_v18 = vpop.eup %4675 }
0x4f8b   : > { %3564 = vst [vmem:[%s4855_s17 + $0x30] sm:$0xff] %v4676_v18 }
0x4f8c   : > { %v4678_v10 = vpop.eup %4677 }
0x4f8d   : > { %3562 = vst [vmem:[%s4855_s17 + $0x20] sm:$0xff] %v4678_v10  ;;  %3572 = sbr.rel (!%p4833_p6) target bundleno = 20378 (0x4f9a), region = 94 }
0x4f8e   : > { %v4680_v44 = vpop.eup %4679 }
0x4f8f   : > { %3565 = vst [vmem:[%s4855_s17 + $0x38] sm:$0xff] %v4680_v44 }
0x4f90   : > { %v4682_v8 = vpop.eup %4681 }
0x4f91   : > { %3563 = vst [vmem:[%s4855_s17 + $0x28] sm:$0xff] %v4682_v8 }
0x4f92   : > { %v3632_v1 = vld [vmem:[%s4855_s17 + $0x30] sm:$0xff] }
0x4f93   : > { %3633 = vst [vmem:[%s3577_s13 + $0x60] sm:$0xff] %v3632_v1 }
0x4f94   : > { %v3628_v55 = vld [vmem:[%s4855_s17 + $0x20] sm:$0xff] }
0x4f95   : > { %3629 = vst [vmem:[%s3577_s13 + $0x40] sm:$0xff] %v3628_v55 }
0x4f96   : > { %v3634_v60 = vld [vmem:[%s4855_s17 + $0x38] sm:$0xff] }
0x4f97   : > { %3635 = vst [vmem:[%s3577_s13 + $0x70] sm:$0xff] %v3634_v60 }
0x4f98   : > { %v3630_v3 = vld [vmem:[%s4855_s17 + $0x28] sm:$0xff] }
0x4f99   : > { %3631 = vst [vmem:[%s3577_s13 + $0x50] sm:$0xff] %v3630_v3 }
0x4f9a PF: > { %s17_s30 = sadd.s32 1, %s4737_s30   ;;  %s5713_s24 = smov %s4717_s25 }
0x4f9b   : > { %p14_p13 = scmp.ge.s32.totalorder %s17_s30, 6   ;;  %s5714_s25 = smov %s4841_s16 }
0x4f9c   : > { %s5715_s26 = smov %s4729_s28  ;;  %s5716_s27 = smov %s4733_s29 }
0x4f9d   : > { %s5717_s28 = smov %s5720_s8  ;;  %s5718_s29 = smov %s5724_s9 }
0x4f9e   :  { %16 = sbr.rel (!%p14_p13) target bundleno = 4 (0x4), region = 177 }

</bundles_post_ra>
